<compile_context>
chip_gen: v6e
topology: v6e:2x2x1
jax: 0.10.0
libtpu: 0.0.40
codegen_flags: <defaults>
</compile_context>

<pallas_src>
import numpy as np
import jax
import jax.numpy as jnp
from jax.experimental import pallas as pl
from jax.experimental.pallas import tpu as pltpu

NEG_SLOPE = 0.01   # nn.LeakyReLU default
BN_EPS = 1e-5      # nn.BatchNorm2d default


def _lrelu(v):
    return jnp.where(v > 0, v, NEG_SLOPE * v)


# --------------------------------- fused forward kernel ---------------------------------

def _fused_cnn_kernel(x_ref,                      # (nb, H, W) f32, single input channel
                      w1_ref, b1_ref,             # lane-packed conv1 (+BN1) weights / bias
                      w2_ref, b2_ref,             # lane-packed conv2 (+BN2)
                      w3_ref, b3_ref,             # lane-packed conv3 (+BN3)
                      fc1w_ref, fc1b_ref,         # fc1 (rows permuted + zero-padded), bf16
                      fc2w_ref, fc2b_ref,
                      fc3w_ref, fc3b_ref,
                      o_ref):                     # (nb, 1) f32

    def conv3x3(maps, w_ref, b_ref, c_out):
        """Valid 3x3 conv of per-channel maps into one lane-packed slab.

        maps: list of c_in arrays (nb, hin, win).  Output slab is (nb, hin-2, c_out*win-2);
        output channel `co` occupies lanes [co*win, co*win + win-2).  Each (ci, dy, dx) tap
        is a single shifted FMA covering all samples and all output channels.
        """
        hin, win = maps[0].shape[1], maps[0].shape[2]
        ho = hin - 2
        lo = c_out * win - 2
        acc = None
        for ci, m in enumerate(maps):
            # the input-channel strip repeated once per OUTPUT channel along the lane axis
            tiled = jnp.concatenate([m] * c_out, axis=-1)            # (nb, hin, c_out*win)
            for dy in range(3):
                for dx in range(3):
                    t = (ci * 3 + dy) * 3 + dx
                    wrow = w_ref[t:t + 1, :]                         # (1, lo) lane weights
                    term = wrow * tiled[:, dy:dy + ho, dx:dx + lo]
                    acc = term if acc is None else acc + term
        return _lrelu(acc + b_ref[...])                              # folded-BN bias + LeakyReLU

    def pool2x2_s1(slab):
        # 2x2, stride-1 max pool on the packed slab (strips never mix: the valid width per
        # strip shrinks by one while the strip stride stays the same).
        return jnp.maximum(
            jnp.maximum(slab[:, :-1, :-1], slab[:, :-1, 1:]),
            jnp.maximum(slab[:, 1:, :-1], slab[:, 1:, 1:]))

    def strips(slab, stride, width, c):
        return [slab[:, :, ci * stride: ci * stride + width] for ci in range(c)]

    w_img = x_ref.shape[2]

    # conv stack — everything stays in vregs / VMEM
    s1 = conv3x3([x_ref[...]], w1_ref, b1_ref, c_out=2)                        # strips @ stride w_img
    s2 = conv3x3(strips(s1, w_img, w_img - 2, 2), w2_ref, b2_ref, c_out=4)     # strips @ stride w_img-2
    p1 = pool2x2_s1(s2)
    s3 = conv3x3(strips(p1, w_img - 2, w_img - 5, 4), w3_ref, b3_ref, c_out=6)  # strips @ stride w_img-5
    p2 = pool2x2_s1(s3)                                                         # (nb, hf, 6*(w_img-5)-3)

    # Flatten: lane-concat the pooled rows once; fc1's weight rows were permuted at trace
    # time to match this layout (junk lanes hit zero weight rows).
    flat = jnp.concatenate([p2[:, hh, :] for hh in range(p2.shape[1])], axis=-1)

    h1 = _lrelu(jnp.dot(flat.astype(jnp.bfloat16), fc1w_ref[...],
                        preferred_element_type=jnp.float32) + fc1b_ref[...])
    # TODO(synk): Dropout2d(0.25) is identity in eval mode; train-mode stochastic drop not implemented.
    h2 = _lrelu(jnp.dot(h1.astype(jnp.bfloat16), fc2w_ref[...],
                        preferred_element_type=jnp.float32) + fc2b_ref[...])
    o_ref[...] = jnp.dot(h2.astype(jnp.bfloat16), fc3w_ref[...],
                         preferred_element_type=jnp.float32) + fc3b_ref[...]


# ---------------------------------- geometry / packing ----------------------------------

def _final_hw(input_size, input_height):
    w, h = input_size - 2, input_height - 2   # conv1
    w, h = w - 2, h - 2                       # conv2
    w, h = w - 1, h - 1                       # pool (k=2, stride=1)
    w, h = w - 2, h - 2                       # conv3
    w, h = w - 1, h - 1                       # pool
    return w, h


def _fold_bn(w, b, bn):
    # BN(conv(x)) in eval mode == conv with W' = W*scale, b' = (b - mean)*scale + beta.
    scale = bn["gamma"] / jnp.sqrt(bn["var"] + BN_EPS)
    wf = (w * scale[:, None, None, None]).astype(jnp.float32)
    bf = ((b - bn["mean"]) * scale + bn["beta"]).astype(jnp.float32)
    return wf, bf


def _pack_conv(w, b, bn, win):
    """Fold BN and lane-pack: row t=(ci*3+dy)*3+dx holds, at lane co*win + x (x < win-2),
    the folded weight W'[co, ci, dy, dx]; padding lanes are zero."""
    c_out, c_in = w.shape[0], w.shape[1]
    wo = win - 2
    lo = c_out * win - 2
    wf, bf = _fold_bn(w, b, bn)
    place = np.zeros((c_out, lo), np.float32)
    for co in range(c_out):
        place[co, co * win: co * win + wo] = 1.0
    place = jnp.asarray(place)
    wp = jnp.einsum("oi,ol->il", wf.reshape(c_out, c_in * 9), place)   # (c_in*9, lo)
    bp = (bf @ place).reshape(1, lo)
    return wp, bp


def _pack_fc1(fc1_w, hf, wf, stride):
    """Permute fc1 rows from PyTorch NCHW flatten order (c*hf*wf + h*wf + x) to the kernel's
    lane-concat slab order (h*lp + c*stride + x); junk lanes get zero rows."""
    lp = 6 * stride - 3                       # pooled-slab lane width
    src = np.zeros((hf * lp,), np.int32)
    keep = np.zeros((hf * lp, 1), np.float32)
    for h in range(hf):
        for c in range(6):
            for x in range(wf):
                dst = h * lp + c * stride + x
                src[dst] = c * (hf * wf) + h * wf + x
                keep[dst, 0] = 1.0
    return fc1_w[jnp.asarray(src)] * jnp.asarray(keep)                 # (hf*lp, 128)


def _pick_tile_n(n):
    # batch blocks are either the full batch or a multiple of 8 (sublane tile)
    return 8 if (n > 8 and n % 8 == 0) else n


# ------------------------------------- forward ------------------------------------------

def cnn_forward(x_nchw, p):
    n, _, h_in, w_in = x_nchw.shape
    x = x_nchw[:, 0].astype(jnp.float32)                  # in_channels == 1 -> (N, H, W)

    # lane-packed, BN-folded weights (trace-time constants drive the packing; tiny cost)
    w1p, b1p = _pack_conv(p["conv1_w"], p["conv1_b"], p["bn1"], win=w_in)
    w2p, b2p = _pack_conv(p["conv2_w"], p["conv2_b"], p["bn2"], win=w_in - 2)
    w3p, b3p = _pack_conv(p["conv3_w"], p["conv3_b"], p["bn3"], win=w_in - 5)

    wf, hf = _final_hw(w_in, h_in)
    fc1p = _pack_fc1(p["fc1_w"], hf=hf, wf=wf, stride=w_in - 5).astype(jnp.bfloat16)
    fc2p = p["fc2_w"].astype(jnp.bfloat16)
    fc3p = p["fc3_w"].astype(jnp.bfloat16)
    fc1b = p["fc1_b"].reshape(1, -1).astype(jnp.float32)
    fc2b = p["fc2_b"].reshape(1, -1).astype(jnp.float32)
    fc3b = p["fc3_b"].reshape(1, -1).astype(jnp.float32)

    weights = (w1p, b1p, w2p, b2p, w3p, b3p, fc1p, fc1b, fc2p, fc2b, fc3p, fc3b)

    tile_n = _pick_tile_n(n)

    def _const_spec(a):
        return pl.BlockSpec(a.shape, lambda i, _nd=a.ndim: (0,) * _nd)

    out = pl.pallas_call(
        _fused_cnn_kernel,
        out_shape=jax.ShapeDtypeStruct((n, 1), jnp.float32),
        grid=(n // tile_n,),
        in_specs=[pl.BlockSpec((tile_n, h_in, w_in), lambda i: (i, 0, 0))]
                 + [_const_spec(a) for a in weights],
        out_specs=pl.BlockSpec((tile_n, 1), lambda i: (i, 0)),
        compiler_params=pltpu.CompilerParams(dimension_semantics=("parallel",)),
    )(x, *weights)

    return out[:, 0]                                      # .squeeze(dim=1) -> (N,)


# ---------------------------------- params / reference ----------------------------------

def init_params(key, input_size=16, input_height=16):
    w, h = _final_hw(input_size, input_height)
    flat = w * h * 6
    keys = jax.random.split(key, 15)

    def nrm(k, shape, scale=0.1):
        return scale * jax.random.normal(k, shape, jnp.float32)

    def bn(k, c):
        k1, k2, k3, k4 = jax.random.split(k, 4)
        return dict(gamma=1.0 + 0.1 * jax.random.normal(k1, (c,), jnp.float32),
                    beta=0.1 * jax.random.normal(k2, (c,), jnp.float32),
                    mean=0.1 * jax.random.normal(k3, (c,), jnp.float32),
                    var=0.5 + jax.random.uniform(k4, (c,), jnp.float32))

    return {
        "conv1_w": nrm(keys[0], (2, 1, 3, 3)), "conv1_b": nrm(keys[1], (2,)),
        "conv2_w": nrm(keys[2], (4, 2, 3, 3)), "conv2_b": nrm(keys[3], (4,)),
        "conv3_w": nrm(keys[4], (6, 4, 3, 3)), "conv3_b": nrm(keys[5], (6,)),
        "bn1": bn(keys[6], 2), "bn2": bn(keys[7], 4), "bn3": bn(keys[8], 6),
        # NOTE: fc weights are stored (in, out); a real PyTorch nn.Linear checkpoint is
        # (out, in) and would need a transpose on import.
        "fc1_w": nrm(keys[9], (flat, 128)), "fc1_b": nrm(keys[10], (128,)),
        "fc2_w": nrm(keys[11], (128, 32)),  "fc2_b": nrm(keys[12], (32,)),
        "fc3_w": nrm(keys[13], (32, 1)),    "fc3_b": nrm(keys[14], (1,)),
    }


def cnn_reference(x_nchw, p):
    """Pure-JAX (XLA) reference of the same eval-mode forward pass."""
    def conv(x, w, b):
        y = jax.lax.conv_general_dilated(x, w, (1, 1), "VALID",
                                         dimension_numbers=("NCHW", "OIHW", "NCHW"))
        return y + b[None, :, None, None]

    def bnorm(x, s):
        sc = s["gamma"] / jnp.sqrt(s["var"] + BN_EPS)
        return (x - s["mean"][None, :, None, None]) * sc[None, :, None, None] \
               + s["beta"][None, :, None, None]

    def pool(x):  # 2x2, stride 1
        return jnp.maximum(jnp.maximum(x[:, :, :-1, :-1], x[:, :, :-1, 1:]),
                           jnp.maximum(x[:, :, 1:, :-1], x[:, :, 1:, 1:]))

    h = _lrelu(bnorm(conv(x_nchw, p["conv1_w"], p["conv1_b"]), p["bn1"]))
    h = _lrelu(bnorm(conv(h, p["conv2_w"], p["conv2_b"]), p["bn2"]))
    h = pool(h)
    h = _lrelu(bnorm(conv(h, p["conv3_w"], p["conv3_b"]), p["bn3"]))
    h = pool(h)
    flat = h.reshape(h.shape[0], -1)
    h1 = _lrelu(flat @ p["fc1_w"] + p["fc1_b"])
    h2 = _lrelu(h1 @ p["fc2_w"] + p["fc2_b"])
    return (h2 @ p["fc3_w"] + p["fc3_b"])[:, 0]


if __name__ == "__main__":
    key = jax.random.PRNGKey(0)
    k_x, k_p = jax.random.split(key)

    x = jax.random.normal(k_x, (2, 1, 16, 16), jnp.float32)   # NCHW, input_size=input_height=16
    params = init_params(k_p, input_size=16, input_height=16)

    fwd = jax.jit(cnn_forward)
    y = jax.block_until_ready(fwd(x, params))

    assert y.shape == (2,), y.shape
    assert y.dtype == jnp.float32
    assert bool(jnp.all(jnp.isfinite(y)))

    # Correctness vs. a pure-JAX reference (loose tolerance: the FC head runs in bf16 on the MXU).
    y_ref = cnn_reference(x, params)
    assert bool(jnp.allclose(y, y_ref, rtol=5e-2, atol=3e-2)), (y, y_ref)

    print("KERNEL_OK")
</pallas_src>

<mosaic_0001>
module attributes {stable_mosaic.version = 11 : i64} {
  func.func @_fused_cnn_kernel(%arg0: i32, %arg1: memref<2x16x16xf32, #tpu.memory_space<vmem>>, %arg2: memref<9x30xf32, #tpu.memory_space<vmem>>, %arg3: memref<1x30xf32, #tpu.memory_space<vmem>>, %arg4: memref<18x54xf32, #tpu.memory_space<vmem>>, %arg5: memref<1x54xf32, #tpu.memory_space<vmem>>, %arg6: memref<36x64xf32, #tpu.memory_space<vmem>>, %arg7: memref<1x64xf32, #tpu.memory_space<vmem>>, %arg8: memref<504x128xbf16, #tpu.memory_space<vmem>>, %arg9: memref<1x128xf32, #tpu.memory_space<vmem>>, %arg10: memref<128x32xbf16, #tpu.memory_space<vmem>>, %arg11: memref<1x32xf32, #tpu.memory_space<vmem>>, %arg12: memref<32x1xbf16, #tpu.memory_space<vmem>>, %arg13: memref<1x1xf32, #tpu.memory_space<vmem>>, %arg14: memref<2x1xf32, #tpu.memory_space<vmem>>) attributes {dimension_semantics = [#tpu.dimension_semantics<parallel>], iteration_bounds = array<i64: 1>, scalar_prefetch = 0 : i64, scratch_operands = 0 : i64, tpu.core_type = #tpu.core_type<tc>, window_params = [{transform_indices = @transform_0, window_bounds = array<i64: 2, 16, 16>}, {pipeline_mode = #tpu.pipeline_mode<synchronous>, transform_indices = @transform_1, window_bounds = array<i64: 9, 30>}, {pipeline_mode = #tpu.pipeline_mode<synchronous>, transform_indices = @transform_2, window_bounds = array<i64: 1, 30>}, {pipeline_mode = #tpu.pipeline_mode<synchronous>, transform_indices = @transform_3, window_bounds = array<i64: 18, 54>}, {pipeline_mode = #tpu.pipeline_mode<synchronous>, transform_indices = @transform_4, window_bounds = array<i64: 1, 54>}, {pipeline_mode = #tpu.pipeline_mode<synchronous>, transform_indices = @transform_5, window_bounds = array<i64: 36, 64>}, {pipeline_mode = #tpu.pipeline_mode<synchronous>, transform_indices = @transform_6, window_bounds = array<i64: 1, 64>}, {pipeline_mode = #tpu.pipeline_mode<synchronous>, transform_indices = @transform_7, window_bounds = array<i64: 504, 128>}, {pipeline_mode = #tpu.pipeline_mode<synchronous>, transform_indices = @transform_8, window_bounds = array<i64: 1, 128>}, {pipeline_mode = #tpu.pipeline_mode<synchronous>, transform_indices = @transform_9, window_bounds = array<i64: 128, 32>}, {pipeline_mode = #tpu.pipeline_mode<synchronous>, transform_indices = @transform_10, window_bounds = array<i64: 1, 32>}, {pipeline_mode = #tpu.pipeline_mode<synchronous>, transform_indices = @transform_11, window_bounds = array<i64: 32, 1>}, {pipeline_mode = #tpu.pipeline_mode<synchronous>, transform_indices = @transform_12, window_bounds = array<i64: 1, 1>}, {transform_indices = @transform_13, window_bounds = array<i64: 2, 1>}]} {
    %c0 = arith.constant 0 : index
    %c0_0 = arith.constant 0 : index
    %c0_1 = arith.constant 0 : index
    %0 = vector.load %arg1[%c0, %c0_0, %c0_1] : memref<2x16x16xf32, #tpu.memory_space<vmem>>, vector<2x16x16xf32>
    %1 = tpu.concatenate %0, %0 in 2 : vector<2x16x16xf32>, vector<2x16x16xf32> -> vector<2x16x32xf32>
    %c0_2 = arith.constant 0 : index
    %c0_3 = arith.constant 0 : index
    %2 = vector.load %arg2[%c0_2, %c0_3] : memref<9x30xf32, #tpu.memory_space<vmem>>, vector<1x30xf32>
    %3 = vector.extract_strided_slice %1 {offsets = [0, 0, 0], sizes = [2, 14, 30], strides = [1, 1, 1]} : vector<2x16x32xf32> to vector<2x14x30xf32>
    %4 = vector.shape_cast %2 : vector<1x30xf32> to vector<1x1x30xf32>
    %5 = vector.broadcast %4 : vector<1x1x30xf32> to vector<2x14x30xf32>
    %6 = arith.mulf %5, %3 : vector<2x14x30xf32>
    %c1 = arith.constant 1 : index
    %c0_4 = arith.constant 0 : index
    %7 = vector.load %arg2[%c1, %c0_4] : memref<9x30xf32, #tpu.memory_space<vmem>>, vector<1x30xf32>
    %8 = vector.extract_strided_slice %1 {offsets = [0, 0, 1], sizes = [2, 14, 30], strides = [1, 1, 1]} : vector<2x16x32xf32> to vector<2x14x30xf32>
    %9 = vector.shape_cast %7 : vector<1x30xf32> to vector<1x1x30xf32>
    %10 = vector.broadcast %9 : vector<1x1x30xf32> to vector<2x14x30xf32>
    %11 = arith.mulf %10, %8 : vector<2x14x30xf32>
    %12 = arith.addf %6, %11 : vector<2x14x30xf32>
    %c2 = arith.constant 2 : index
    %c0_5 = arith.constant 0 : index
    %13 = vector.load %arg2[%c2, %c0_5] : memref<9x30xf32, #tpu.memory_space<vmem>>, vector<1x30xf32>
    %14 = vector.extract_strided_slice %1 {offsets = [0, 0, 2], sizes = [2, 14, 30], strides = [1, 1, 1]} : vector<2x16x32xf32> to vector<2x14x30xf32>
    %15 = vector.shape_cast %13 : vector<1x30xf32> to vector<1x1x30xf32>
    %16 = vector.broadcast %15 : vector<1x1x30xf32> to vector<2x14x30xf32>
    %17 = arith.mulf %16, %14 : vector<2x14x30xf32>
    %18 = arith.addf %12, %17 : vector<2x14x30xf32>
    %c3 = arith.constant 3 : index
    %c0_6 = arith.constant 0 : index
    %19 = vector.load %arg2[%c3, %c0_6] : memref<9x30xf32, #tpu.memory_space<vmem>>, vector<1x30xf32>
    %20 = vector.extract_strided_slice %1 {offsets = [0, 1, 0], sizes = [2, 14, 30], strides = [1, 1, 1]} : vector<2x16x32xf32> to vector<2x14x30xf32>
    %21 = vector.shape_cast %19 : vector<1x30xf32> to vector<1x1x30xf32>
    %22 = vector.broadcast %21 : vector<1x1x30xf32> to vector<2x14x30xf32>
    %23 = arith.mulf %22, %20 : vector<2x14x30xf32>
    %24 = arith.addf %18, %23 : vector<2x14x30xf32>
    %c4 = arith.constant 4 : index
    %c0_7 = arith.constant 0 : index
    %25 = vector.load %arg2[%c4, %c0_7] : memref<9x30xf32, #tpu.memory_space<vmem>>, vector<1x30xf32>
    %26 = vector.extract_strided_slice %1 {offsets = [0, 1, 1], sizes = [2, 14, 30], strides = [1, 1, 1]} : vector<2x16x32xf32> to vector<2x14x30xf32>
    %27 = vector.shape_cast %25 : vector<1x30xf32> to vector<1x1x30xf32>
    %28 = vector.broadcast %27 : vector<1x1x30xf32> to vector<2x14x30xf32>
    %29 = arith.mulf %28, %26 : vector<2x14x30xf32>
    %30 = arith.addf %24, %29 : vector<2x14x30xf32>
    %c5 = arith.constant 5 : index
    %c0_8 = arith.constant 0 : index
    %31 = vector.load %arg2[%c5, %c0_8] : memref<9x30xf32, #tpu.memory_space<vmem>>, vector<1x30xf32>
    %32 = vector.extract_strided_slice %1 {offsets = [0, 1, 2], sizes = [2, 14, 30], strides = [1, 1, 1]} : vector<2x16x32xf32> to vector<2x14x30xf32>
    %33 = vector.shape_cast %31 : vector<1x30xf32> to vector<1x1x30xf32>
    %34 = vector.broadcast %33 : vector<1x1x30xf32> to vector<2x14x30xf32>
    %35 = arith.mulf %34, %32 : vector<2x14x30xf32>
    %36 = arith.addf %30, %35 : vector<2x14x30xf32>
    %c6 = arith.constant 6 : index
    %c0_9 = arith.constant 0 : index
    %37 = vector.load %arg2[%c6, %c0_9] : memref<9x30xf32, #tpu.memory_space<vmem>>, vector<1x30xf32>
    %38 = vector.extract_strided_slice %1 {offsets = [0, 2, 0], sizes = [2, 14, 30], strides = [1, 1, 1]} : vector<2x16x32xf32> to vector<2x14x30xf32>
    %39 = vector.shape_cast %37 : vector<1x30xf32> to vector<1x1x30xf32>
    %40 = vector.broadcast %39 : vector<1x1x30xf32> to vector<2x14x30xf32>
    %41 = arith.mulf %40, %38 : vector<2x14x30xf32>
    %42 = arith.addf %36, %41 : vector<2x14x30xf32>
    %c7 = arith.constant 7 : index
    %c0_10 = arith.constant 0 : index
    %43 = vector.load %arg2[%c7, %c0_10] : memref<9x30xf32, #tpu.memory_space<vmem>>, vector<1x30xf32>
    %44 = vector.extract_strided_slice %1 {offsets = [0, 2, 1], sizes = [2, 14, 30], strides = [1, 1, 1]} : vector<2x16x32xf32> to vector<2x14x30xf32>
    %45 = vector.shape_cast %43 : vector<1x30xf32> to vector<1x1x30xf32>
    %46 = vector.broadcast %45 : vector<1x1x30xf32> to vector<2x14x30xf32>
    %47 = arith.mulf %46, %44 : vector<2x14x30xf32>
    %48 = arith.addf %42, %47 : vector<2x14x30xf32>
    %c8 = arith.constant 8 : index
    %c0_11 = arith.constant 0 : index
    %49 = vector.load %arg2[%c8, %c0_11] : memref<9x30xf32, #tpu.memory_space<vmem>>, vector<1x30xf32>
    %50 = vector.extract_strided_slice %1 {offsets = [0, 2, 2], sizes = [2, 14, 30], strides = [1, 1, 1]} : vector<2x16x32xf32> to vector<2x14x30xf32>
    %51 = vector.shape_cast %49 : vector<1x30xf32> to vector<1x1x30xf32>
    %52 = vector.broadcast %51 : vector<1x1x30xf32> to vector<2x14x30xf32>
    %53 = arith.mulf %52, %50 : vector<2x14x30xf32>
    %54 = arith.addf %48, %53 : vector<2x14x30xf32>
    %c0_12 = arith.constant 0 : index
    %c0_13 = arith.constant 0 : index
    %55 = vector.load %arg3[%c0_12, %c0_13] : memref<1x30xf32, #tpu.memory_space<vmem>>, vector<1x30xf32>
    %56 = vector.shape_cast %55 : vector<1x30xf32> to vector<1x1x30xf32>
    %57 = vector.broadcast %56 : vector<1x1x30xf32> to vector<2x14x30xf32>
    %58 = arith.addf %54, %57 : vector<2x14x30xf32>
    %cst = arith.constant 0.000000e+00 : f32
    %59 = vector.broadcast %cst : f32 to vector<2x14x30xf32>
    %60 = arith.cmpf ogt, %58, %59 : vector<2x14x30xf32>
    %cst_14 = arith.constant 0.00999999977 : f32
    %61 = vector.broadcast %cst_14 : f32 to vector<2x14x30xf32>
    %62 = arith.mulf %61, %58 : vector<2x14x30xf32>
    %63 = arith.select %60, %58, %62 : vector<2x14x30xi1>, vector<2x14x30xf32>
    %64 = vector.extract_strided_slice %63 {offsets = [0, 0, 0], sizes = [2, 14, 14], strides = [1, 1, 1]} : vector<2x14x30xf32> to vector<2x14x14xf32>
    %65 = vector.extract_strided_slice %63 {offsets = [0, 0, 16], sizes = [2, 14, 14], strides = [1, 1, 1]} : vector<2x14x30xf32> to vector<2x14x14xf32>
    %66 = tpu.concatenate %64, %64, %64, %64 in 2 : vector<2x14x14xf32>, vector<2x14x14xf32>, vector<2x14x14xf32>, vector<2x14x14xf32> -> vector<2x14x56xf32>
    %c0_15 = arith.constant 0 : index
    %c0_16 = arith.constant 0 : index
    %67 = vector.load %arg4[%c0_15, %c0_16] : memref<18x54xf32, #tpu.memory_space<vmem>>, vector<1x54xf32>
    %68 = vector.extract_strided_slice %66 {offsets = [0, 0, 0], sizes = [2, 12, 54], strides = [1, 1, 1]} : vector<2x14x56xf32> to vector<2x12x54xf32>
    %69 = vector.shape_cast %67 : vector<1x54xf32> to vector<1x1x54xf32>
    %70 = vector.broadcast %69 : vector<1x1x54xf32> to vector<2x12x54xf32>
    %71 = arith.mulf %70, %68 : vector<2x12x54xf32>
    %c1_17 = arith.constant 1 : index
    %c0_18 = arith.constant 0 : index
    %72 = vector.load %arg4[%c1_17, %c0_18] : memref<18x54xf32, #tpu.memory_space<vmem>>, vector<1x54xf32>
    %73 = vector.extract_strided_slice %66 {offsets = [0, 0, 1], sizes = [2, 12, 54], strides = [1, 1, 1]} : vector<2x14x56xf32> to vector<2x12x54xf32>
    %74 = vector.shape_cast %72 : vector<1x54xf32> to vector<1x1x54xf32>
    %75 = vector.broadcast %74 : vector<1x1x54xf32> to vector<2x12x54xf32>
    %76 = arith.mulf %75, %73 : vector<2x12x54xf32>
    %77 = arith.addf %71, %76 : vector<2x12x54xf32>
    %c2_19 = arith.constant 2 : index
    %c0_20 = arith.constant 0 : index
    %78 = vector.load %arg4[%c2_19, %c0_20] : memref<18x54xf32, #tpu.memory_space<vmem>>, vector<1x54xf32>
    %79 = vector.extract_strided_slice %66 {offsets = [0, 0, 2], sizes = [2, 12, 54], strides = [1, 1, 1]} : vector<2x14x56xf32> to vector<2x12x54xf32>
    %80 = vector.shape_cast %78 : vector<1x54xf32> to vector<1x1x54xf32>
    %81 = vector.broadcast %80 : vector<1x1x54xf32> to vector<2x12x54xf32>
    %82 = arith.mulf %81, %79 : vector<2x12x54xf32>
    %83 = arith.addf %77, %82 : vector<2x12x54xf32>
    %c3_21 = arith.constant 3 : index
    %c0_22 = arith.constant 0 : index
    %84 = vector.load %arg4[%c3_21, %c0_22] : memref<18x54xf32, #tpu.memory_space<vmem>>, vector<1x54xf32>
    %85 = vector.extract_strided_slice %66 {offsets = [0, 1, 0], sizes = [2, 12, 54], strides = [1, 1, 1]} : vector<2x14x56xf32> to vector<2x12x54xf32>
    %86 = vector.shape_cast %84 : vector<1x54xf32> to vector<1x1x54xf32>
    %87 = vector.broadcast %86 : vector<1x1x54xf32> to vector<2x12x54xf32>
    %88 = arith.mulf %87, %85 : vector<2x12x54xf32>
    %89 = arith.addf %83, %88 : vector<2x12x54xf32>
    %c4_23 = arith.constant 4 : index
    %c0_24 = arith.constant 0 : index
    %90 = vector.load %arg4[%c4_23, %c0_24] : memref<18x54xf32, #tpu.memory_space<vmem>>, vector<1x54xf32>
    %91 = vector.extract_strided_slice %66 {offsets = [0, 1, 1], sizes = [2, 12, 54], strides = [1, 1, 1]} : vector<2x14x56xf32> to vector<2x12x54xf32>
    %92 = vector.shape_cast %90 : vector<1x54xf32> to vector<1x1x54xf32>
    %93 = vector.broadcast %92 : vector<1x1x54xf32> to vector<2x12x54xf32>
    %94 = arith.mulf %93, %91 : vector<2x12x54xf32>
    %95 = arith.addf %89, %94 : vector<2x12x54xf32>
    %c5_25 = arith.constant 5 : index
    %c0_26 = arith.constant 0 : index
    %96 = vector.load %arg4[%c5_25, %c0_26] : memref<18x54xf32, #tpu.memory_space<vmem>>, vector<1x54xf32>
    %97 = vector.extract_strided_slice %66 {offsets = [0, 1, 2], sizes = [2, 12, 54], strides = [1, 1, 1]} : vector<2x14x56xf32> to vector<2x12x54xf32>
    %98 = vector.shape_cast %96 : vector<1x54xf32> to vector<1x1x54xf32>
    %99 = vector.broadcast %98 : vector<1x1x54xf32> to vector<2x12x54xf32>
    %100 = arith.mulf %99, %97 : vector<2x12x54xf32>
    %101 = arith.addf %95, %100 : vector<2x12x54xf32>
    %c6_27 = arith.constant 6 : index
    %c0_28 = arith.constant 0 : index
    %102 = vector.load %arg4[%c6_27, %c0_28] : memref<18x54xf32, #tpu.memory_space<vmem>>, vector<1x54xf32>
    %103 = vector.extract_strided_slice %66 {offsets = [0, 2, 0], sizes = [2, 12, 54], strides = [1, 1, 1]} : vector<2x14x56xf32> to vector<2x12x54xf32>
    %104 = vector.shape_cast %102 : vector<1x54xf32> to vector<1x1x54xf32>
    %105 = vector.broadcast %104 : vector<1x1x54xf32> to vector<2x12x54xf32>
    %106 = arith.mulf %105, %103 : vector<2x12x54xf32>
    %107 = arith.addf %101, %106 : vector<2x12x54xf32>
    %c7_29 = arith.constant 7 : index
    %c0_30 = arith.constant 0 : index
    %108 = vector.load %arg4[%c7_29, %c0_30] : memref<18x54xf32, #tpu.memory_space<vmem>>, vector<1x54xf32>
    %109 = vector.extract_strided_slice %66 {offsets = [0, 2, 1], sizes = [2, 12, 54], strides = [1, 1, 1]} : vector<2x14x56xf32> to vector<2x12x54xf32>
    %110 = vector.shape_cast %108 : vector<1x54xf32> to vector<1x1x54xf32>
    %111 = vector.broadcast %110 : vector<1x1x54xf32> to vector<2x12x54xf32>
    %112 = arith.mulf %111, %109 : vector<2x12x54xf32>
    %113 = arith.addf %107, %112 : vector<2x12x54xf32>
    %c8_31 = arith.constant 8 : index
    %c0_32 = arith.constant 0 : index
    %114 = vector.load %arg4[%c8_31, %c0_32] : memref<18x54xf32, #tpu.memory_space<vmem>>, vector<1x54xf32>
    %115 = vector.extract_strided_slice %66 {offsets = [0, 2, 2], sizes = [2, 12, 54], strides = [1, 1, 1]} : vector<2x14x56xf32> to vector<2x12x54xf32>
    %116 = vector.shape_cast %114 : vector<1x54xf32> to vector<1x1x54xf32>
    %117 = vector.broadcast %116 : vector<1x1x54xf32> to vector<2x12x54xf32>
    %118 = arith.mulf %117, %115 : vector<2x12x54xf32>
    %119 = arith.addf %113, %118 : vector<2x12x54xf32>
    %120 = tpu.concatenate %65, %65, %65, %65 in 2 : vector<2x14x14xf32>, vector<2x14x14xf32>, vector<2x14x14xf32>, vector<2x14x14xf32> -> vector<2x14x56xf32>
    %c9 = arith.constant 9 : index
    %c0_33 = arith.constant 0 : index
    %121 = vector.load %arg4[%c9, %c0_33] : memref<18x54xf32, #tpu.memory_space<vmem>>, vector<1x54xf32>
    %122 = vector.extract_strided_slice %120 {offsets = [0, 0, 0], sizes = [2, 12, 54], strides = [1, 1, 1]} : vector<2x14x56xf32> to vector<2x12x54xf32>
    %123 = vector.shape_cast %121 : vector<1x54xf32> to vector<1x1x54xf32>
    %124 = vector.broadcast %123 : vector<1x1x54xf32> to vector<2x12x54xf32>
    %125 = arith.mulf %124, %122 : vector<2x12x54xf32>
    %126 = arith.addf %119, %125 : vector<2x12x54xf32>
    %c10 = arith.constant 10 : index
    %c0_34 = arith.constant 0 : index
    %127 = vector.load %arg4[%c10, %c0_34] : memref<18x54xf32, #tpu.memory_space<vmem>>, vector<1x54xf32>
    %128 = vector.extract_strided_slice %120 {offsets = [0, 0, 1], sizes = [2, 12, 54], strides = [1, 1, 1]} : vector<2x14x56xf32> to vector<2x12x54xf32>
    %129 = vector.shape_cast %127 : vector<1x54xf32> to vector<1x1x54xf32>
    %130 = vector.broadcast %129 : vector<1x1x54xf32> to vector<2x12x54xf32>
    %131 = arith.mulf %130, %128 : vector<2x12x54xf32>
    %132 = arith.addf %126, %131 : vector<2x12x54xf32>
    %c11 = arith.constant 11 : index
    %c0_35 = arith.constant 0 : index
    %133 = vector.load %arg4[%c11, %c0_35] : memref<18x54xf32, #tpu.memory_space<vmem>>, vector<1x54xf32>
    %134 = vector.extract_strided_slice %120 {offsets = [0, 0, 2], sizes = [2, 12, 54], strides = [1, 1, 1]} : vector<2x14x56xf32> to vector<2x12x54xf32>
    %135 = vector.shape_cast %133 : vector<1x54xf32> to vector<1x1x54xf32>
    %136 = vector.broadcast %135 : vector<1x1x54xf32> to vector<2x12x54xf32>
    %137 = arith.mulf %136, %134 : vector<2x12x54xf32>
    %138 = arith.addf %132, %137 : vector<2x12x54xf32>
    %c12 = arith.constant 12 : index
    %c0_36 = arith.constant 0 : index
    %139 = vector.load %arg4[%c12, %c0_36] : memref<18x54xf32, #tpu.memory_space<vmem>>, vector<1x54xf32>
    %140 = vector.extract_strided_slice %120 {offsets = [0, 1, 0], sizes = [2, 12, 54], strides = [1, 1, 1]} : vector<2x14x56xf32> to vector<2x12x54xf32>
    %141 = vector.shape_cast %139 : vector<1x54xf32> to vector<1x1x54xf32>
    %142 = vector.broadcast %141 : vector<1x1x54xf32> to vector<2x12x54xf32>
    %143 = arith.mulf %142, %140 : vector<2x12x54xf32>
    %144 = arith.addf %138, %143 : vector<2x12x54xf32>
    %c13 = arith.constant 13 : index
    %c0_37 = arith.constant 0 : index
    %145 = vector.load %arg4[%c13, %c0_37] : memref<18x54xf32, #tpu.memory_space<vmem>>, vector<1x54xf32>
    %146 = vector.extract_strided_slice %120 {offsets = [0, 1, 1], sizes = [2, 12, 54], strides = [1, 1, 1]} : vector<2x14x56xf32> to vector<2x12x54xf32>
    %147 = vector.shape_cast %145 : vector<1x54xf32> to vector<1x1x54xf32>
    %148 = vector.broadcast %147 : vector<1x1x54xf32> to vector<2x12x54xf32>
    %149 = arith.mulf %148, %146 : vector<2x12x54xf32>
    %150 = arith.addf %144, %149 : vector<2x12x54xf32>
    %c14 = arith.constant 14 : index
    %c0_38 = arith.constant 0 : index
    %151 = vector.load %arg4[%c14, %c0_38] : memref<18x54xf32, #tpu.memory_space<vmem>>, vector<1x54xf32>
    %152 = vector.extract_strided_slice %120 {offsets = [0, 1, 2], sizes = [2, 12, 54], strides = [1, 1, 1]} : vector<2x14x56xf32> to vector<2x12x54xf32>
    %153 = vector.shape_cast %151 : vector<1x54xf32> to vector<1x1x54xf32>
    %154 = vector.broadcast %153 : vector<1x1x54xf32> to vector<2x12x54xf32>
    %155 = arith.mulf %154, %152 : vector<2x12x54xf32>
    %156 = arith.addf %150, %155 : vector<2x12x54xf32>
    %c15 = arith.constant 15 : index
    %c0_39 = arith.constant 0 : index
    %157 = vector.load %arg4[%c15, %c0_39] : memref<18x54xf32, #tpu.memory_space<vmem>>, vector<1x54xf32>
    %158 = vector.extract_strided_slice %120 {offsets = [0, 2, 0], sizes = [2, 12, 54], strides = [1, 1, 1]} : vector<2x14x56xf32> to vector<2x12x54xf32>
    %159 = vector.shape_cast %157 : vector<1x54xf32> to vector<1x1x54xf32>
    %160 = vector.broadcast %159 : vector<1x1x54xf32> to vector<2x12x54xf32>
    %161 = arith.mulf %160, %158 : vector<2x12x54xf32>
    %162 = arith.addf %156, %161 : vector<2x12x54xf32>
    %c16 = arith.constant 16 : index
    %c0_40 = arith.constant 0 : index
    %163 = vector.load %arg4[%c16, %c0_40] : memref<18x54xf32, #tpu.memory_space<vmem>>, vector<1x54xf32>
    %164 = vector.extract_strided_slice %120 {offsets = [0, 2, 1], sizes = [2, 12, 54], strides = [1, 1, 1]} : vector<2x14x56xf32> to vector<2x12x54xf32>
    %165 = vector.shape_cast %163 : vector<1x54xf32> to vector<1x1x54xf32>
    %166 = vector.broadcast %165 : vector<1x1x54xf32> to vector<2x12x54xf32>
    %167 = arith.mulf %166, %164 : vector<2x12x54xf32>
    %168 = arith.addf %162, %167 : vector<2x12x54xf32>
    %c17 = arith.constant 17 : index
    %c0_41 = arith.constant 0 : index
    %169 = vector.load %arg4[%c17, %c0_41] : memref<18x54xf32, #tpu.memory_space<vmem>>, vector<1x54xf32>
    %170 = vector.extract_strided_slice %120 {offsets = [0, 2, 2], sizes = [2, 12, 54], strides = [1, 1, 1]} : vector<2x14x56xf32> to vector<2x12x54xf32>
    %171 = vector.shape_cast %169 : vector<1x54xf32> to vector<1x1x54xf32>
    %172 = vector.broadcast %171 : vector<1x1x54xf32> to vector<2x12x54xf32>
    %173 = arith.mulf %172, %170 : vector<2x12x54xf32>
    %174 = arith.addf %168, %173 : vector<2x12x54xf32>
    %c0_42 = arith.constant 0 : index
    %c0_43 = arith.constant 0 : index
    %175 = vector.load %arg5[%c0_42, %c0_43] : memref<1x54xf32, #tpu.memory_space<vmem>>, vector<1x54xf32>
    %176 = vector.shape_cast %175 : vector<1x54xf32> to vector<1x1x54xf32>
    %177 = vector.broadcast %176 : vector<1x1x54xf32> to vector<2x12x54xf32>
    %178 = arith.addf %174, %177 : vector<2x12x54xf32>
    %cst_44 = arith.constant 0.000000e+00 : f32
    %179 = vector.broadcast %cst_44 : f32 to vector<2x12x54xf32>
    %180 = arith.cmpf ogt, %178, %179 : vector<2x12x54xf32>
    %cst_45 = arith.constant 0.00999999977 : f32
    %181 = vector.broadcast %cst_45 : f32 to vector<2x12x54xf32>
    %182 = arith.mulf %181, %178 : vector<2x12x54xf32>
    %183 = arith.select %180, %178, %182 : vector<2x12x54xi1>, vector<2x12x54xf32>
    %184 = vector.extract_strided_slice %183 {offsets = [0, 0, 0], sizes = [2, 11, 53], strides = [1, 1, 1]} : vector<2x12x54xf32> to vector<2x11x53xf32>
    %185 = vector.extract_strided_slice %183 {offsets = [0, 0, 1], sizes = [2, 11, 53], strides = [1, 1, 1]} : vector<2x12x54xf32> to vector<2x11x53xf32>
    %186 = arith.maximumf %184, %185 : vector<2x11x53xf32>
    %187 = vector.extract_strided_slice %183 {offsets = [0, 1, 0], sizes = [2, 11, 53], strides = [1, 1, 1]} : vector<2x12x54xf32> to vector<2x11x53xf32>
    %188 = vector.extract_strided_slice %183 {offsets = [0, 1, 1], sizes = [2, 11, 53], strides = [1, 1, 1]} : vector<2x12x54xf32> to vector<2x11x53xf32>
    %189 = arith.maximumf %187, %188 : vector<2x11x53xf32>
    %190 = arith.maximumf %186, %189 : vector<2x11x53xf32>
    %191 = vector.extract_strided_slice %190 {offsets = [0, 0, 0], sizes = [2, 11, 11], strides = [1, 1, 1]} : vector<2x11x53xf32> to vector<2x11x11xf32>
    %192 = vector.extract_strided_slice %190 {offsets = [0, 0, 14], sizes = [2, 11, 11], strides = [1, 1, 1]} : vector<2x11x53xf32> to vector<2x11x11xf32>
    %193 = vector.extract_strided_slice %190 {offsets = [0, 0, 28], sizes = [2, 11, 11], strides = [1, 1, 1]} : vector<2x11x53xf32> to vector<2x11x11xf32>
    %194 = vector.extract_strided_slice %190 {offsets = [0, 0, 42], sizes = [2, 11, 11], strides = [1, 1, 1]} : vector<2x11x53xf32> to vector<2x11x11xf32>
    %195 = tpu.concatenate %191, %191, %191, %191, %191, %191 in 2 : vector<2x11x11xf32>, vector<2x11x11xf32>, vector<2x11x11xf32>, vector<2x11x11xf32>, vector<2x11x11xf32>, vector<2x11x11xf32> -> vector<2x11x66xf32>
    %c0_46 = arith.constant 0 : index
    %c0_47 = arith.constant 0 : index
    %196 = vector.load %arg6[%c0_46, %c0_47] : memref<36x64xf32, #tpu.memory_space<vmem>>, vector<1x64xf32>
    %197 = vector.extract_strided_slice %195 {offsets = [0, 0, 0], sizes = [2, 9, 64], strides = [1, 1, 1]} : vector<2x11x66xf32> to vector<2x9x64xf32>
    %198 = vector.shape_cast %196 : vector<1x64xf32> to vector<1x1x64xf32>
    %199 = vector.broadcast %198 : vector<1x1x64xf32> to vector<2x9x64xf32>
    %200 = arith.mulf %199, %197 : vector<2x9x64xf32>
    %c1_48 = arith.constant 1 : index
    %c0_49 = arith.constant 0 : index
    %201 = vector.load %arg6[%c1_48, %c0_49] : memref<36x64xf32, #tpu.memory_space<vmem>>, vector<1x64xf32>
    %202 = vector.extract_strided_slice %195 {offsets = [0, 0, 1], sizes = [2, 9, 64], strides = [1, 1, 1]} : vector<2x11x66xf32> to vector<2x9x64xf32>
    %203 = vector.shape_cast %201 : vector<1x64xf32> to vector<1x1x64xf32>
    %204 = vector.broadcast %203 : vector<1x1x64xf32> to vector<2x9x64xf32>
    %205 = arith.mulf %204, %202 : vector<2x9x64xf32>
    %206 = arith.addf %200, %205 : vector<2x9x64xf32>
    %c2_50 = arith.constant 2 : index
    %c0_51 = arith.constant 0 : index
    %207 = vector.load %arg6[%c2_50, %c0_51] : memref<36x64xf32, #tpu.memory_space<vmem>>, vector<1x64xf32>
    %208 = vector.extract_strided_slice %195 {offsets = [0, 0, 2], sizes = [2, 9, 64], strides = [1, 1, 1]} : vector<2x11x66xf32> to vector<2x9x64xf32>
    %209 = vector.shape_cast %207 : vector<1x64xf32> to vector<1x1x64xf32>
    %210 = vector.broadcast %209 : vector<1x1x64xf32> to vector<2x9x64xf32>
    %211 = arith.mulf %210, %208 : vector<2x9x64xf32>
    %212 = arith.addf %206, %211 : vector<2x9x64xf32>
    %c3_52 = arith.constant 3 : index
    %c0_53 = arith.constant 0 : index
    %213 = vector.load %arg6[%c3_52, %c0_53] : memref<36x64xf32, #tpu.memory_space<vmem>>, vector<1x64xf32>
    %214 = vector.extract_strided_slice %195 {offsets = [0, 1, 0], sizes = [2, 9, 64], strides = [1, 1, 1]} : vector<2x11x66xf32> to vector<2x9x64xf32>
    %215 = vector.shape_cast %213 : vector<1x64xf32> to vector<1x1x64xf32>
    %216 = vector.broadcast %215 : vector<1x1x64xf32> to vector<2x9x64xf32>
    %217 = arith.mulf %216, %214 : vector<2x9x64xf32>
    %218 = arith.addf %212, %217 : vector<2x9x64xf32>
    %c4_54 = arith.constant 4 : index
    %c0_55 = arith.constant 0 : index
    %219 = vector.load %arg6[%c4_54, %c0_55] : memref<36x64xf32, #tpu.memory_space<vmem>>, vector<1x64xf32>
    %220 = vector.extract_strided_slice %195 {offsets = [0, 1, 1], sizes = [2, 9, 64], strides = [1, 1, 1]} : vector<2x11x66xf32> to vector<2x9x64xf32>
    %221 = vector.shape_cast %219 : vector<1x64xf32> to vector<1x1x64xf32>
    %222 = vector.broadcast %221 : vector<1x1x64xf32> to vector<2x9x64xf32>
    %223 = arith.mulf %222, %220 : vector<2x9x64xf32>
    %224 = arith.addf %218, %223 : vector<2x9x64xf32>
    %c5_56 = arith.constant 5 : index
    %c0_57 = arith.constant 0 : index
    %225 = vector.load %arg6[%c5_56, %c0_57] : memref<36x64xf32, #tpu.memory_space<vmem>>, vector<1x64xf32>
    %226 = vector.extract_strided_slice %195 {offsets = [0, 1, 2], sizes = [2, 9, 64], strides = [1, 1, 1]} : vector<2x11x66xf32> to vector<2x9x64xf32>
    %227 = vector.shape_cast %225 : vector<1x64xf32> to vector<1x1x64xf32>
    %228 = vector.broadcast %227 : vector<1x1x64xf32> to vector<2x9x64xf32>
    %229 = arith.mulf %228, %226 : vector<2x9x64xf32>
    %230 = arith.addf %224, %229 : vector<2x9x64xf32>
    %c6_58 = arith.constant 6 : index
    %c0_59 = arith.constant 0 : index
    %231 = vector.load %arg6[%c6_58, %c0_59] : memref<36x64xf32, #tpu.memory_space<vmem>>, vector<1x64xf32>
    %232 = vector.extract_strided_slice %195 {offsets = [0, 2, 0], sizes = [2, 9, 64], strides = [1, 1, 1]} : vector<2x11x66xf32> to vector<2x9x64xf32>
    %233 = vector.shape_cast %231 : vector<1x64xf32> to vector<1x1x64xf32>
    %234 = vector.broadcast %233 : vector<1x1x64xf32> to vector<2x9x64xf32>
    %235 = arith.mulf %234, %232 : vector<2x9x64xf32>
    %236 = arith.addf %230, %235 : vector<2x9x64xf32>
    %c7_60 = arith.constant 7 : index
    %c0_61 = arith.constant 0 : index
    %237 = vector.load %arg6[%c7_60, %c0_61] : memref<36x64xf32, #tpu.memory_space<vmem>>, vector<1x64xf32>
    %238 = vector.extract_strided_slice %195 {offsets = [0, 2, 1], sizes = [2, 9, 64], strides = [1, 1, 1]} : vector<2x11x66xf32> to vector<2x9x64xf32>
    %239 = vector.shape_cast %237 : vector<1x64xf32> to vector<1x1x64xf32>
    %240 = vector.broadcast %239 : vector<1x1x64xf32> to vector<2x9x64xf32>
    %241 = arith.mulf %240, %238 : vector<2x9x64xf32>
    %242 = arith.addf %236, %241 : vector<2x9x64xf32>
    %c8_62 = arith.constant 8 : index
    %c0_63 = arith.constant 0 : index
    %243 = vector.load %arg6[%c8_62, %c0_63] : memref<36x64xf32, #tpu.memory_space<vmem>>, vector<1x64xf32>
    %244 = vector.extract_strided_slice %195 {offsets = [0, 2, 2], sizes = [2, 9, 64], strides = [1, 1, 1]} : vector<2x11x66xf32> to vector<2x9x64xf32>
    %245 = vector.shape_cast %243 : vector<1x64xf32> to vector<1x1x64xf32>
    %246 = vector.broadcast %245 : vector<1x1x64xf32> to vector<2x9x64xf32>
    %247 = arith.mulf %246, %244 : vector<2x9x64xf32>
    %248 = arith.addf %242, %247 : vector<2x9x64xf32>
    %249 = tpu.concatenate %192, %192, %192, %192, %192, %192 in 2 : vector<2x11x11xf32>, vector<2x11x11xf32>, vector<2x11x11xf32>, vector<2x11x11xf32>, vector<2x11x11xf32>, vector<2x11x11xf32> -> vector<2x11x66xf32>
    %c9_64 = arith.constant 9 : index
    %c0_65 = arith.constant 0 : index
    %250 = vector.load %arg6[%c9_64, %c0_65] : memref<36x64xf32, #tpu.memory_space<vmem>>, vector<1x64xf32>
    %251 = vector.extract_strided_slice %249 {offsets = [0, 0, 0], sizes = [2, 9, 64], strides = [1, 1, 1]} : vector<2x11x66xf32> to vector<2x9x64xf32>
    %252 = vector.shape_cast %250 : vector<1x64xf32> to vector<1x1x64xf32>
    %253 = vector.broadcast %252 : vector<1x1x64xf32> to vector<2x9x64xf32>
    %254 = arith.mulf %253, %251 : vector<2x9x64xf32>
    %255 = arith.addf %248, %254 : vector<2x9x64xf32>
    %c10_66 = arith.constant 10 : index
    %c0_67 = arith.constant 0 : index
    %256 = vector.load %arg6[%c10_66, %c0_67] : memref<36x64xf32, #tpu.memory_space<vmem>>, vector<1x64xf32>
    %257 = vector.extract_strided_slice %249 {offsets = [0, 0, 1], sizes = [2, 9, 64], strides = [1, 1, 1]} : vector<2x11x66xf32> to vector<2x9x64xf32>
    %258 = vector.shape_cast %256 : vector<1x64xf32> to vector<1x1x64xf32>
    %259 = vector.broadcast %258 : vector<1x1x64xf32> to vector<2x9x64xf32>
    %260 = arith.mulf %259, %257 : vector<2x9x64xf32>
    %261 = arith.addf %255, %260 : vector<2x9x64xf32>
    %c11_68 = arith.constant 11 : index
    %c0_69 = arith.constant 0 : index
    %262 = vector.load %arg6[%c11_68, %c0_69] : memref<36x64xf32, #tpu.memory_space<vmem>>, vector<1x64xf32>
    %263 = vector.extract_strided_slice %249 {offsets = [0, 0, 2], sizes = [2, 9, 64], strides = [1, 1, 1]} : vector<2x11x66xf32> to vector<2x9x64xf32>
    %264 = vector.shape_cast %262 : vector<1x64xf32> to vector<1x1x64xf32>
    %265 = vector.broadcast %264 : vector<1x1x64xf32> to vector<2x9x64xf32>
    %266 = arith.mulf %265, %263 : vector<2x9x64xf32>
    %267 = arith.addf %261, %266 : vector<2x9x64xf32>
    %c12_70 = arith.constant 12 : index
    %c0_71 = arith.constant 0 : index
    %268 = vector.load %arg6[%c12_70, %c0_71] : memref<36x64xf32, #tpu.memory_space<vmem>>, vector<1x64xf32>
    %269 = vector.extract_strided_slice %249 {offsets = [0, 1, 0], sizes = [2, 9, 64], strides = [1, 1, 1]} : vector<2x11x66xf32> to vector<2x9x64xf32>
    %270 = vector.shape_cast %268 : vector<1x64xf32> to vector<1x1x64xf32>
    %271 = vector.broadcast %270 : vector<1x1x64xf32> to vector<2x9x64xf32>
    %272 = arith.mulf %271, %269 : vector<2x9x64xf32>
    %273 = arith.addf %267, %272 : vector<2x9x64xf32>
    %c13_72 = arith.constant 13 : index
    %c0_73 = arith.constant 0 : index
    %274 = vector.load %arg6[%c13_72, %c0_73] : memref<36x64xf32, #tpu.memory_space<vmem>>, vector<1x64xf32>
    %275 = vector.extract_strided_slice %249 {offsets = [0, 1, 1], sizes = [2, 9, 64], strides = [1, 1, 1]} : vector<2x11x66xf32> to vector<2x9x64xf32>
    %276 = vector.shape_cast %274 : vector<1x64xf32> to vector<1x1x64xf32>
    %277 = vector.broadcast %276 : vector<1x1x64xf32> to vector<2x9x64xf32>
    %278 = arith.mulf %277, %275 : vector<2x9x64xf32>
    %279 = arith.addf %273, %278 : vector<2x9x64xf32>
    %c14_74 = arith.constant 14 : index
    %c0_75 = arith.constant 0 : index
    %280 = vector.load %arg6[%c14_74, %c0_75] : memref<36x64xf32, #tpu.memory_space<vmem>>, vector<1x64xf32>
    %281 = vector.extract_strided_slice %249 {offsets = [0, 1, 2], sizes = [2, 9, 64], strides = [1, 1, 1]} : vector<2x11x66xf32> to vector<2x9x64xf32>
    %282 = vector.shape_cast %280 : vector<1x64xf32> to vector<1x1x64xf32>
    %283 = vector.broadcast %282 : vector<1x1x64xf32> to vector<2x9x64xf32>
    %284 = arith.mulf %283, %281 : vector<2x9x64xf32>
    %285 = arith.addf %279, %284 : vector<2x9x64xf32>
    %c15_76 = arith.constant 15 : index
    %c0_77 = arith.constant 0 : index
    %286 = vector.load %arg6[%c15_76, %c0_77] : memref<36x64xf32, #tpu.memory_space<vmem>>, vector<1x64xf32>
    %287 = vector.extract_strided_slice %249 {offsets = [0, 2, 0], sizes = [2, 9, 64], strides = [1, 1, 1]} : vector<2x11x66xf32> to vector<2x9x64xf32>
    %288 = vector.shape_cast %286 : vector<1x64xf32> to vector<1x1x64xf32>
    %289 = vector.broadcast %288 : vector<1x1x64xf32> to vector<2x9x64xf32>
    %290 = arith.mulf %289, %287 : vector<2x9x64xf32>
    %291 = arith.addf %285, %290 : vector<2x9x64xf32>
    %c16_78 = arith.constant 16 : index
    %c0_79 = arith.constant 0 : index
    %292 = vector.load %arg6[%c16_78, %c0_79] : memref<36x64xf32, #tpu.memory_space<vmem>>, vector<1x64xf32>
    %293 = vector.extract_strided_slice %249 {offsets = [0, 2, 1], sizes = [2, 9, 64], strides = [1, 1, 1]} : vector<2x11x66xf32> to vector<2x9x64xf32>
    %294 = vector.shape_cast %292 : vector<1x64xf32> to vector<1x1x64xf32>
    %295 = vector.broadcast %294 : vector<1x1x64xf32> to vector<2x9x64xf32>
    %296 = arith.mulf %295, %293 : vector<2x9x64xf32>
    %297 = arith.addf %291, %296 : vector<2x9x64xf32>
    %c17_80 = arith.constant 17 : index
    %c0_81 = arith.constant 0 : index
    %298 = vector.load %arg6[%c17_80, %c0_81] : memref<36x64xf32, #tpu.memory_space<vmem>>, vector<1x64xf32>
    %299 = vector.extract_strided_slice %249 {offsets = [0, 2, 2], sizes = [2, 9, 64], strides = [1, 1, 1]} : vector<2x11x66xf32> to vector<2x9x64xf32>
    %300 = vector.shape_cast %298 : vector<1x64xf32> to vector<1x1x64xf32>
    %301 = vector.broadcast %300 : vector<1x1x64xf32> to vector<2x9x64xf32>
    %302 = arith.mulf %301, %299 : vector<2x9x64xf32>
    %303 = arith.addf %297, %302 : vector<2x9x64xf32>
    %304 = tpu.concatenate %193, %193, %193, %193, %193, %193 in 2 : vector<2x11x11xf32>, vector<2x11x11xf32>, vector<2x11x11xf32>, vector<2x11x11xf32>, vector<2x11x11xf32>, vector<2x11x11xf32> -> vector<2x11x66xf32>
    %c18 = arith.constant 18 : index
    %c0_82 = arith.constant 0 : index
    %305 = vector.load %arg6[%c18, %c0_82] : memref<36x64xf32, #tpu.memory_space<vmem>>, vector<1x64xf32>
    %306 = vector.extract_strided_slice %304 {offsets = [0, 0, 0], sizes = [2, 9, 64], strides = [1, 1, 1]} : vector<2x11x66xf32> to vector<2x9x64xf32>
    %307 = vector.shape_cast %305 : vector<1x64xf32> to vector<1x1x64xf32>
    %308 = vector.broadcast %307 : vector<1x1x64xf32> to vector<2x9x64xf32>
    %309 = arith.mulf %308, %306 : vector<2x9x64xf32>
    %310 = arith.addf %303, %309 : vector<2x9x64xf32>
    %c19 = arith.constant 19 : index
    %c0_83 = arith.constant 0 : index
    %311 = vector.load %arg6[%c19, %c0_83] : memref<36x64xf32, #tpu.memory_space<vmem>>, vector<1x64xf32>
    %312 = vector.extract_strided_slice %304 {offsets = [0, 0, 1], sizes = [2, 9, 64], strides = [1, 1, 1]} : vector<2x11x66xf32> to vector<2x9x64xf32>
    %313 = vector.shape_cast %311 : vector<1x64xf32> to vector<1x1x64xf32>
    %314 = vector.broadcast %313 : vector<1x1x64xf32> to vector<2x9x64xf32>
    %315 = arith.mulf %314, %312 : vector<2x9x64xf32>
    %316 = arith.addf %310, %315 : vector<2x9x64xf32>
    %c20 = arith.constant 20 : index
    %c0_84 = arith.constant 0 : index
    %317 = vector.load %arg6[%c20, %c0_84] : memref<36x64xf32, #tpu.memory_space<vmem>>, vector<1x64xf32>
    %318 = vector.extract_strided_slice %304 {offsets = [0, 0, 2], sizes = [2, 9, 64], strides = [1, 1, 1]} : vector<2x11x66xf32> to vector<2x9x64xf32>
    %319 = vector.shape_cast %317 : vector<1x64xf32> to vector<1x1x64xf32>
    %320 = vector.broadcast %319 : vector<1x1x64xf32> to vector<2x9x64xf32>
    %321 = arith.mulf %320, %318 : vector<2x9x64xf32>
    %322 = arith.addf %316, %321 : vector<2x9x64xf32>
    %c21 = arith.constant 21 : index
    %c0_85 = arith.constant 0 : index
    %323 = vector.load %arg6[%c21, %c0_85] : memref<36x64xf32, #tpu.memory_space<vmem>>, vector<1x64xf32>
    %324 = vector.extract_strided_slice %304 {offsets = [0, 1, 0], sizes = [2, 9, 64], strides = [1, 1, 1]} : vector<2x11x66xf32> to vector<2x9x64xf32>
    %325 = vector.shape_cast %323 : vector<1x64xf32> to vector<1x1x64xf32>
    %326 = vector.broadcast %325 : vector<1x1x64xf32> to vector<2x9x64xf32>
    %327 = arith.mulf %326, %324 : vector<2x9x64xf32>
    %328 = arith.addf %322, %327 : vector<2x9x64xf32>
    %c22 = arith.constant 22 : index
    %c0_86 = arith.constant 0 : index
    %329 = vector.load %arg6[%c22, %c0_86] : memref<36x64xf32, #tpu.memory_space<vmem>>, vector<1x64xf32>
    %330 = vector.extract_strided_slice %304 {offsets = [0, 1, 1], sizes = [2, 9, 64], strides = [1, 1, 1]} : vector<2x11x66xf32> to vector<2x9x64xf32>
    %331 = vector.shape_cast %329 : vector<1x64xf32> to vector<1x1x64xf32>
    %332 = vector.broadcast %331 : vector<1x1x64xf32> to vector<2x9x64xf32>
    %333 = arith.mulf %332, %330 : vector<2x9x64xf32>
    %334 = arith.addf %328, %333 : vector<2x9x64xf32>
    %c23 = arith.constant 23 : index
    %c0_87 = arith.constant 0 : index
    %335 = vector.load %arg6[%c23, %c0_87] : memref<36x64xf32, #tpu.memory_space<vmem>>, vector<1x64xf32>
    %336 = vector.extract_strided_slice %304 {offsets = [0, 1, 2], sizes = [2, 9, 64], strides = [1, 1, 1]} : vector<2x11x66xf32> to vector<2x9x64xf32>
    %337 = vector.shape_cast %335 : vector<1x64xf32> to vector<1x1x64xf32>
    %338 = vector.broadcast %337 : vector<1x1x64xf32> to vector<2x9x64xf32>
    %339 = arith.mulf %338, %336 : vector<2x9x64xf32>
    %340 = arith.addf %334, %339 : vector<2x9x64xf32>
    %c24 = arith.constant 24 : index
    %c0_88 = arith.constant 0 : index
    %341 = vector.load %arg6[%c24, %c0_88] : memref<36x64xf32, #tpu.memory_space<vmem>>, vector<1x64xf32>
    %342 = vector.extract_strided_slice %304 {offsets = [0, 2, 0], sizes = [2, 9, 64], strides = [1, 1, 1]} : vector<2x11x66xf32> to vector<2x9x64xf32>
    %343 = vector.shape_cast %341 : vector<1x64xf32> to vector<1x1x64xf32>
    %344 = vector.broadcast %343 : vector<1x1x64xf32> to vector<2x9x64xf32>
    %345 = arith.mulf %344, %342 : vector<2x9x64xf32>
    %346 = arith.addf %340, %345 : vector<2x9x64xf32>
    %c25 = arith.constant 25 : index
    %c0_89 = arith.constant 0 : index
    %347 = vector.load %arg6[%c25, %c0_89] : memref<36x64xf32, #tpu.memory_space<vmem>>, vector<1x64xf32>
    %348 = vector.extract_strided_slice %304 {offsets = [0, 2, 1], sizes = [2, 9, 64], strides = [1, 1, 1]} : vector<2x11x66xf32> to vector<2x9x64xf32>
    %349 = vector.shape_cast %347 : vector<1x64xf32> to vector<1x1x64xf32>
    %350 = vector.broadcast %349 : vector<1x1x64xf32> to vector<2x9x64xf32>
    %351 = arith.mulf %350, %348 : vector<2x9x64xf32>
    %352 = arith.addf %346, %351 : vector<2x9x64xf32>
    %c26 = arith.constant 26 : index
    %c0_90 = arith.constant 0 : index
    %353 = vector.load %arg6[%c26, %c0_90] : memref<36x64xf32, #tpu.memory_space<vmem>>, vector<1x64xf32>
    %354 = vector.extract_strided_slice %304 {offsets = [0, 2, 2], sizes = [2, 9, 64], strides = [1, 1, 1]} : vector<2x11x66xf32> to vector<2x9x64xf32>
    %355 = vector.shape_cast %353 : vector<1x64xf32> to vector<1x1x64xf32>
    %356 = vector.broadcast %355 : vector<1x1x64xf32> to vector<2x9x64xf32>
    %357 = arith.mulf %356, %354 : vector<2x9x64xf32>
    %358 = arith.addf %352, %357 : vector<2x9x64xf32>
    %359 = tpu.concatenate %194, %194, %194, %194, %194, %194 in 2 : vector<2x11x11xf32>, vector<2x11x11xf32>, vector<2x11x11xf32>, vector<2x11x11xf32>, vector<2x11x11xf32>, vector<2x11x11xf32> -> vector<2x11x66xf32>
    %c27 = arith.constant 27 : index
    %c0_91 = arith.constant 0 : index
    %360 = vector.load %arg6[%c27, %c0_91] : memref<36x64xf32, #tpu.memory_space<vmem>>, vector<1x64xf32>
    %361 = vector.extract_strided_slice %359 {offsets = [0, 0, 0], sizes = [2, 9, 64], strides = [1, 1, 1]} : vector<2x11x66xf32> to vector<2x9x64xf32>
    %362 = vector.shape_cast %360 : vector<1x64xf32> to vector<1x1x64xf32>
    %363 = vector.broadcast %362 : vector<1x1x64xf32> to vector<2x9x64xf32>
    %364 = arith.mulf %363, %361 : vector<2x9x64xf32>
    %365 = arith.addf %358, %364 : vector<2x9x64xf32>
    %c28 = arith.constant 28 : index
    %c0_92 = arith.constant 0 : index
    %366 = vector.load %arg6[%c28, %c0_92] : memref<36x64xf32, #tpu.memory_space<vmem>>, vector<1x64xf32>
    %367 = vector.extract_strided_slice %359 {offsets = [0, 0, 1], sizes = [2, 9, 64], strides = [1, 1, 1]} : vector<2x11x66xf32> to vector<2x9x64xf32>
    %368 = vector.shape_cast %366 : vector<1x64xf32> to vector<1x1x64xf32>
    %369 = vector.broadcast %368 : vector<1x1x64xf32> to vector<2x9x64xf32>
    %370 = arith.mulf %369, %367 : vector<2x9x64xf32>
    %371 = arith.addf %365, %370 : vector<2x9x64xf32>
    %c29 = arith.constant 29 : index
    %c0_93 = arith.constant 0 : index
    %372 = vector.load %arg6[%c29, %c0_93] : memref<36x64xf32, #tpu.memory_space<vmem>>, vector<1x64xf32>
    %373 = vector.extract_strided_slice %359 {offsets = [0, 0, 2], sizes = [2, 9, 64], strides = [1, 1, 1]} : vector<2x11x66xf32> to vector<2x9x64xf32>
    %374 = vector.shape_cast %372 : vector<1x64xf32> to vector<1x1x64xf32>
    %375 = vector.broadcast %374 : vector<1x1x64xf32> to vector<2x9x64xf32>
    %376 = arith.mulf %375, %373 : vector<2x9x64xf32>
    %377 = arith.addf %371, %376 : vector<2x9x64xf32>
    %c30 = arith.constant 30 : index
    %c0_94 = arith.constant 0 : index
    %378 = vector.load %arg6[%c30, %c0_94] : memref<36x64xf32, #tpu.memory_space<vmem>>, vector<1x64xf32>
    %379 = vector.extract_strided_slice %359 {offsets = [0, 1, 0], sizes = [2, 9, 64], strides = [1, 1, 1]} : vector<2x11x66xf32> to vector<2x9x64xf32>
    %380 = vector.shape_cast %378 : vector<1x64xf32> to vector<1x1x64xf32>
    %381 = vector.broadcast %380 : vector<1x1x64xf32> to vector<2x9x64xf32>
    %382 = arith.mulf %381, %379 : vector<2x9x64xf32>
    %383 = arith.addf %377, %382 : vector<2x9x64xf32>
    %c31 = arith.constant 31 : index
    %c0_95 = arith.constant 0 : index
    %384 = vector.load %arg6[%c31, %c0_95] : memref<36x64xf32, #tpu.memory_space<vmem>>, vector<1x64xf32>
    %385 = vector.extract_strided_slice %359 {offsets = [0, 1, 1], sizes = [2, 9, 64], strides = [1, 1, 1]} : vector<2x11x66xf32> to vector<2x9x64xf32>
    %386 = vector.shape_cast %384 : vector<1x64xf32> to vector<1x1x64xf32>
    %387 = vector.broadcast %386 : vector<1x1x64xf32> to vector<2x9x64xf32>
    %388 = arith.mulf %387, %385 : vector<2x9x64xf32>
    %389 = arith.addf %383, %388 : vector<2x9x64xf32>
    %c32 = arith.constant 32 : index
    %c0_96 = arith.constant 0 : index
    %390 = vector.load %arg6[%c32, %c0_96] : memref<36x64xf32, #tpu.memory_space<vmem>>, vector<1x64xf32>
    %391 = vector.extract_strided_slice %359 {offsets = [0, 1, 2], sizes = [2, 9, 64], strides = [1, 1, 1]} : vector<2x11x66xf32> to vector<2x9x64xf32>
    %392 = vector.shape_cast %390 : vector<1x64xf32> to vector<1x1x64xf32>
    %393 = vector.broadcast %392 : vector<1x1x64xf32> to vector<2x9x64xf32>
    %394 = arith.mulf %393, %391 : vector<2x9x64xf32>
    %395 = arith.addf %389, %394 : vector<2x9x64xf32>
    %c33 = arith.constant 33 : index
    %c0_97 = arith.constant 0 : index
    %396 = vector.load %arg6[%c33, %c0_97] : memref<36x64xf32, #tpu.memory_space<vmem>>, vector<1x64xf32>
    %397 = vector.extract_strided_slice %359 {offsets = [0, 2, 0], sizes = [2, 9, 64], strides = [1, 1, 1]} : vector<2x11x66xf32> to vector<2x9x64xf32>
    %398 = vector.shape_cast %396 : vector<1x64xf32> to vector<1x1x64xf32>
    %399 = vector.broadcast %398 : vector<1x1x64xf32> to vector<2x9x64xf32>
    %400 = arith.mulf %399, %397 : vector<2x9x64xf32>
    %401 = arith.addf %395, %400 : vector<2x9x64xf32>
    %c34 = arith.constant 34 : index
    %c0_98 = arith.constant 0 : index
    %402 = vector.load %arg6[%c34, %c0_98] : memref<36x64xf32, #tpu.memory_space<vmem>>, vector<1x64xf32>
    %403 = vector.extract_strided_slice %359 {offsets = [0, 2, 1], sizes = [2, 9, 64], strides = [1, 1, 1]} : vector<2x11x66xf32> to vector<2x9x64xf32>
    %404 = vector.shape_cast %402 : vector<1x64xf32> to vector<1x1x64xf32>
    %405 = vector.broadcast %404 : vector<1x1x64xf32> to vector<2x9x64xf32>
    %406 = arith.mulf %405, %403 : vector<2x9x64xf32>
    %407 = arith.addf %401, %406 : vector<2x9x64xf32>
    %c35 = arith.constant 35 : index
    %c0_99 = arith.constant 0 : index
    %408 = vector.load %arg6[%c35, %c0_99] : memref<36x64xf32, #tpu.memory_space<vmem>>, vector<1x64xf32>
    %409 = vector.extract_strided_slice %359 {offsets = [0, 2, 2], sizes = [2, 9, 64], strides = [1, 1, 1]} : vector<2x11x66xf32> to vector<2x9x64xf32>
    %410 = vector.shape_cast %408 : vector<1x64xf32> to vector<1x1x64xf32>
    %411 = vector.broadcast %410 : vector<1x1x64xf32> to vector<2x9x64xf32>
    %412 = arith.mulf %411, %409 : vector<2x9x64xf32>
    %413 = arith.addf %407, %412 : vector<2x9x64xf32>
    %c0_100 = arith.constant 0 : index
    %c0_101 = arith.constant 0 : index
    %414 = vector.load %arg7[%c0_100, %c0_101] : memref<1x64xf32, #tpu.memory_space<vmem>>, vector<1x64xf32>
    %415 = vector.shape_cast %414 : vector<1x64xf32> to vector<1x1x64xf32>
    %416 = vector.broadcast %415 : vector<1x1x64xf32> to vector<2x9x64xf32>
    %417 = arith.addf %413, %416 : vector<2x9x64xf32>
    %cst_102 = arith.constant 0.000000e+00 : f32
    %418 = vector.broadcast %cst_102 : f32 to vector<2x9x64xf32>
    %419 = arith.cmpf ogt, %417, %418 : vector<2x9x64xf32>
    %cst_103 = arith.constant 0.00999999977 : f32
    %420 = vector.broadcast %cst_103 : f32 to vector<2x9x64xf32>
    %421 = arith.mulf %420, %417 : vector<2x9x64xf32>
    %422 = arith.select %419, %417, %421 : vector<2x9x64xi1>, vector<2x9x64xf32>
    %423 = vector.extract_strided_slice %422 {offsets = [0, 0, 0], sizes = [2, 8, 63], strides = [1, 1, 1]} : vector<2x9x64xf32> to vector<2x8x63xf32>
    %424 = vector.extract_strided_slice %422 {offsets = [0, 0, 1], sizes = [2, 8, 63], strides = [1, 1, 1]} : vector<2x9x64xf32> to vector<2x8x63xf32>
    %425 = arith.maximumf %423, %424 : vector<2x8x63xf32>
    %426 = vector.extract_strided_slice %422 {offsets = [0, 1, 0], sizes = [2, 8, 63], strides = [1, 1, 1]} : vector<2x9x64xf32> to vector<2x8x63xf32>
    %427 = vector.extract_strided_slice %422 {offsets = [0, 1, 1], sizes = [2, 8, 63], strides = [1, 1, 1]} : vector<2x9x64xf32> to vector<2x8x63xf32>
    %428 = arith.maximumf %426, %427 : vector<2x8x63xf32>
    %429 = arith.maximumf %425, %428 : vector<2x8x63xf32>
    %430 = vector.extract_strided_slice %429 {offsets = [0, 0, 0], sizes = [2, 1, 63], strides = [1, 1, 1]} : vector<2x8x63xf32> to vector<2x1x63xf32>
    %431 = vector.shape_cast %430 : vector<2x1x63xf32> to vector<2x63xf32>
    %432 = vector.extract_strided_slice %429 {offsets = [0, 1, 0], sizes = [2, 1, 63], strides = [1, 1, 1]} : vector<2x8x63xf32> to vector<2x1x63xf32>
    %433 = vector.shape_cast %432 : vector<2x1x63xf32> to vector<2x63xf32>
    %434 = vector.extract_strided_slice %429 {offsets = [0, 2, 0], sizes = [2, 1, 63], strides = [1, 1, 1]} : vector<2x8x63xf32> to vector<2x1x63xf32>
    %435 = vector.shape_cast %434 : vector<2x1x63xf32> to vector<2x63xf32>
    %436 = vector.extract_strided_slice %429 {offsets = [0, 3, 0], sizes = [2, 1, 63], strides = [1, 1, 1]} : vector<2x8x63xf32> to vector<2x1x63xf32>
    %437 = vector.shape_cast %436 : vector<2x1x63xf32> to vector<2x63xf32>
    %438 = vector.extract_strided_slice %429 {offsets = [0, 4, 0], sizes = [2, 1, 63], strides = [1, 1, 1]} : vector<2x8x63xf32> to vector<2x1x63xf32>
    %439 = vector.shape_cast %438 : vector<2x1x63xf32> to vector<2x63xf32>
    %440 = vector.extract_strided_slice %429 {offsets = [0, 5, 0], sizes = [2, 1, 63], strides = [1, 1, 1]} : vector<2x8x63xf32> to vector<2x1x63xf32>
    %441 = vector.shape_cast %440 : vector<2x1x63xf32> to vector<2x63xf32>
    %442 = vector.extract_strided_slice %429 {offsets = [0, 6, 0], sizes = [2, 1, 63], strides = [1, 1, 1]} : vector<2x8x63xf32> to vector<2x1x63xf32>
    %443 = vector.shape_cast %442 : vector<2x1x63xf32> to vector<2x63xf32>
    %444 = vector.extract_strided_slice %429 {offsets = [0, 7, 0], sizes = [2, 1, 63], strides = [1, 1, 1]} : vector<2x8x63xf32> to vector<2x1x63xf32>
    %445 = vector.shape_cast %444 : vector<2x1x63xf32> to vector<2x63xf32>
    %446 = tpu.concatenate %431, %433, %435, %437, %439, %441, %443, %445 in 1 : vector<2x63xf32>, vector<2x63xf32>, vector<2x63xf32>, vector<2x63xf32>, vector<2x63xf32>, vector<2x63xf32>, vector<2x63xf32>, vector<2x63xf32> -> vector<2x504xf32>
    %447 = arith.truncf %446 : vector<2x504xf32> to vector<2x504xbf16>
    %c0_104 = arith.constant 0 : index
    %c0_105 = arith.constant 0 : index
    %448 = vector.load %arg8[%c0_104, %c0_105] : memref<504x128xbf16, #tpu.memory_space<vmem>>, vector<504x128xbf16>
    %cst_106 = arith.constant dense<0.000000e+00> : vector<2x128xf32>
    %449 = tpu.matmul %447, %448, %cst_106 {dimension_numbers = #tpu.dot_dimension_numbers<[1], [0], [0], [1], [0, 0, 1, 1], [], []>} : vector<2x504xbf16>, vector<504x128xbf16>, vector<2x128xf32> -> vector<2x128xf32>
    %c0_107 = arith.constant 0 : index
    %c0_108 = arith.constant 0 : index
    %450 = vector.load %arg9[%c0_107, %c0_108] : memref<1x128xf32, #tpu.memory_space<vmem>>, vector<1x128xf32>
    %451 = vector.broadcast %450 : vector<1x128xf32> to vector<2x128xf32>
    %452 = arith.addf %449, %451 : vector<2x128xf32>
    %cst_109 = arith.constant 0.000000e+00 : f32
    %453 = vector.broadcast %cst_109 : f32 to vector<2x128xf32>
    %454 = arith.cmpf ogt, %452, %453 : vector<2x128xf32>
    %cst_110 = arith.constant 0.00999999977 : f32
    %455 = vector.broadcast %cst_110 : f32 to vector<2x128xf32>
    %456 = arith.mulf %455, %452 : vector<2x128xf32>
    %457 = arith.select %454, %452, %456 : vector<2x128xi1>, vector<2x128xf32>
    %458 = arith.truncf %457 : vector<2x128xf32> to vector<2x128xbf16>
    %c0_111 = arith.constant 0 : index
    %c0_112 = arith.constant 0 : index
    %459 = vector.load %arg10[%c0_111, %c0_112] : memref<128x32xbf16, #tpu.memory_space<vmem>>, vector<128x32xbf16>
    %cst_113 = arith.constant dense<0.000000e+00> : vector<2x32xf32>
    %460 = tpu.matmul %458, %459, %cst_113 {dimension_numbers = #tpu.dot_dimension_numbers<[1], [0], [0], [1], [0, 0, 1, 1], [], []>} : vector<2x128xbf16>, vector<128x32xbf16>, vector<2x32xf32> -> vector<2x32xf32>
    %c0_114 = arith.constant 0 : index
    %c0_115 = arith.constant 0 : index
    %461 = vector.load %arg11[%c0_114, %c0_115] : memref<1x32xf32, #tpu.memory_space<vmem>>, vector<1x32xf32>
    %462 = vector.broadcast %461 : vector<1x32xf32> to vector<2x32xf32>
    %463 = arith.addf %460, %462 : vector<2x32xf32>
    %cst_116 = arith.constant 0.000000e+00 : f32
    %464 = vector.broadcast %cst_116 : f32 to vector<2x32xf32>
    %465 = arith.cmpf ogt, %463, %464 : vector<2x32xf32>
    %cst_117 = arith.constant 0.00999999977 : f32
    %466 = vector.broadcast %cst_117 : f32 to vector<2x32xf32>
    %467 = arith.mulf %466, %463 : vector<2x32xf32>
    %468 = arith.select %465, %463, %467 : vector<2x32xi1>, vector<2x32xf32>
    %469 = arith.truncf %468 : vector<2x32xf32> to vector<2x32xbf16>
    %c0_118 = arith.constant 0 : index
    %c0_119 = arith.constant 0 : index
    %470 = vector.load %arg12[%c0_118, %c0_119] : memref<32x1xbf16, #tpu.memory_space<vmem>>, vector<32x1xbf16>
    %cst_120 = arith.constant dense<0.000000e+00> : vector<2x1xf32>
    %471 = tpu.matmul %469, %470, %cst_120 {dimension_numbers = #tpu.dot_dimension_numbers<[1], [0], [0], [1], [0, 0, 1, 1], [], []>} : vector<2x32xbf16>, vector<32x1xbf16>, vector<2x1xf32> -> vector<2x1xf32>
    %c0_121 = arith.constant 0 : index
    %c0_122 = arith.constant 0 : index
    %472 = vector.load %arg13[%c0_121, %c0_122] : memref<1x1xf32, #tpu.memory_space<vmem>>, vector<1x1xf32>
    %473 = vector.broadcast %472 : vector<1x1xf32> to vector<2x1xf32>
    %474 = arith.addf %471, %473 : vector<2x1xf32>
    %c0_123 = arith.constant 0 : index
    %c0_124 = arith.constant 0 : index
    %475 = vector.load %arg14[%c0_123, %c0_124] : memref<2x1xf32, #tpu.memory_space<vmem>>, vector<2x1xf32>
    tpu.vector_store %arg14[%c0_123, %c0_124], %474 {strides = array<i32>} : memref<2x1xf32, #tpu.memory_space<vmem>>, vector<2x1xf32>,
    return
  }
  func.func @transform_0(%arg0: i32) -> (i32, i32, i32) {
    %c0_i32 = arith.constant 0 : i32
    %c0_i32_0 = arith.constant 0 : i32
    %c0_i32_1 = arith.constant 0 : i32
    return %arg0, %c0_i32, %c0_i32_0 : i32, i32, i32
  }
  func.func @transform_1(%arg0: i32) -> (i32, i32) {
    %c0_i32 = arith.constant 0 : i32
    %c0_i32_0 = arith.constant 0 : i32
    %c0_i32_1 = arith.constant 0 : i32
    return %c0_i32, %c0_i32_0 : i32, i32
  }
  func.func @transform_2(%arg0: i32) -> (i32, i32) {
    %c0_i32 = arith.constant 0 : i32
    %c0_i32_0 = arith.constant 0 : i32
    %c0_i32_1 = arith.constant 0 : i32
    return %c0_i32, %c0_i32_0 : i32, i32
  }
  func.func @transform_3(%arg0: i32) -> (i32, i32) {
    %c0_i32 = arith.constant 0 : i32
    %c0_i32_0 = arith.constant 0 : i32
    %c0_i32_1 = arith.constant 0 : i32
    return %c0_i32, %c0_i32_0 : i32, i32
  }
  func.func @transform_4(%arg0: i32) -> (i32, i32) {
    %c0_i32 = arith.constant 0 : i32
    %c0_i32_0 = arith.constant 0 : i32
    %c0_i32_1 = arith.constant 0 : i32
    return %c0_i32, %c0_i32_0 : i32, i32
  }
  func.func @transform_5(%arg0: i32) -> (i32, i32) {
    %c0_i32 = arith.constant 0 : i32
    %c0_i32_0 = arith.constant 0 : i32
    %c0_i32_1 = arith.constant 0 : i32
    return %c0_i32, %c0_i32_0 : i32, i32
  }
  func.func @transform_6(%arg0: i32) -> (i32, i32) {
    %c0_i32 = arith.constant 0 : i32
    %c0_i32_0 = arith.constant 0 : i32
    %c0_i32_1 = arith.constant 0 : i32
    return %c0_i32, %c0_i32_0 : i32, i32
  }
  func.func @transform_7(%arg0: i32) -> (i32, i32) {
    %c0_i32 = arith.constant 0 : i32
    %c0_i32_0 = arith.constant 0 : i32
    %c0_i32_1 = arith.constant 0 : i32
    return %c0_i32, %c0_i32_0 : i32, i32
  }
  func.func @transform_8(%arg0: i32) -> (i32, i32) {
    %c0_i32 = arith.constant 0 : i32
    %c0_i32_0 = arith.constant 0 : i32
    %c0_i32_1 = arith.constant 0 : i32
    return %c0_i32, %c0_i32_0 : i32, i32
  }
  func.func @transform_9(%arg0: i32) -> (i32, i32) {
    %c0_i32 = arith.constant 0 : i32
    %c0_i32_0 = arith.constant 0 : i32
    %c0_i32_1 = arith.constant 0 : i32
    return %c0_i32, %c0_i32_0 : i32, i32
  }
  func.func @transform_10(%arg0: i32) -> (i32, i32) {
    %c0_i32 = arith.constant 0 : i32
    %c0_i32_0 = arith.constant 0 : i32
    %c0_i32_1 = arith.constant 0 : i32
    return %c0_i32, %c0_i32_0 : i32, i32
  }
  func.func @transform_11(%arg0: i32) -> (i32, i32) {
    %c0_i32 = arith.constant 0 : i32
    %c0_i32_0 = arith.constant 0 : i32
    %c0_i32_1 = arith.constant 0 : i32
    return %c0_i32, %c0_i32_0 : i32, i32
  }
  func.func @transform_12(%arg0: i32) -> (i32, i32) {
    %c0_i32 = arith.constant 0 : i32
    %c0_i32_0 = arith.constant 0 : i32
    %c0_i32_1 = arith.constant 0 : i32
    return %c0_i32, %c0_i32_0 : i32, i32
  }
  func.func @transform_13(%arg0: i32) -> (i32, i32) {
    %c0_i32 = arith.constant 0 : i32
    %c0_i32_0 = arith.constant 0 : i32
    return %arg0, %c0_i32 : i32, i32
  }
}

</mosaic_0001>

<bundles_post_ra>
// kernel: cnn_forward.1
= control target key start
LH: loop header
LB: loop body
LE: loop exit
PB: predicated region body
PF: predicated region fallthrough
CT: control target
= control target key end

     0   :  { %s3206_s29 = smov 16   ;;  %vm67_vm0 = vcmask 130048   ;;  %s3207_s17 = smov 127   ;;  %vm148_vm1 = vcmask 1046528   ;;  %vm232_vm2 = vcmask 1045504   ;;  %vm366_vm7 = vcmask 113664   ;;  %s4951_s0 = inlined_call_operand.vmem [shape: f32[2,16,16], index: 0, kind: input, shape index: {}]   ;;  %s4952_s1 = inlined_call_operand.vmem [shape: f32[9,30], index: 1, kind: input, shape index: {}]   ;;  %s4953_s2 = inlined_call_operand.vmem [shape: f32[1,30], index: 2, kind: input, shape index: {}]   ;;  %s4954_s3 = inlined_call_operand.vmem [shape: f32[18,54], index: 3, kind: input, shape index: {}]   ;;  %s4955_s4 = inlined_call_operand.vmem [shape: f32[1,54], index: 4, kind: input, shape index: {}]   ;;  %s4956_s5 = inlined_call_operand.vmem [shape: f32[36,64], index: 5, kind: input, shape index: {}]   ;;  %s4957_s6 = inlined_call_operand.vmem [shape: f32[1,64], index: 6, kind: input, shape index: {}]   ;;  %s4958_s7 = inlined_call_operand.vmem [shape: bf16[504,128], index: 7, kind: input, shape index: {}]   ;;  %s4959_s9 = inlined_call_operand.vmem [shape: bf16[128,32], index: 9, kind: input, shape index: {}]   ;;  %s4960_s8 = inlined_call_operand.vmem [shape: f32[1,128], index: 8, kind: input, shape index: {}]   ;;  %s4961_s11 = inlined_call_operand.vmem [shape: bf16[32,1], index: 11, kind: input, shape index: {}]   ;;  %s4962_s12 = inlined_call_operand.<no memory space> [shape: f32[1,1], index: 12, kind: input, shape index: {}]   ;;  %s4963_s10 = inlined_call_operand.vmem [shape: f32[1,32], index: 10, kind: input, shape index: {}]   ;;  %s4964_s13 = inlined_call_operand.vmem [shape: f32[2,1], index: 13, kind: output, shape index: {}]  }
   0x1   :  { %v49_v0 = vld [vmem:[%s4951_s0 + $0x10] sm:$0xff]  ;;  %v47_v1 = vld [vmem:[%s4951_s0] sm:$0xff]  ;;  %v50_v2 = vld [vmem:[%s4951_s0 + $0x18] sm:$0xff]  ;;  %s3208_s21 = smov 126   ;;  %s3211_s23 = smov 42   ;;  %vm371_vm8 = vcmask 228352  }
   0x2   :  { %59 = vrot.lane.b32.xlu1 %v49_v0, %s3206_s29  ;;  %55 = vrot.lane.b32.xlu0 %v47_v1, %s3206_s29  ;;  %v48_v3 = vld [vmem:[%s4951_s0 + $0x8] sm:$0xff]  ;;  %v2921_v8 = vld [vmem:[%s4952_s1 + $0x3] ss:$0 sm:$0xff]  ;;  %s3212_s24 = smov 112   ;;  %s3213_s25 = smov 12   ;;  %vm376_vm9 = vcmask 343040  }
   0x3   :  { %v2924_v12 = vld [vmem:[%s4952_s1 + $0x6] ss:$0 sm:$0xff]  ;;  %v2919_v47 = vld [vmem:[%s4952_s1 + $0x1] ss:$0 sm:$0xff]  ;;  %v2918_v48 = vld [vmem:[%s4952_s1] ss:$0 sm:$0xff] }
   0x4   :  { %v2920_v52 = vld [vmem:[%s4952_s1 + $0x2] ss:$0 sm:$0xff]  ;;  %s3214_s26 = smov 26   ;;  %s3217_s15 = smov 33   ;;  %vm1028_vm14 = vcmask 89088   ;;  %vm1033_vm15 = vcmask 179200  }
   0x5   :  { %s3218_s16 = smov 44   ;;  %s3219_s18 = smov 55  }
   0x6   :  { %61 = vrot.lane.b32.xlu1 %v50_v2, %s3206_s29  ;;  %57 = vrot.lane.b32.xlu0 %v48_v3, %s3206_s29  ;;  %s3220_s19 = smov 114   ;;  %s3221_s0 = smov 125  }
   0x7   :  { %s3222_s20 = smov 8   ;;  %s3223_s22 = smov 19  }
   0x8   :  { %s3230_s27 = smov 27   ;;  %s3231_s28 = smov 86  }
   0x9   :  { %s3237_s30 = smov 61   ;;  %s3238_s14 = smov 124  }
  0x74   :  { %v60_v4 = vpop.permute.xlu1 %59  ;;  %v56_v5 = vpop.permute.xlu0 %55 }
  0x75   :  { %v3330_v6 = vsel %vm67_vm0, %v49_v0, %v60_v4  ;;  %v3332_v7 = vsel %vm67_vm0, %v47_v1, %v56_v5 }
  0x76   :  { %90 = vrot.lane.b32.xlu0 %v3332_v7, %s3207_s17  ;;  %v142_v9 = vmul.f32 %v2921_v8, %v3330_v6  ;;  %v140_v15 = vmul.f32 %v2921_v8, %v3332_v7  ;;  %v226_v16 = vmul.f32 %v2924_v12, %v3330_v6  ;;  %v224_v20 = vmul.f32 %v2924_v12, %v3332_v7 }
  0x77   :  { %v168_v35 = vrot.slane %v3332_v7, 1  ;;  %v171_v37 = vrot.slane %v3330_v6, 1  ;;  %v252_v41 = vrot.slane %v3332_v7, 2  ;;  %v255_v43 = vrot.slane %v3330_v6, 2 }
  0x78   :  { %v62_v10 = vpop.permute.xlu1 %61  ;;  %v58_v11 = vpop.permute.xlu0 %57  ;;  %v152_v19 = vrot.slane %v142_v9, 1  ;;  %v149_v21 = vrot.slane %v140_v15, 1  ;;  %v236_v26 = vrot.slane %v226_v16, 2  ;;  %v233_v29 = vrot.slane %v224_v20, 2 }
  0x79   :  { %v3343_v13 = vsel %vm67_vm0, %v50_v2, %v62_v10  ;;  %v3345_v14 = vsel %vm67_vm0, %v48_v3, %v58_v11  ;;  %v77_v53 = vmul.f32 %v2918_v48, %v3332_v7  ;;  %v79_v59 = vmul.f32 %v2918_v48, %v3330_v6 }
  0x7a   :  { %94 = vrot.lane.b32.xlu0 %v3330_v6, %s3207_s17  ;;  %92 = vrot.lane.b32.xlu1 %v3345_v14, %s3207_s17  ;;  %v3354_v17 = vmul.f32 %v2921_v8, %v3345_v14  ;;  %v3357_v18 = vmul.f32 %v2921_v8, %v3343_v13  ;;  %v3363_v24 = vmul.f32 %v2924_v12, %v3345_v14  ;;  %v169_v32 = vrot.slane %v3345_v14, 1 }
  0x7b   :  { %v3370_v25 = vmul.f32 %v2924_v12, %v3343_v13  ;;  %v172_v38 = vrot.slane %v3343_v13, 1  ;;  %v253_v40 = vrot.slane %v3345_v14, 2  ;;  %v256_v44 = vrot.slane %v3343_v13, 2 }
  0x7c   :  { %v150_v22 = vrot.slane %v3354_v17, 1  ;;  %v153_v23 = vrot.slane %v3357_v18, 1  ;;  %v234_v30 = vrot.slane %v3363_v24, 2  ;;  %v170_v36 = vsel %vm148_vm1, %v168_v35, %v169_v32 }
  0x7d   :  { %v237_v31 = vrot.slane %v3370_v25, 2  ;;  %v173_v39 = vsel %vm148_vm1, %v171_v37, %v172_v38  ;;  %v254_v42 = vsel %vm232_vm2, %v252_v41, %v253_v40  ;;  %v257_v45 = vsel %vm232_vm2, %v255_v43, %v256_v44 }
  0x7e   :  { %115 = vrot.lane.b32.xlu0 %v3332_v7, %s3208_s21  ;;  %96 = vrot.lane.b32.xlu1 %v3343_v13, %s3207_s17  ;;  %v151_v27 = vsel %vm148_vm1, %v149_v21, %v150_v22  ;;  %v154_v28 = vsel %vm148_vm1, %v152_v19, %v153_v23  ;;  %v3384_v33 = vsel %vm232_vm2, %v233_v29, %v234_v30  ;;  %v2922_v7 = vld [vmem:[%s4952_s1 + $0x4] ss:$0 sm:$0xff]  ;;  %vm1038_vm0 = vcmask 269312  }
  0x7f   :  { %v3393_v34 = vsel %vm232_vm2, %v236_v26, %v237_v31  ;;  %v78_v21 = vmul.f32 %v2918_v48, %v3345_v14  ;;  %v80_v41 = vmul.f32 %v2918_v48, %v3343_v13 }
  0x82   :  { %119 = vrot.lane.b32.xlu0 %v3330_v6, %s3208_s21  ;;  %117 = vrot.lane.b32.xlu1 %v3345_v14, %s3208_s21  ;;  %v2923_v6 = vld [vmem:[%s4952_s1 + $0x5] ss:$0 sm:$0xff] }
  0x86   :  { %121 = vrot.lane.b32.xlu1 %v3343_v13, %s3208_s21  ;;  %174 = vrot.lane.b32.xlu0 %v170_v36, %s3207_s17 }
  0x8a   :  { %176 = vrot.lane.b32.xlu1 %v169_v32, %s3207_s17  ;;  %178 = vrot.lane.b32.xlu0 %v173_v39, %s3207_s17 }
  0x8e   :  { %180 = vrot.lane.b32.xlu1 %v172_v38, %s3207_s17  ;;  %199 = vrot.lane.b32.xlu0 %v170_v36, %s3208_s21 }
  0x92   :  { %201 = vrot.lane.b32.xlu1 %v169_v32, %s3208_s21  ;;  %203 = vrot.lane.b32.xlu0 %v173_v39, %s3208_s21 }
  0x96   :  { %205 = vrot.lane.b32.xlu1 %v172_v38, %s3208_s21  ;;  %258 = vrot.lane.b32.xlu0 %v254_v42, %s3207_s17 }
  0x9a   :  { %260 = vrot.lane.b32.xlu1 %v253_v40, %s3207_s17  ;;  %262 = vrot.lane.b32.xlu0 %v257_v45, %s3207_s17 }
  0x9e   :  { %264 = vrot.lane.b32.xlu1 %v256_v44, %s3207_s17  ;;  %283 = vrot.lane.b32.xlu0 %v254_v42, %s3208_s21 }
  0xa2   :  { %285 = vrot.lane.b32.xlu1 %v253_v40, %s3208_s21  ;;  %287 = vrot.lane.b32.xlu0 %v257_v45, %s3208_s21 }
  0xa6   :  { %289 = vrot.lane.b32.xlu1 %v256_v44, %s3208_s21 }
  0xe8   :  { %v91_v46 = vpop.permute.xlu0 %90 }
  0xe9   :  { %v102_v51 = vmul.f32 %v2919_v47, %v91_v46 }
  0xeb   :  { %v106_v56 = vadd.f32 %v102_v51, %v77_v53 }
  0xec   :  { %v93_v49 = vpop.permute.xlu1 %92  ;;  %v95_v50 = vpop.permute.xlu0 %94 }
  0xed   :  { %v104_v57 = vmul.f32 %v2919_v47, %v95_v50  ;;  %v103_v11 = vmul.f32 %v2919_v47, %v93_v49 }
  0xef   :  { %v108_v63 = vadd.f32 %v104_v57, %v79_v59 }
  0xf0   :  { %v97_v54 = vpop.permute.xlu1 %96  ;;  %v116_v55 = vpop.permute.xlu0 %115 }
  0xf1   :  { %v127_v58 = vmul.f32 %v2920_v52, %v116_v55  ;;  %v105_v38 = vmul.f32 %v2919_v47, %v97_v54 }
  0xf3   :  { %v131_v60 = vadd.f32 %v127_v58, %v106_v56  ;;  %v109_v46 = vadd.f32 %v105_v38, %v80_v41 }
  0xf4   :  { %v118_v61 = vpop.permute.xlu1 %117  ;;  %v120_v62 = vpop.permute.xlu0 %119 }
  0xf5   :  { %v129_v0 = vmul.f32 %v2920_v52, %v120_v62  ;;  %v159_v1 = vadd.f32 %v151_v27, %v131_v60  ;;  %v128_v26 = vmul.f32 %v2920_v52, %v118_v61 }
  0xf7   :  { %v133_v2 = vadd.f32 %v129_v0, %v108_v63  ;;  %v2927_v63 = vld [vmem:[%s4953_s2] ss:$0 sm:$0xff]  ;;  %s3210_s2 = smov 28  }
  0xf8   :  { %v122_v3 = vpop.permute.xlu1 %121  ;;  %v175_v4 = vpop.permute.xlu0 %174 }
  0xf9   :  { %v161_v5 = vadd.f32 %v154_v28, %v133_v2  ;;  %v186_v10 = vmul.f32 %v2922_v7, %v175_v4  ;;  %v107_v28 = vadd.f32 %v103_v11, %v78_v21  ;;  %v130_v42 = vmul.f32 %v2920_v52, %v122_v3 }
  0xfb   :  { %v190_v16 = vadd.f32 %v186_v10, %v159_v1  ;;  %v132_v39 = vadd.f32 %v128_v26, %v107_v28  ;;  %v134_v47 = vadd.f32 %v130_v42, %v109_v46  ;;  %v2934_v46 = vld [vmem:[%s4954_s3 + $0x6] ss:$0 sm:$0xff] }
  0xfc   :  { %v177_v8 = vpop.permute.xlu1 %176  ;;  %v179_v9 = vpop.permute.xlu0 %178 }
  0xfd   :  { %v188_v19 = vmul.f32 %v2922_v7, %v179_v9  ;;  %v187_v43 = vmul.f32 %v2922_v7, %v177_v8  ;;  %v160_v49 = vadd.f32 %v150_v22, %v132_v39  ;;  %v162_v17 = vadd.f32 %v153_v23, %v134_v47 }
  0xff   :  { %v192_v35 = vadd.f32 %v188_v19, %v161_v5  ;;  %v191_v51 = vadd.f32 %v187_v43, %v160_v49 }
 0x100   :  { %v181_v12 = vpop.permute.xlu1 %180  ;;  %v200_v15 = vpop.permute.xlu0 %199 }
 0x101   :  { %v211_v20 = vmul.f32 %v2923_v6, %v200_v15  ;;  %v189_v48 = vmul.f32 %v2922_v7, %v181_v12 }
 0x103   :  { %v215_v27 = vadd.f32 %v211_v20, %v190_v16  ;;  %v193_v61 = vadd.f32 %v189_v48, %v162_v17 }
 0x104   :  { %v202_v29 = vpop.permute.xlu1 %201  ;;  %v204_v32 = vpop.permute.xlu0 %203 }
 0x105   :  { %v213_v36 = vmul.f32 %v2923_v6, %v204_v32  ;;  %v243_v37 = vadd.f32 %v3384_v33, %v215_v27  ;;  %v212_v50 = vmul.f32 %v2923_v6, %v202_v29  ;;  %v2925_v33 = vld [vmem:[%s4952_s1 + $0x7] ss:$0 sm:$0xff] }
 0x107   :  { %v217_v40 = vadd.f32 %v213_v36, %v192_v35  ;;  %v216_v52 = vadd.f32 %v212_v50, %v191_v51 }
 0x108   :  { %v206_v44 = vpop.permute.xlu1 %205  ;;  %v259_v45 = vpop.permute.xlu0 %258 }
 0x109   :  { %v245_v14 = vadd.f32 %v3393_v34, %v217_v40  ;;  %v270_v13 = vmul.f32 %v2925_v33, %v259_v45  ;;  %v2926_v34 = vld [vmem:[%s4952_s1 + $0x8] ss:$0 sm:$0xff]  ;;  %v214_v22 = vmul.f32 %v2923_v6, %v206_v44  ;;  %v244_v62 = vadd.f32 %v234_v30, %v216_v52  ;;  %s3209_s1 = smov 14  }
 0x10b   :  { %v274_v58 = vadd.f32 %v270_v13, %v243_v37  ;;  %v218_v1 = vadd.f32 %v214_v22, %v193_v61 }
 0x10c   :  { %v261_v53 = vpop.permute.xlu1 %260  ;;  %v263_v54 = vpop.permute.xlu0 %262 }
 0x10d   :  { %v271_v55 = vmul.f32 %v2925_v33, %v261_v53  ;;  %v272_v59 = vmul.f32 %v2925_v33, %v263_v54  ;;  %v246_v24 = vadd.f32 %v237_v31, %v218_v1 }
 0x10f   :  { %v275_v2 = vadd.f32 %v271_v55, %v244_v62  ;;  %v276_v3 = vadd.f32 %v272_v59, %v245_v14  ;;  %v2931_v14 = vld [vmem:[%s4954_s3 + $0x3] ss:$0 sm:$0xff] }
 0x110   :  { %v265_v56 = vpop.permute.xlu1 %264  ;;  %v284_v57 = vpop.permute.xlu0 %283 }
 0x111   :  { %v295_v60 = vmul.f32 %v2926_v34, %v284_v57  ;;  %v273_v8 = vmul.f32 %v2925_v33, %v265_v56 }
 0x113   :  { %v299_v0 = vadd.f32 %v295_v60, %v274_v58  ;;  %v277_v19 = vadd.f32 %v273_v8, %v246_v24 }
 0x114   :  { %v286_v18 = vpop.permute.xlu1 %285  ;;  %v288_v23 = vpop.permute.xlu0 %287 }
 0x115   :  { %v310_v4 = vadd.f32 %v2927_v63, %v299_v0  ;;  %v296_v5 = vmul.f32 %v2926_v34, %v286_v18  ;;  %v297_v7 = vmul.f32 %v2926_v34, %v288_v23 }
 0x117   :  { %vm314_vm3 = vcmp.gt.f32.partialorder %v310_v4, 0.0  ;;  %v318_v9 = vmul.f32 0.01, %v310_v4  ;;  %v300_v10 = vadd.f32 %v296_v5, %v275_v2  ;;  %v301_v6 = vadd.f32 %v297_v7, %v276_v3 }
 0x118   :  { %v290_v30 = vpop.permute.xlu1 %289 }
 0x119   :  { %v322_v11 = vsel %vm314_vm3, %v310_v4, %v318_v9  ;;  %v311_v12 = vadd.f32 %v2927_v63, %v300_v10  ;;  %v312_v15 = vadd.f32 %v2927_v63, %v301_v6  ;;  %v298_v16 = vmul.f32 %v2926_v34, %v290_v30 }
 0x11a   :  { %330 = vrot.lane.b32.xlu0 %v322_v11, %s3209_s1  ;;  %vm1043_vm3 = vcmask 359424  }
 0x11b   :  { %vm315_vm4 = vcmp.gt.f32.partialorder %v311_v12, 0.0  ;;  %v319_v20 = vmul.f32 0.01, %v311_v12  ;;  %vm316_vm5 = vcmp.gt.f32.partialorder %v312_v15, 0.0  ;;  %v320_v21 = vmul.f32 0.01, %v312_v15 }
 0x11c   :  { %v302_v26 = vadd.f32 %v298_v16, %v277_v19 }
 0x11d   :  { %v323_v27 = vsel %vm315_vm4, %v311_v12, %v319_v20  ;;  %v324_v28 = vsel %vm316_vm5, %v312_v15, %v320_v21  ;;  %vm1048_vm4 = vcmask 449536  }
 0x11e   :  { %v313_v29 = vadd.f32 %v2927_v63, %v302_v26  ;;  %332 = vrot.lane.b32.xlu1 %v323_v27, %s3209_s1  ;;  %334 = vrot.lane.b32.xlu0 %v324_v28, %s3209_s1 }
 0x120   :  { %vm317_vm6 = vcmp.gt.f32.partialorder %v313_v29, 0.0  ;;  %v321_v25 = vmul.f32 0.01, %v313_v29 }
 0x122   :  { %v3462_v31 = vsel %vm317_vm6, %v313_v29, %v321_v25  ;;  %342 = vrot.lane.b32.xlu0 %v322_v11, %s3210_s2  ;;  %v2940_v25 = vld [vmem:[%s4954_s3 + $0xc] ss:$0 sm:$0xff] }
 0x123   :  { %336 = vrot.lane.b32.xlu1 %v3462_v31, %s3209_s1  ;;  %s3224_s1 = smov 30  }
 0x126   :  { %346 = vrot.lane.b32.xlu0 %v324_v28, %s3210_s2 }
 0x127   :  { %344 = vrot.lane.b32.xlu1 %v323_v27, %s3210_s2 }
 0x12a   :  { %354 = vrot.lane.b32.xlu0 %v322_v11, %s3211_s23 }
 0x12b   :  { %348 = vrot.lane.b32.xlu1 %v3462_v31, %s3210_s2  ;;  %s3225_s2 = smov 41  }
 0x12e   :  { %358 = vrot.lane.b32.xlu0 %v324_v28, %s3211_s23 }
 0x12f   :  { %356 = vrot.lane.b32.xlu1 %v323_v27, %s3211_s23 }
 0x132   :  { %610 = vrot.lane.b32.xlu0 %v322_v11, %s3212_s24 }
 0x133   :  { %360 = vrot.lane.b32.xlu1 %v3462_v31, %s3211_s23  ;;  %s3226_s23 = smov 100  }
 0x136   :  { %614 = vrot.lane.b32.xlu0 %v324_v28, %s3212_s24 }
 0x137   :  { %612 = vrot.lane.b32.xlu1 %v323_v27, %s3212_s24 }
 0x13a   :  { %622 = vrot.lane.b32.xlu0 %v322_v11, %s3208_s21 }
 0x13b   :  { %616 = vrot.lane.b32.xlu1 %v3462_v31, %s3212_s24  ;;  %s3227_s24 = smov 111  }
 0x13e   :  { %626 = vrot.lane.b32.xlu0 %v324_v28, %s3208_s21 }
 0x13f   :  { %624 = vrot.lane.b32.xlu1 %v323_v27, %s3208_s21 }
 0x142   :  { %634 = vrot.lane.b32.xlu0 %v322_v11, %s3213_s25 }
 0x143   :  { %628 = vrot.lane.b32.xlu1 %v3462_v31, %s3208_s21 }
 0x146   :  { %638 = vrot.lane.b32.xlu0 %v324_v28, %s3213_s25 }
 0x147   :  { %636 = vrot.lane.b32.xlu1 %v323_v27, %s3213_s25 }
 0x14a   :  { %646 = vrot.lane.b32.xlu0 %v322_v11, %s3214_s26 }
 0x14b   :  { %640 = vrot.lane.b32.xlu1 %v3462_v31, %s3213_s25  ;;  %s3228_s25 = smov 122  }
 0x14e   :  { %650 = vrot.lane.b32.xlu0 %v324_v28, %s3214_s26 }
 0x14f   :  { %648 = vrot.lane.b32.xlu1 %v323_v27, %s3214_s26 }
 0x153   :  { %652 = vrot.lane.b32.xlu1 %v3462_v31, %s3214_s26  ;;  %s3229_s26 = smov 5  }
 0x18c   :  { %v331_v32 = vpop.permute.xlu0 %330 }
 0x18d   :  { %v367_v41 = vsel %vm366_vm7, %v322_v11, %v331_v32 }
 0x190   :  { %v333_v35 = vpop.permute.xlu1 %332  ;;  %v335_v36 = vpop.permute.xlu0 %334 }
 0x191   :  { %v369_v49 = vsel %vm366_vm7, %v324_v28, %v335_v36  ;;  %v368_v50 = vsel %vm366_vm7, %v323_v27, %v333_v35 }
 0x194   :  { %v343_v37 = vpop.permute.xlu0 %342 }
 0x195   :  { %v337_v38 = vpop.permute.xlu1 %336  ;;  %v372_v42 = vsel %vm371_vm8, %v367_v41, %v343_v37 }
 0x196   :  { %v370_v17 = vsel %vm366_vm7, %v3462_v31, %v337_v38  ;;  %v2943_v31 = vld [vmem:[%s4954_s3 + $0xf] ss:$0 sm:$0xff] }
 0x198   :  { %v347_v39 = vpop.permute.xlu0 %346 }
 0x199   :  { %v345_v40 = vpop.permute.xlu1 %344  ;;  %v374_v33 = vsel %vm371_vm8, %v369_v49, %v347_v39 }
 0x19a   :  { %v373_v51 = vsel %vm371_vm8, %v368_v50, %v345_v40 }
 0x19c   :  { %v355_v43 = vpop.permute.xlu0 %354 }
 0x19d   :  { %v349_v44 = vpop.permute.xlu1 %348  ;;  %v3478_v45 = vsel %vm376_vm9, %v372_v42, %v355_v43 }
 0x19e   :  { %399 = vrot.lane.b32.xlu0 %v3478_v45, %s3207_s17  ;;  %v449_v13 = vmul.f32 %v2931_v14, %v3478_v45  ;;  %v532_v48 = vmul.f32 %v2934_v46, %v3478_v45  ;;  %v375_v56 = vsel %vm371_vm8, %v370_v17, %v349_v44 }
 0x1a0   :  { %v359_v47 = vpop.permute.xlu0 %358  ;;  %v457_v58 = vrot.slane %v449_v13, 1  ;;  %v540_v60 = vrot.slane %v532_v48, 2 }
 0x1a1   :  { %v357_v53 = vpop.permute.xlu1 %356  ;;  %v3493_v54 = vsel %vm376_vm9, %v374_v33, %v359_v47 }
 0x1a2   :  { %v3498_v52 = vsel %vm376_vm9, %v373_v51, %v357_v53  ;;  %403 = vrot.lane.b32.xlu0 %v3493_v54, %s3207_s17  ;;  %v451_v62 = vmul.f32 %v2931_v14, %v3493_v54  ;;  %v534_v0 = vmul.f32 %v2934_v46, %v3493_v54 }
 0x1a3   :  { %401 = vrot.lane.b32.xlu1 %v3498_v52, %s3207_s17  ;;  %v3505_v34 = vmul.f32 %v2931_v14, %v3498_v52  ;;  %v3510_v55 = vmul.f32 %v2934_v46, %v3498_v52 }
 0x1a4   :  { %v611_v22 = vpop.permute.xlu0 %610  ;;  %v460_v5 = vrot.slane %v451_v62, 1  ;;  %v543_v8 = vrot.slane %v534_v0, 2 }
 0x1a5   :  { %v361_v57 = vpop.permute.xlu1 %360  ;;  %v458_v59 = vrot.slane %v3505_v34, 1  ;;  %v541_v63 = vrot.slane %v3510_v55, 2  ;;  %v2937_v34 = vld [vmem:[%s4954_s3 + $0x9] ss:$0 sm:$0xff] }
 0x1a6   :  { %v3515_v61 = vsel %vm376_vm9, %v375_v56, %v361_v57  ;;  %424 = vrot.lane.b32.xlu0 %v3478_v45, %s3208_s21 }
 0x1a7   :  { %405 = vrot.lane.b32.xlu1 %v3515_v61, %s3207_s17  ;;  %v3527_v1 = vsel %vm148_vm1, %v457_v58, %v458_v59  ;;  %v3530_v18 = vmul.f32 %v2931_v14, %v3515_v61  ;;  %v3535_v23 = vsel %vm232_vm2, %v540_v60, %v541_v63  ;;  %v3538_v3 = vmul.f32 %v2934_v46, %v3515_v61 }
 0x1a8   :  { %v615_v2 = vpop.permute.xlu0 %614  ;;  %v477_v60 = vrot.slane %v3498_v52, 1 }
 0x1a9   :  { %v613_v4 = vpop.permute.xlu1 %612  ;;  %v461_v7 = vrot.slane %v3530_v18, 1  ;;  %v544_v9 = vrot.slane %v3538_v3, 2 }
 0x1aa   :  { %428 = vrot.lane.b32.xlu0 %v3493_v54, %s3208_s21 }
 0x1ab   :  { %426 = vrot.lane.b32.xlu1 %v3498_v52, %s3208_s21  ;;  %v3549_v6 = vsel %vm148_vm1, %v460_v5, %v461_v7  ;;  %v3554_v24 = vsel %vm232_vm2, %v543_v8, %v544_v9  ;;  %v476_v5 = vrot.slane %v3478_v45, 1 }
 0x1ac   :  { %v623_v10 = vpop.permute.xlu0 %622 }
 0x1ad   :  { %v617_v30 = vpop.permute.xlu1 %616  ;;  %v658_v21 = vsel %vm366_vm7, %v611_v22, %v623_v10 }
 0x1af   :  { %430 = vrot.lane.b32.xlu1 %v3515_v61, %s3208_s21 }
 0x1b0   :  { %v627_v11 = vpop.permute.xlu0 %626 }
 0x1b1   :  { %v625_v12 = vpop.permute.xlu1 %624  ;;  %v660_v32 = vsel %vm366_vm7, %v615_v2, %v627_v11  ;;  %v480_v11 = vrot.slane %v3515_v61, 1 }
 0x1b2   :  { %v659_v35 = vsel %vm366_vm7, %v613_v4, %v625_v12  ;;  %v479_v12 = vrot.slane %v3493_v54, 1 }
 0x1b4   :  { %v635_v15 = vpop.permute.xlu0 %634 }
 0x1b5   :  { %v629_v16 = vpop.permute.xlu1 %628  ;;  %v662_v26 = vsel %vm371_vm8, %v658_v21, %v635_v15  ;;  %v481_v15 = vsel %vm148_vm1, %v479_v12, %v480_v11  ;;  %v563_v21 = vrot.slane %v3515_v61, 2 }
 0x1b6   :  { %v661_v14 = vsel %vm366_vm7, %v617_v30, %v629_v16  ;;  %v478_v30 = vsel %vm148_vm1, %v476_v5, %v477_v60  ;;  %v560_v16 = vrot.slane %v3498_v52, 2 }
 0x1b8   :  { %v639_v19 = vpop.permute.xlu0 %638 }
 0x1b9   :  { %v637_v20 = vpop.permute.xlu1 %636  ;;  %v664_v36 = vsel %vm371_vm8, %v660_v32, %v639_v19  ;;  %v559_v19 = vrot.slane %v3478_v45, 2 }
 0x1ba   :  { %v663_v38 = vsel %vm371_vm8, %v659_v35, %v637_v20 }
 0x1bb   :  { %v561_v20 = vsel %vm232_vm2, %v559_v19, %v560_v16 }
 0x1bc   :  { %v647_v27 = vpop.permute.xlu0 %646 }
 0x1bd   :  { %v641_v28 = vpop.permute.xlu1 %640  ;;  %v3561_v29 = vsel %vm376_vm9, %v662_v26, %v647_v27  ;;  %v562_v26 = vrot.slane %v3493_v54, 2 }
 0x1be   :  { %692 = vrot.lane.b32.xlu0 %v3561_v29, %s3207_s17  ;;  %v742_v41 = vmul.f32 %v2940_v25, %v3561_v29  ;;  %v825_v42 = vmul.f32 %v2943_v31, %v3561_v29  ;;  %v665_v49 = vsel %vm371_vm8, %v661_v14, %v641_v28  ;;  %v675_v18 = vmul.f32 %v2937_v34, %v3561_v29 }
 0x1bf   :  { %v564_v27 = vsel %vm232_vm2, %v562_v26, %v563_v21  ;;  %vm2642_vm8 = vcmask 1043456  }
 0x1c0   :  { %v651_v37 = vpop.permute.xlu0 %650  ;;  %v750_v33 = vrot.slane %v742_v41, 1  ;;  %v833_v51 = vrot.slane %v825_v42, 2 }
 0x1c1   :  { %v649_v39 = vpop.permute.xlu1 %648  ;;  %v3576_v40 = vsel %vm376_vm9, %v664_v36, %v651_v37 }
 0x1c2   :  { %v3581_v43 = vsel %vm376_vm9, %v663_v38, %v649_v39  ;;  %696 = vrot.lane.b32.xlu0 %v3576_v40, %s3207_s17  ;;  %v744_v13 = vmul.f32 %v2940_v25, %v3576_v40  ;;  %v827_v17 = vmul.f32 %v2943_v31, %v3576_v40  ;;  %v772_v35 = vrot.slane %v3576_v40, 1 }
 0x1c3   :  { %694 = vrot.lane.b32.xlu1 %v3581_v43, %s3207_s17  ;;  %v3588_v44 = vmul.f32 %v2940_v25, %v3581_v43  ;;  %v3592_v46 = vmul.f32 %v2943_v31, %v3581_v43  ;;  %v770_v28 = vrot.slane %v3581_v43, 1  ;;  %v853_v37 = vrot.slane %v3581_v43, 2 }
 0x1c4   :  { %v753_v62 = vrot.slane %v744_v13, 1  ;;  %v836_v2 = vrot.slane %v827_v17, 2  ;;  %v852_v38 = vrot.slane %v3561_v29, 2  ;;  %v855_v42 = vrot.slane %v3576_v40, 2  ;;  %v2930_v17 = vld [vmem:[%s4954_s3 + $0x2] ss:$0 sm:$0xff] }
 0x1c5   :  { %v653_v50 = vpop.permute.xlu1 %652  ;;  %v4968_v47 = vrot.slane %v3588_v44, 1  ;;  %v4966_v48 = vrot.slane %v3592_v46, 2 }
 0x1c6   :  { %v3597_v53 = vsel %vm376_vm9, %v665_v49, %v653_v50  ;;  %717 = vrot.lane.b32.xlu0 %v3561_v29, %s3208_s21  ;;  %v854_v39 = vsel %vm232_vm2, %v852_v38, %v853_v37  ;;  %v2929_v50 = vld [vmem:[%s4954_s3 + $0x1] ss:$0 sm:$0xff]  ;;  %vm2317_vm9 = vcmask 1041409  }
 0x1c7   :  { %698 = vrot.lane.b32.xlu1 %v3597_v53, %s3207_s17  ;;  %v3609_v22 = vsel %vm148_vm1, %v750_v33, %v4968_v47  ;;  %v3612_v56 = vmul.f32 %v2940_v25, %v3597_v53  ;;  %v3617_v57 = vsel %vm232_vm2, %v833_v51, %v4966_v48  ;;  %v3620_v58 = vmul.f32 %v2943_v31, %v3597_v53  ;;  %v2928_v33 = vld [vmem:[%s4954_s3] ss:$0 sm:$0xff] }
 0x1c8   :  { %v769_v25 = vrot.slane %v3561_v29, 1  ;;  %v773_v32 = vrot.slane %v3597_v53, 1  ;;  %v856_v41 = vrot.slane %v3597_v53, 2  ;;  %v389_v47 = vmul.f32 %v2928_v33, %v3515_v61 }
 0x1c9   :  { %v4967_v0 = vrot.slane %v3612_v56, 1  ;;  %v4965_v4 = vrot.slane %v3620_v58, 2 }
 0x1ca   :  { %721 = vrot.lane.b32.xlu0 %v3576_v40, %s3208_s21  ;;  %v771_v31 = vsel %vm148_vm1, %v769_v25, %v770_v28  ;;  %v774_v36 = vsel %vm148_vm1, %v772_v35, %v773_v32  ;;  %v857_v14 = vsel %vm232_vm2, %v855_v42, %v856_v41 }
 0x1cb   :  { %719 = vrot.lane.b32.xlu1 %v3581_v43, %s3208_s21  ;;  %v3633_v8 = vsel %vm148_vm1, %v753_v62, %v4967_v0  ;;  %v3638_v10 = vsel %vm232_vm2, %v836_v2, %v4965_v4 }
 0x1ce   :  { %482 = vrot.lane.b32.xlu0 %v478_v30, %s3207_s17 }
 0x1cf   :  { %723 = vrot.lane.b32.xlu1 %v3597_v53, %s3208_s21 }
 0x1d2   :  { %486 = vrot.lane.b32.xlu0 %v481_v15, %s3207_s17 }
 0x1d3   :  { %484 = vrot.lane.b32.xlu1 %v477_v60, %s3207_s17 }
 0x1d6   :  { %507 = vrot.lane.b32.xlu0 %v478_v30, %s3208_s21 }
 0x1d7   :  { %488 = vrot.lane.b32.xlu1 %v480_v11, %s3207_s17 }
 0x1da   :  { %511 = vrot.lane.b32.xlu0 %v481_v15, %s3208_s21 }
 0x1db   :  { %509 = vrot.lane.b32.xlu1 %v477_v60, %s3208_s21  ;;  %v386_v60 = vmul.f32 %v2928_v33, %v3478_v45 }
 0x1de   :  { %565 = vrot.lane.b32.xlu0 %v561_v20, %s3207_s17 }
 0x1df   :  { %513 = vrot.lane.b32.xlu1 %v480_v11, %s3208_s21  ;;  %v388_v11 = vmul.f32 %v2928_v33, %v3493_v54 }
 0x1e2   :  { %569 = vrot.lane.b32.xlu0 %v564_v27, %s3207_s17 }
 0x1e3   :  { %567 = vrot.lane.b32.xlu1 %v560_v16, %s3207_s17 }
 0x1e6   :  { %590 = vrot.lane.b32.xlu0 %v561_v20, %s3208_s21 }
 0x1e7   :  { %571 = vrot.lane.b32.xlu1 %v563_v21, %s3207_s17 }
 0x1ea   :  { %594 = vrot.lane.b32.xlu0 %v564_v27, %s3208_s21 }
 0x1eb   :  { %592 = vrot.lane.b32.xlu1 %v560_v16, %s3208_s21 }
 0x1ee   :  { %775 = vrot.lane.b32.xlu0 %v771_v31, %s3207_s17 }
 0x1ef   :  { %596 = vrot.lane.b32.xlu1 %v563_v21, %s3208_s21 }
 0x1f2   :  { %779 = vrot.lane.b32.xlu0 %v774_v36, %s3207_s17 }
 0x1f3   :  { %777 = vrot.lane.b32.xlu1 %v770_v28, %s3207_s17 }
 0x1f6   :  { %800 = vrot.lane.b32.xlu0 %v771_v31, %s3208_s21 }
 0x1f7   :  { %781 = vrot.lane.b32.xlu1 %v773_v32, %s3207_s17 }
 0x1fa   :  { %804 = vrot.lane.b32.xlu0 %v774_v36, %s3208_s21 }
 0x1fb   :  { %802 = vrot.lane.b32.xlu1 %v770_v28, %s3208_s21 }
 0x1fe   :  { %858 = vrot.lane.b32.xlu0 %v854_v39, %s3207_s17 }
 0x1ff   :  { %806 = vrot.lane.b32.xlu1 %v773_v32, %s3208_s21 }
 0x202   :  { %862 = vrot.lane.b32.xlu0 %v857_v14, %s3207_s17 }
 0x203   :  { %860 = vrot.lane.b32.xlu1 %v853_v37, %s3207_s17 }
 0x206   :  { %883 = vrot.lane.b32.xlu0 %v854_v39, %s3208_s21 }
 0x207   :  { %864 = vrot.lane.b32.xlu1 %v856_v41, %s3207_s17 }
 0x20a   :  { %887 = vrot.lane.b32.xlu0 %v857_v14, %s3208_s21 }
 0x20b   :  { %885 = vrot.lane.b32.xlu1 %v853_v37, %s3208_s21 }
 0x20f   :  { %889 = vrot.lane.b32.xlu1 %v856_v41, %s3208_s21 }
 0x210   :  { %v400_v49 = vpop.permute.xlu0 %399 }
 0x211   :  { %v411_v13 = vmul.f32 %v2929_v50, %v400_v49  ;;  %v2933_v49 = vld [vmem:[%s4954_s3 + $0x5] ss:$0 sm:$0xff] }
 0x213   :  { %v415_v2 = vadd.f32 %v411_v13, %v386_v60 }
 0x214   :  { %v404_v51 = vpop.permute.xlu0 %403 }
 0x215   :  { %v413_v5 = vmul.f32 %v2929_v50, %v404_v51  ;;  %v402_v21 = vpop.permute.xlu1 %401 }
 0x217   :  { %v417_v16 = vadd.f32 %v413_v5, %v388_v11  ;;  %v412_v5 = vmul.f32 %v2929_v50, %v402_v21  ;;  %v387_v11 = vmul.f32 %v2928_v33, %v3498_v52 }
 0x218   :  { %v425_v62 = vpop.permute.xlu0 %424 }
 0x219   :  { %v436_v30 = vmul.f32 %v2930_v17, %v425_v62  ;;  %v406_v28 = vpop.permute.xlu1 %405  ;;  %v416_v4 = vadd.f32 %v412_v5, %v387_v11 }
 0x21a   :  { %v414_v48 = vmul.f32 %v2929_v50, %v406_v28 }
 0x21b   :  { %v440_v12 = vadd.f32 %v436_v30, %v415_v2 }
 0x21c   :  { %v429_v15 = vpop.permute.xlu0 %428 }
 0x21d   :  { %v438_v19 = vmul.f32 %v2930_v17, %v429_v15  ;;  %v467_v20 = vadd.f32 %v3527_v1, %v440_v12  ;;  %v427_v25 = vpop.permute.xlu1 %426 }
 0x21e   :  { %v437_v12 = vmul.f32 %v2930_v17, %v427_v25 }
 0x21f   :  { %v442_v26 = vadd.f32 %v438_v19, %v417_v16 }
 0x221   :  { %v469_v27 = vadd.f32 %v3549_v6, %v442_v26  ;;  %v431_v45 = vpop.permute.xlu1 %430  ;;  %v2932_v6 = vld [vmem:[%s4954_s3 + $0x4] ss:$0 sm:$0xff] }
 0x230   :  { %v3709_v31 = vpop.permute.xlu0 %692 }
 0x234   :  { %v3711_v32 = vpop.permute.xlu0 %696 }
 0x235   :  { %v3713_v35 = vpop.permute.xlu1 %694 }
 0x238   :  { %v3715_v54 = vpop.permute.xlu0 %717 }
 0x239   :  { %v3717_v36 = vpop.permute.xlu1 %698 }
 0x23c   :  { %v3719_v37 = vpop.permute.xlu0 %721 }
 0x23d   :  { %v3721_v1 = vpop.permute.xlu1 %719 }
 0x240   :  { %v483_v38 = vpop.permute.xlu0 %482 }
 0x241   :  { %v3723_v39 = vpop.permute.xlu1 %723  ;;  %v494_v42 = vmul.f32 %v2932_v6, %v483_v38 }
 0x243   :  { %v498_v13 = vadd.f32 %v494_v42, %v467_v20  ;;  %v441_v20 = vadd.f32 %v437_v12, %v416_v4 }
 0x244   :  { %v487_v41 = vpop.permute.xlu0 %486 }
 0x245   :  { %v485_v14 = vpop.permute.xlu1 %484  ;;  %v496_v60 = vmul.f32 %v2932_v6, %v487_v41  ;;  %v439_v41 = vmul.f32 %v2930_v17, %v431_v45 }
 0x246   :  { %v495_v52 = vmul.f32 %v2932_v6, %v485_v14 }
 0x247   :  { %v500_v16 = vadd.f32 %v496_v60, %v469_v27  ;;  %v2935_v27 = vld [vmem:[%s4954_s3 + $0x7] ss:$0 sm:$0xff] }
 0x248   :  { %v508_v51 = vpop.permute.xlu0 %507 }
 0x249   :  { %v489_v62 = vpop.permute.xlu1 %488  ;;  %v519_v2 = vmul.f32 %v2933_v49, %v508_v51 }
 0x24a   :  { %v497_v33 = vmul.f32 %v2932_v6, %v489_v62  ;;  %v2938_v6 = vld [vmem:[%s4954_s3 + $0xa] ss:$0 sm:$0xff] }
 0x24b   :  { %v523_v30 = vadd.f32 %v519_v2, %v498_v13  ;;  %v418_v13 = vadd.f32 %v414_v48, %v389_v47 }
 0x24c   :  { %v512_v15 = vpop.permute.xlu0 %511 }
 0x24d   :  { %v510_v19 = vpop.permute.xlu1 %509  ;;  %v521_v26 = vmul.f32 %v2933_v49, %v512_v15  ;;  %v550_v38 = vadd.f32 %v3535_v23, %v523_v30  ;;  %v443_v25 = vadd.f32 %v439_v41, %v418_v13  ;;  %v468_v23 = vadd.f32 %v458_v59, %v441_v20 }
 0x24e   :  { %v520_v50 = vmul.f32 %v2933_v49, %v510_v19  ;;  %v704_v15 = vmul.f32 %v2938_v6, %v3709_v31  ;;  %v677_v13 = vmul.f32 %v2937_v34, %v3576_v40 }
 0x24f   :  { %v525_v0 = vadd.f32 %v521_v26, %v500_v16  ;;  %v499_v4 = vadd.f32 %v495_v52, %v468_v23  ;;  %v470_v47 = vadd.f32 %v461_v7, %v443_v25 }
 0x250   :  { %v566_v42 = vpop.permute.xlu0 %565 }
 0x251   :  { %v514_v51 = vpop.permute.xlu1 %513  ;;  %v552_v21 = vadd.f32 %v3554_v24, %v525_v0  ;;  %v577_v60 = vmul.f32 %v2935_v27, %v566_v42  ;;  %v2936_v24 = vld [vmem:[%s4954_s3 + $0x8] ss:$0 sm:$0xff]  ;;  %v524_v48 = vadd.f32 %v520_v50, %v499_v4  ;;  %v501_v62 = vadd.f32 %v497_v33, %v470_v47 }
 0x252   :  { %v522_v0 = vmul.f32 %v2933_v49, %v514_v51  ;;  %v2939_v49 = vld [vmem:[%s4954_s3 + $0xb] ss:$0 sm:$0xff]  ;;  %v678_v33 = vmul.f32 %v2937_v34, %v3597_v53 }
 0x253   :  { %v581_v17 = vadd.f32 %v577_v60, %v550_v38  ;;  %v551_v11 = vadd.f32 %v541_v63, %v524_v48  ;;  %v729_v29 = vmul.f32 %v2939_v49, %v3715_v54  ;;  %v676_v63 = vmul.f32 %v2937_v34, %v3581_v43 }
 0x254   :  { %v570_v28 = vpop.permute.xlu0 %569  ;;  %v526_v30 = vadd.f32 %v522_v0, %v501_v62  ;;  %v731_v40 = vmul.f32 %v2939_v49, %v3719_v37  ;;  %v732_v53 = vmul.f32 %v2939_v49, %v3723_v39 }
 0x255   :  { %v568_v61 = vpop.permute.xlu1 %567  ;;  %v579_v45 = vmul.f32 %v2935_v27, %v570_v28 }
 0x256   :  { %v578_v5 = vmul.f32 %v2935_v27, %v568_v61  ;;  %v553_v55 = vadd.f32 %v544_v9, %v526_v30  ;;  %v730_v9 = vmul.f32 %v2939_v49, %v3721_v1 }
 0x257   :  { %v583_v16 = vadd.f32 %v579_v45, %v552_v21  ;;  %v706_v21 = vmul.f32 %v2938_v6, %v3711_v32  ;;  %v2941_v32 = vld [vmem:[%s4954_s3 + $0xd] ss:$0 sm:$0xff]  ;;  %v5006_v45 = vrot.slane %v3588_v44, 1 }
 0x258   :  { %v591_v59 = vpop.permute.xlu0 %590  ;;  %v582_v20 = vadd.f32 %v578_v5, %v551_v11  ;;  %v5007_v11 = vrot.slane %v3612_v56, 1  ;;  %v2944_v56 = vld [vmem:[%s4954_s3 + $0x10] ss:$0 sm:$0xff] }
 0x259   :  { %v572_v14 = vpop.permute.xlu1 %571  ;;  %v602_v2 = vmul.f32 %v2936_v24, %v591_v59 }
 0x25a   :  { %v580_v41 = vmul.f32 %v2935_v27, %v572_v14  ;;  %v705_v27 = vmul.f32 %v2938_v6, %v3713_v35 }
 0x25b   :  { %v606_v7 = vadd.f32 %v602_v2, %v581_v17 }
 0x25c   :  { %v595_v12 = vpop.permute.xlu0 %594  ;;  %v584_v60 = vadd.f32 %v580_v41, %v553_v55 }
 0x25d   :  { %v679_v19 = vadd.f32 %v675_v18, %v606_v7  ;;  %v593_v26 = vpop.permute.xlu1 %592  ;;  %v604_v38 = vmul.f32 %v2936_v24, %v595_v12 }
 0x25e   :  { %v603_v42 = vmul.f32 %v2936_v24, %v593_v26 }
 0x25f   :  { %v708_v51 = vadd.f32 %v704_v15, %v679_v19  ;;  %v608_v52 = vadd.f32 %v604_v38, %v583_v16 }
 0x260   :  { %v607_v25 = vadd.f32 %v603_v42, %v582_v20  ;;  %v776_v31 = vpop.permute.xlu0 %775 }
 0x261   :  { %v681_v23 = vadd.f32 %v677_v13, %v608_v52  ;;  %v597_v50 = vpop.permute.xlu1 %596  ;;  %v733_v28 = vadd.f32 %v729_v29, %v708_v51  ;;  %v787_v1 = vmul.f32 %v2941_v32, %v776_v31  ;;  %v5008_v52 = vrot.slane %v3592_v46, 2  ;;  %v2946_v46 = vld [vmem:[%s4955_s4] ss:$0 sm:$0xff]  ;;  %s3216_s4 = smov 22  }
 0x262   :  { %v680_v54 = vadd.f32 %v676_v63, %v607_v25  ;;  %v605_v61 = vmul.f32 %v2936_v24, %v597_v50  ;;  %v707_v24 = vmul.f32 %v2938_v6, %v3717_v36 }
 0x263   :  { %v710_v4 = vadd.f32 %v706_v21, %v681_v23  ;;  %v760_v3 = vadd.f32 %v3609_v22, %v733_v28  ;;  %v2942_v22 = vld [vmem:[%s4954_s3 + $0xe] ss:$0 sm:$0xff]  ;;  %v5009_v21 = vrot.slane %v3620_v58, 2 }
 0x264   :  { %v709_v43 = vadd.f32 %v705_v27, %v680_v54  ;;  %v609_v47 = vadd.f32 %v605_v61, %v584_v60  ;;  %v780_v48 = vpop.permute.xlu0 %779 }
 0x265   :  { %v778_v35 = vpop.permute.xlu1 %777  ;;  %v735_v0 = vadd.f32 %v731_v40, %v710_v4  ;;  %v791_v62 = vadd.f32 %v787_v1, %v760_v3  ;;  %v789_v6 = vmul.f32 %v2941_v32, %v780_v48 }
 0x266   :  { %v682_v59 = vadd.f32 %v678_v33, %v609_v47  ;;  %v734_v37 = vadd.f32 %v730_v9, %v709_v43  ;;  %v788_v30 = vmul.f32 %v2941_v32, %v778_v35 }
 0x267   :  { %v762_v17 = vadd.f32 %v3633_v8, %v735_v0 }
 0x268   :  { %v711_v34 = vadd.f32 %v707_v24, %v682_v59  ;;  %v761_v14 = vadd.f32 %v5006_v45, %v734_v37  ;;  %v801_v2 = vpop.permute.xlu0 %800 }
 0x269   :  { %v782_v5 = vpop.permute.xlu1 %781  ;;  %v812_v18 = vmul.f32 %v2942_v22, %v801_v2  ;;  %v793_v16 = vadd.f32 %v789_v6, %v762_v17 }
 0x26a   :  { %v736_v36 = vadd.f32 %v732_v53, %v711_v34  ;;  %v792_v49 = vadd.f32 %v788_v30, %v761_v14  ;;  %v790_v38 = vmul.f32 %v2941_v32, %v782_v5 }
 0x26b   :  { %v816_v7 = vadd.f32 %v812_v18, %v791_v62 }
 0x26c   :  { %v763_v12 = vadd.f32 %v5007_v11, %v736_v36  ;;  %v805_v15 = vpop.permute.xlu0 %804 }
 0x26d   :  { %v803_v8 = vpop.permute.xlu1 %802  ;;  %v814_v19 = vmul.f32 %v2942_v22, %v805_v15  ;;  %v843_v39 = vadd.f32 %v3617_v57, %v816_v7 }
 0x26e   :  { %v813_v44 = vmul.f32 %v2942_v22, %v803_v8  ;;  %v794_v51 = vadd.f32 %v790_v38, %v763_v12 }
 0x26f   :  { %v818_v26 = vadd.f32 %v814_v19, %v793_v16 }
 0x270   :  { %v817_v20 = vadd.f32 %v813_v44, %v792_v49  ;;  %v859_v41 = vpop.permute.xlu0 %858 }
 0x271   :  { %v807_v42 = vpop.permute.xlu1 %806  ;;  %v845_v29 = vadd.f32 %v3638_v10, %v818_v26  ;;  %v870_v25 = vmul.f32 %v2944_v56, %v859_v41  ;;  %v2945_v10 = vld [vmem:[%s4954_s3 + $0x11] ss:$0 sm:$0xff]  ;;  %s3215_s3 = smov 11  }
 0x272   :  { %v815_v13 = vmul.f32 %v2942_v22, %v807_v42  ;;  %v844_v55 = vadd.f32 %v5008_v52, %v817_v20 }
 0x273   :  { %v874_v28 = vadd.f32 %v870_v25, %v843_v39 }
 0x274   :  { %v819_v63 = vadd.f32 %v815_v13, %v794_v51  ;;  %v863_v57 = vpop.permute.xlu0 %862 }
 0x275   :  { %v861_v31 = vpop.permute.xlu1 %860  ;;  %v872_v27 = vmul.f32 %v2944_v56, %v863_v57 }
 0x276   :  { %v846_v23 = vadd.f32 %v5009_v21, %v819_v63  ;;  %v871_v61 = vmul.f32 %v2944_v56, %v861_v31 }
 0x277   :  { %v876_v3 = vadd.f32 %v872_v27, %v845_v29 }
 0x278   :  { %v884_v50 = vpop.permute.xlu0 %883  ;;  %v875_v33 = vadd.f32 %v871_v61, %v844_v55 }
 0x279   :  { %v865_v60 = vpop.permute.xlu1 %864  ;;  %v895_v54 = vmul.f32 %v2945_v10, %v884_v50 }
 0x27a   :  { %v873_v47 = vmul.f32 %v2944_v56, %v865_v60 }
 0x27b   :  { %v899_v40 = vadd.f32 %v895_v54, %v874_v28 }
 0x27c   :  { %v888_v4 = vpop.permute.xlu0 %887  ;;  %v877_v22 = vadd.f32 %v873_v47, %v846_v23  ;;  %v2950_v47 = vld [vmem:[%s4956_s5 + $0x3] ss:$0 sm:$0xff] }
 0x27d   :  { %v910_v9 = vadd.f32 %v2946_v46, %v899_v40  ;;  %v886_v58 = vpop.permute.xlu1 %885  ;;  %v897_v43 = vmul.f32 %v2945_v10, %v888_v4 }
 0x27e   :  { %v896_v32 = vmul.f32 %v2945_v10, %v886_v58 }
 0x27f   :  { %v901_v48 = vadd.f32 %v897_v43, %v876_v3  ;;  %vm914_vm10 = vcmp.gt.f32.partialorder %v910_v9, 0.0  ;;  %v918_v35 = vmul.f32 0.01, %v910_v9 }
 0x280   :  { %v900_v0 = vadd.f32 %v896_v32, %v875_v33 }
 0x281   :  { %v912_v24 = vadd.f32 %v2946_v46, %v901_v48  ;;  %v890_v59 = vpop.permute.xlu1 %889  ;;  %v922_v37 = vsel %vm914_vm10, %v910_v9, %v918_v35  ;;  %vm2361_vm10 = vcmask 515072  }
 0x282   :  { %v911_v1 = vadd.f32 %v2946_v46, %v900_v0  ;;  %v898_v17 = vmul.f32 %v2945_v10, %v890_v59  ;;  %930 = vrot.lane.b32.xlu0 %v922_v37, %s3207_s17  ;;  %v2953_v59 = vld [vmem:[%s4956_s5 + $0x6] ss:$0 sm:$0xff] }
 0x283   :  { %vm916_vm11 = vcmp.gt.f32.partialorder %v912_v24, 0.0  ;;  %v920_v53 = vmul.f32 0.01, %v912_v24 }
 0x284   :  { %v902_v34 = vadd.f32 %v898_v17, %v877_v22  ;;  %vm915_vm12 = vcmp.gt.f32.partialorder %v911_v1, 0.0  ;;  %v919_v45 = vmul.f32 0.01, %v911_v1 }
 0x285   :  { %v924_v14 = vsel %vm916_vm11, %v912_v24, %v920_v53  ;;  %vm2367_vm11 = vcmask 1014784  }
 0x286   :  { %v913_v2 = vadd.f32 %v2946_v46, %v902_v34  ;;  %v923_v62 = vsel %vm915_vm12, %v911_v1, %v919_v45  ;;  %934 = vrot.lane.b32.xlu0 %v924_v14, %s3207_s17  ;;  %vm2363_vm12 = vcmask 1031168  }
 0x287   :  { %932 = vrot.lane.b32.xlu1 %v923_v62, %s3207_s17 }
 0x288   :  { %vm917_vm13 = vcmp.gt.f32.partialorder %v913_v2, 0.0  ;;  %v921_v5 = vmul.f32 0.01, %v913_v2 }
 0x28a   :  { %v925_v18 = vsel %vm917_vm13, %v913_v2, %v921_v5  ;;  %vm2369_vm13 = vcmask 482304  }
 0x28b   :  { %936 = vrot.lane.b32.xlu1 %v925_v18, %s3207_s17 }
 0x2f4   :  { %v931_v36 = vpop.permute.xlu0 %930 }
 0x2f5   :  { %v942_v6 = vmax.f32 %v922_v37, %v931_v36 }
 0x2f7   :  { %v950_v12 = vrot.slane %v942_v6, 1 }
 0x2f8   :  { %v935_v30 = vpop.permute.xlu0 %934 }
 0x2f9   :  { %v933_v7 = vpop.permute.xlu1 %932  ;;  %v944_v16 = vmax.f32 %v924_v14, %v935_v30 }
 0x2fa   :  { %v943_v11 = vmax.f32 %v923_v62, %v933_v7 }
 0x2fb   :  { %v953_v26 = vrot.slane %v944_v16, 1 }
 0x2fc   :  { %v951_v15 = vrot.slane %v943_v11, 1 }
 0x2fd   :  { %v937_v8 = vpop.permute.xlu1 %936 }
 0x2fe   :  { %v952_v19 = vsel %vm148_vm1, %v950_v12, %v951_v15  ;;  %v3802_v39 = vmax.f32 %v943_v11, %v951_v15  ;;  %v945_v49 = vmax.f32 %v925_v18, %v937_v8 }
 0x2ff   :  { %v3804_v44 = vmax.f32 %v942_v6, %v952_v19 }
 0x300   :  { %v954_v38 = vrot.slane %v945_v49, 1  ;;  %970 = vrot.lane.b32.xlu1 %v3802_v39, %s3215_s3 }
 0x301   :  { %968 = vrot.lane.b32.xlu0 %v3804_v44, %s3215_s3 }
 0x302   :  { %v955_v20 = vsel %vm148_vm1, %v953_v26, %v954_v38  ;;  %v3809_v41 = vmax.f32 %v945_v49, %v954_v38 }
 0x303   :  { %v3811_v42 = vmax.f32 %v944_v16, %v955_v20 }
 0x304   :  { %974 = vrot.lane.b32.xlu1 %v3809_v41, %s3215_s3 }
 0x305   :  { %972 = vrot.lane.b32.xlu0 %v3811_v42, %s3215_s3 }
 0x308   :  { %982 = vrot.lane.b32.xlu1 %v3802_v39, %s3216_s4 }
 0x309   :  { %980 = vrot.lane.b32.xlu0 %v3804_v44, %s3216_s4 }
 0x30c   :  { %986 = vrot.lane.b32.xlu1 %v3809_v41, %s3216_s4 }
 0x30d   :  { %984 = vrot.lane.b32.xlu0 %v3811_v42, %s3216_s4 }
 0x310   :  { %994 = vrot.lane.b32.xlu1 %v3802_v39, %s3217_s15 }
 0x311   :  { %992 = vrot.lane.b32.xlu0 %v3804_v44, %s3217_s15 }
 0x314   :  { %998 = vrot.lane.b32.xlu1 %v3809_v41, %s3217_s15 }
 0x315   :  { %996 = vrot.lane.b32.xlu0 %v3811_v42, %s3217_s15  ;;  %s3233_s15 = smov 108  }
 0x318   :  { %1006 = vrot.lane.b32.xlu1 %v3802_v39, %s3218_s16 }
 0x319   :  { %1004 = vrot.lane.b32.xlu0 %v3804_v44, %s3218_s16 }
 0x31c   :  { %1010 = vrot.lane.b32.xlu1 %v3809_v41, %s3218_s16 }
 0x31d   :  { %1008 = vrot.lane.b32.xlu0 %v3811_v42, %s3218_s16  ;;  %s3234_s16 = smov 119  }
 0x320   :  { %1018 = vrot.lane.b32.xlu1 %v3802_v39, %s3219_s18 }
 0x321   :  { %1016 = vrot.lane.b32.xlu0 %v3804_v44, %s3219_s18 }
 0x324   :  { %1022 = vrot.lane.b32.xlu1 %v3809_v41, %s3219_s18 }
 0x325   :  { %1020 = vrot.lane.b32.xlu0 %v3811_v42, %s3219_s18  ;;  %s3235_s18 = smov 2  }
 0x328   :  { %1284 = vrot.lane.b32.xlu1 %v3802_v39, %s3220_s19 }
 0x329   :  { %1282 = vrot.lane.b32.xlu0 %v3804_v44, %s3220_s19 }
 0x32c   :  { %1288 = vrot.lane.b32.xlu1 %v3809_v41, %s3220_s19 }
 0x32d   :  { %1286 = vrot.lane.b32.xlu0 %v3811_v42, %s3220_s19  ;;  %s3236_s19 = smov 13  }
 0x330   :  { %1296 = vrot.lane.b32.xlu1 %v3802_v39, %s3221_s0 }
 0x331   :  { %1294 = vrot.lane.b32.xlu0 %v3804_v44, %s3221_s0 }
 0x334   :  { %1300 = vrot.lane.b32.xlu1 %v3809_v41, %s3221_s0 }
 0x335   :  { %1298 = vrot.lane.b32.xlu0 %v3811_v42, %s3221_s0 }
 0x338   :  { %1308 = vrot.lane.b32.xlu1 %v3802_v39, %s3222_s20 }
 0x339   :  { %1306 = vrot.lane.b32.xlu0 %v3804_v44, %s3222_s20 }
 0x33c   :  { %1312 = vrot.lane.b32.xlu1 %v3809_v41, %s3222_s20 }
 0x33d   :  { %1310 = vrot.lane.b32.xlu0 %v3811_v42, %s3222_s20 }
 0x340   :  { %1320 = vrot.lane.b32.xlu1 %v3802_v39, %s3223_s22 }
 0x341   :  { %1318 = vrot.lane.b32.xlu0 %v3804_v44, %s3223_s22 }
 0x344   :  { %1324 = vrot.lane.b32.xlu1 %v3809_v41, %s3223_s22 }
 0x345   :  { %1322 = vrot.lane.b32.xlu0 %v3811_v42, %s3223_s22 }
 0x348   :  { %1332 = vrot.lane.b32.xlu1 %v3802_v39, %s3224_s1 }
 0x349   :  { %1330 = vrot.lane.b32.xlu0 %v3804_v44, %s3224_s1 }
 0x34c   :  { %1336 = vrot.lane.b32.xlu1 %v3809_v41, %s3224_s1 }
 0x34d   :  { %1334 = vrot.lane.b32.xlu0 %v3811_v42, %s3224_s1 }
 0x350   :  { %1344 = vrot.lane.b32.xlu1 %v3802_v39, %s3225_s2 }
 0x351   :  { %1342 = vrot.lane.b32.xlu0 %v3804_v44, %s3225_s2 }
 0x354   :  { %1348 = vrot.lane.b32.xlu1 %v3809_v41, %s3225_s2 }
 0x355   :  { %1346 = vrot.lane.b32.xlu0 %v3811_v42, %s3225_s2 }
 0x358   :  { %1609 = vrot.lane.b32.xlu1 %v3802_v39, %s3226_s23 }
 0x359   :  { %1607 = vrot.lane.b32.xlu0 %v3804_v44, %s3226_s23 }
 0x35c   :  { %1613 = vrot.lane.b32.xlu1 %v3809_v41, %s3226_s23 }
 0x35d   :  { %1611 = vrot.lane.b32.xlu0 %v3811_v42, %s3226_s23 }
 0x360   :  { %1621 = vrot.lane.b32.xlu1 %v3802_v39, %s3227_s24 }
 0x361   :  { %1619 = vrot.lane.b32.xlu0 %v3804_v44, %s3227_s24 }
 0x364   :  { %1625 = vrot.lane.b32.xlu1 %v3809_v41, %s3227_s24 }
 0x365   :  { %1623 = vrot.lane.b32.xlu0 %v3811_v42, %s3227_s24 }
 0x368   :  { %1633 = vrot.lane.b32.xlu1 %v3802_v39, %s3228_s25 }
 0x369   :  { %1631 = vrot.lane.b32.xlu0 %v3804_v44, %s3228_s25 }
 0x36c   :  { %1637 = vrot.lane.b32.xlu1 %v3809_v41, %s3228_s25 }
 0x36d   :  { %1635 = vrot.lane.b32.xlu0 %v3811_v42, %s3228_s25 }
 0x370   :  { %1645 = vrot.lane.b32.xlu1 %v3802_v39, %s3229_s26 }
 0x371   :  { %1643 = vrot.lane.b32.xlu0 %v3804_v44, %s3229_s26 }
 0x372   :  { %v971_v29 = vpop.permute.xlu1 %970 }
 0x373   :  { %v969_v51 = vpop.permute.xlu0 %968  ;;  %v1030_v27 = vsel %vm1028_vm14, %v3802_v39, %v971_v29 }
 0x374   :  { %1649 = vrot.lane.b32.xlu1 %v3809_v41, %s3229_s26  ;;  %v1029_v54 = vsel %vm1028_vm14, %v3804_v44, %v969_v51 }
 0x375   :  { %1647 = vrot.lane.b32.xlu0 %v3811_v42, %s3229_s26 }
 0x376   :  { %v975_v13 = vpop.permute.xlu1 %974 }
 0x377   :  { %v973_v56 = vpop.permute.xlu0 %972  ;;  %v1032_v46 = vsel %vm1028_vm14, %v3809_v41, %v975_v13 }
 0x378   :  { %1657 = vrot.lane.b32.xlu1 %v3802_v39, %s3206_s29  ;;  %v1031_v3 = vsel %vm1028_vm14, %v3811_v42, %v973_v56 }
 0x379   :  { %1655 = vrot.lane.b32.xlu0 %v3804_v44, %s3206_s29 }
 0x37a   :  { %v983_v52 = vpop.permute.xlu1 %982 }
 0x37b   :  { %v981_v55 = vpop.permute.xlu0 %980  ;;  %v1035_v61 = vsel %vm1033_vm15, %v1030_v27, %v983_v52 }
 0x37c   :  { %1661 = vrot.lane.b32.xlu1 %v3809_v41, %s3206_s29  ;;  %v1034_v40 = vsel %vm1033_vm15, %v1029_v54, %v981_v55 }
 0x37d   :  { %1659 = vrot.lane.b32.xlu0 %v3811_v42, %s3206_s29  ;;  %s3232_s29 = smov 97  }
 0x37e   :  { %v987_v63 = vpop.permute.xlu1 %986 }
 0x37f   :  { %v985_v57 = vpop.permute.xlu0 %984  ;;  %v1037_v9 = vsel %vm1033_vm15, %v1032_v46, %v987_v63 }
 0x380   :  { %1669 = vrot.lane.b32.xlu1 %v3802_v39, %s3230_s27  ;;  %v1036_v32 = vsel %vm1033_vm15, %v1031_v3, %v985_v57 }
 0x381   :  { %1667 = vrot.lane.b32.xlu0 %v3804_v44, %s3230_s27 }
 0x382   :  { %v995_v25 = vpop.permute.xlu1 %994 }
 0x383   :  { %v993_v31 = vpop.permute.xlu0 %992  ;;  %v1040_v4 = vsel %vm1038_vm0, %v1035_v61, %v995_v25 }
 0x384   :  { %1673 = vrot.lane.b32.xlu1 %v3809_v41, %s3230_s27  ;;  %v1039_v58 = vsel %vm1038_vm0, %v1034_v40, %v993_v31 }
 0x385   :  { %1671 = vrot.lane.b32.xlu0 %v3811_v42, %s3230_s27 }
 0x386   :  { %v999_v21 = vpop.permute.xlu1 %998 }
 0x387   :  { %v997_v23 = vpop.permute.xlu0 %996  ;;  %v1042_v48 = vsel %vm1038_vm0, %v1037_v9, %v999_v21 }
 0x388   :  { %1934 = vrot.lane.b32.xlu1 %v3802_v39, %s3231_s28  ;;  %v1041_v37 = vsel %vm1038_vm0, %v1036_v32, %v997_v23 }
 0x389   :  { %1932 = vrot.lane.b32.xlu0 %v3804_v44, %s3231_s28 }
 0x38a   :  { %v1007_v10 = vpop.permute.xlu1 %1006 }
 0x38b   :  { %v1005_v50 = vpop.permute.xlu0 %1004  ;;  %v1045_v43 = vsel %vm1043_vm3, %v1040_v4, %v1007_v10 }
 0x38c   :  { %1938 = vrot.lane.b32.xlu1 %v3809_v41, %s3231_s28  ;;  %v1044_v35 = vsel %vm1043_vm3, %v1039_v58, %v1005_v50 }
 0x38d   :  { %1936 = vrot.lane.b32.xlu0 %v3811_v42, %s3231_s28 }
 0x38e   :  { %v1011_v28 = vpop.permute.xlu1 %1010 }
 0x38f   :  { %v1009_v60 = vpop.permute.xlu0 %1008  ;;  %v1047_v53 = vsel %vm1043_vm3, %v1042_v48, %v1011_v28 }
 0x390   :  { %1946 = vrot.lane.b32.xlu1 %v3802_v39, %s3232_s29  ;;  %v1046_v2 = vsel %vm1043_vm3, %v1041_v37, %v1009_v60 }
 0x391   :  { %1944 = vrot.lane.b32.xlu0 %v3804_v44, %s3232_s29 }
 0x392   :  { %v1019_v33 = vpop.permute.xlu1 %1018 }
 0x393   :  { %v3914_v0 = vsel %vm1048_vm4, %v1045_v43, %v1019_v33  ;;  %v1017_v24 = vpop.permute.xlu0 %1016 }
 0x394   :  { %v3921_v22 = vsel %vm1048_vm4, %v1044_v35, %v1017_v24  ;;  %1950 = vrot.lane.b32.xlu1 %v3809_v41, %s3232_s29  ;;  %v3925_v1 = vrot.slane %v3914_v0, 1  ;;  %v3928_v17 = vrot.slane %v3914_v0, 2  ;;  %v3935_v14 = vmul.f32 %v2950_v47, %v3914_v0 }
 0x395   :  { %1948 = vrot.lane.b32.xlu0 %v3811_v42, %s3232_s29  ;;  %v1148_v34 = vrot.slane %v3921_v22, 1  ;;  %v1231_v45 = vrot.slane %v3921_v22, 2  ;;  %v1121_v5 = vmul.f32 %v2950_v47, %v3921_v22  ;;  %v3940_v18 = vmul.f32 %v2953_v59, %v3914_v0 }
 0x396   :  { %v1023_v62 = vpop.permute.xlu1 %1022  ;;  %v1204_v36 = vmul.f32 %v2953_v59, %v3921_v22  ;;  %v4975_v12 = vrot.slane %v3935_v14, 1 }
 0x397   :  { %5010 = vst [vmem:[#allocation3_spill] sm:$0xff] %v3940_v18  ;;  %v3944_v6 = vsel %vm1048_vm4, %v1047_v53, %v1023_v62  ;;  %v1021_v7 = vpop.permute.xlu0 %1020  ;;  %v3948_v30 = vsel %vm148_vm1, %v1148_v34, %v3925_v1  ;;  %v3952_v11 = vsel %vm232_vm2, %v1231_v45, %v3928_v17  ;;  %v1129_v26 = vrot.slane %v1121_v5, 1 }
 0x398   :  { %v3956_v15 = vsel %vm1048_vm4, %v1046_v2, %v1021_v7  ;;  %1958 = vrot.lane.b32.xlu1 %v3802_v39, %s3233_s15  ;;  %v3960_v16 = vrot.slane %v3944_v6, 1  ;;  %v3963_v8 = vrot.slane %v3944_v6, 2  ;;  %v3969_v20 = vmul.f32 %v2950_v47, %v3944_v6  ;;  %v2959_v7 = vld [vmem:[%s4956_s5 + $0xc] ss:$0 sm:$0xff] }
 0x399   :  { %1956 = vrot.lane.b32.xlu0 %v3804_v44, %s3233_s15  ;;  %v1151_v19 = vrot.slane %v3956_v15, 1  ;;  %v1234_v49 = vrot.slane %v3956_v15, 2  ;;  %v1123_v29 = vmul.f32 %v2950_v47, %v3956_v15  ;;  %v4973_v51 = vrot.slane %v3940_v18, 2 }
 0x39a   :  { %v1285_v38 = vpop.permute.xlu1 %1284  ;;  %v1212_v13 = vrot.slane %v1204_v36, 2  ;;  %v3984_v63 = vsel %vm148_vm1, %v1129_v26, %v4975_v12  ;;  %v3987_v57 = vmul.f32 %v2953_v59, %v3944_v6  ;;  %v4976_v25 = vrot.slane %v3969_v20, 1 }
 0x39b   :  { %v1283_v56 = vpop.permute.xlu0 %1282  ;;  %v3975_v52 = vsel %vm148_vm1, %v1151_v19, %v3960_v16  ;;  %v3979_v55 = vsel %vm232_vm2, %v1234_v49, %v3963_v8  ;;  %v1132_v31 = vrot.slane %v1123_v29, 1  ;;  %v1206_v23 = vmul.f32 %v2953_v59, %v3956_v15 }
 0x39c   :  { %1962 = vrot.lane.b32.xlu1 %v3809_v41, %s3233_s15  ;;  %v3994_v21 = vsel %vm232_vm2, %v1212_v13, %v4973_v51  ;;  %v4974_v10 = vrot.slane %v3987_v57, 2  ;;  %v2962_v13 = vld [vmem:[%s4956_s5 + $0xf] ss:$0 sm:$0xff] }
 0x39d   :  { %1960 = vrot.lane.b32.xlu0 %v3811_v42, %s3233_s15  ;;  %v4002_v28 = vsel %vm148_vm1, %v1132_v31, %v4976_v25  ;;  %v1215_v27 = vrot.slane %v1206_v23, 2 }
 0x39e   :  { %v1289_v50 = vpop.permute.xlu1 %1288 }
 0x39f   :  { %v1287_v60 = vpop.permute.xlu0 %1286  ;;  %v4008_v54 = vsel %vm232_vm2, %v1215_v27, %v4974_v10 }
 0x3a0   :  { %1970 = vrot.lane.b32.xlu1 %v3802_v39, %s3234_s16  ;;  %5011 = vst [vmem:[#allocation4_spill] sm:$0xff] %v4008_v54 }
 0x3a1   :  { %1968 = vrot.lane.b32.xlu0 %v3804_v44, %s3234_s16 }
 0x3a2   :  { %v1297_v61 = vpop.permute.xlu1 %1296 }
 0x3a3   :  { %v1295_v46 = vpop.permute.xlu0 %1294 }
 0x3a4   :  { %1974 = vrot.lane.b32.xlu1 %v3809_v41, %s3234_s16 }
 0x3a5   :  { %1972 = vrot.lane.b32.xlu0 %v3811_v42, %s3234_s16 }
 0x3a6   :  { %v1301_v40 = vpop.permute.xlu1 %1300 }
 0x3a7   :  { %v1299_v4 = vpop.permute.xlu0 %1298  ;;  %v1357_v37 = vsel %vm1028_vm14, %v1289_v50, %v1301_v40 }
 0x3a8   :  { %1982 = vrot.lane.b32.xlu1 %v3802_v39, %s3235_s18  ;;  %v1356_v45 = vsel %vm1028_vm14, %v1287_v60, %v1299_v4 }
 0x3a9   :  { %1980 = vrot.lane.b32.xlu0 %v3804_v44, %s3235_s18 }
 0x3aa   :  { %v1309_v3 = vpop.permute.xlu1 %1308 }
 0x3ab   :  { %v1307_v9 = vpop.permute.xlu0 %1306 }
 0x3ac   :  { %1986 = vrot.lane.b32.xlu1 %v3809_v41, %s3235_s18 }
 0x3ad   :  { %1984 = vrot.lane.b32.xlu0 %v3811_v42, %s3235_s18 }
 0x3ae   :  { %v1313_v58 = vpop.permute.xlu1 %1312 }
 0x3af   :  { %v1311_v43 = vpop.permute.xlu0 %1310  ;;  %v1361_v2 = vsel %vm1033_vm15, %v1357_v37, %v1313_v58 }
 0x3b0   :  { %1994 = vrot.lane.b32.xlu1 %v3802_v39, %s3236_s19  ;;  %v1360_v19 = vsel %vm1033_vm15, %v1356_v45, %v1311_v43 }
 0x3b1   :  { %1992 = vrot.lane.b32.xlu0 %v3804_v44, %s3236_s19  ;;  %v1355_v44 = vsel %vm1028_vm14, %v1285_v38, %v1297_v61 }
 0x3b2   :  { %v1321_v33 = vpop.permute.xlu1 %1320  ;;  %v1359_v59 = vsel %vm1033_vm15, %v1355_v44, %v1309_v3 }
 0x3b3   :  { %v1319_v47 = vpop.permute.xlu0 %1318  ;;  %v1363_v34 = vsel %vm1038_vm0, %v1359_v59, %v1321_v33 }
 0x3b4   :  { %1998 = vrot.lane.b32.xlu1 %v3809_v41, %s3236_s19 }
 0x3b5   :  { %1996 = vrot.lane.b32.xlu0 %v3811_v42, %s3236_s19  ;;  %v1354_v42 = vsel %vm1028_vm14, %v1283_v56, %v1295_v46 }
 0x3b6   :  { %v1325_v32 = vpop.permute.xlu1 %1324  ;;  %v1358_v53 = vsel %vm1033_vm15, %v1354_v42, %v1307_v9 }
 0x3b7   :  { %v1323_v48 = vpop.permute.xlu0 %1322  ;;  %v1362_v62 = vsel %vm1038_vm0, %v1358_v53, %v1319_v47  ;;  %v1365_v49 = vsel %vm1038_vm0, %v1361_v2, %v1325_v32 }
 0x3b8   :  { %1073 = vrot.lane.b32.xlu1 %v3914_v0, %s3207_s17  ;;  %v1364_v56 = vsel %vm1038_vm0, %v1360_v19, %v1323_v48 }
 0x3b9   :  { %1071 = vrot.lane.b32.xlu0 %v3921_v22, %s3207_s17 }
 0x3ba   :  { %v1333_v35 = vpop.permute.xlu1 %1332 }
 0x3bb   :  { %v1331_v24 = vpop.permute.xlu0 %1330  ;;  %v1367_v5 = vsel %vm1043_vm3, %v1363_v34, %v1333_v35 }
 0x3bc   :  { %1077 = vrot.lane.b32.xlu1 %v3944_v6, %s3207_s17  ;;  %v1366_v26 = vsel %vm1043_vm3, %v1362_v62, %v1331_v24 }
 0x3bd   :  { %1075 = vrot.lane.b32.xlu0 %v3956_v15, %s3207_s17 }
 0x3be   :  { %v1337_v39 = vpop.permute.xlu1 %1336 }
 0x3bf   :  { %v1335_v41 = vpop.permute.xlu0 %1334  ;;  %v1369_v27 = vsel %vm1043_vm3, %v1365_v49, %v1337_v39 }
 0x3c0   :  { %1098 = vrot.lane.b32.xlu1 %v3914_v0, %s3208_s21  ;;  %v1368_v40 = vsel %vm1043_vm3, %v1364_v56, %v1335_v41 }
 0x3c1   :  { %1096 = vrot.lane.b32.xlu0 %v3921_v22, %s3208_s21 }
 0x3c2   :  { %v1345_v36 = vpop.permute.xlu1 %1344 }
 0x3c3   :  { %v4050_v38 = vsel %vm1048_vm4, %v1367_v5, %v1345_v36  ;;  %v1343_v29 = vpop.permute.xlu0 %1342 }
 0x3c4   :  { %5012 = vst [vmem:[#allocation5_spill] sm:$0xff] %v4050_v38  ;;  %v4057_v31 = vsel %vm1048_vm4, %v1366_v26, %v1343_v29  ;;  %1102 = vrot.lane.b32.xlu1 %v3944_v6, %s3208_s21  ;;  %v4062_v23 = vrot.slane %v4050_v38, 1  ;;  %v4065_v50 = vrot.slane %v4050_v38, 2  ;;  %v4073_v46 = vmul.f32 %v2959_v7, %v4050_v38 }
 0x3c5   :  { %5013 = vst [vmem:[#allocation6_spill] sm:$0xff] %v4057_v31  ;;  %1100 = vrot.lane.b32.xlu0 %v3956_v15, %s3208_s21  ;;  %v1473_v60 = vrot.slane %v4057_v31, 1  ;;  %v1556_v61 = vrot.slane %v4057_v31, 2  ;;  %v1446_v3 = vmul.f32 %v2959_v7, %v4057_v31  ;;  %v4078_v9 = vmul.f32 %v2962_v13, %v4050_v38 }
 0x3c6   :  { %5014 = vst [vmem:[#allocation7_spill] sm:$0xff] %v4073_v46  ;;  %v1349_v4 = vpop.permute.xlu1 %1348  ;;  %v1529_v58 = vmul.f32 %v2962_v13, %v4057_v31  ;;  %v4972_v48 = vrot.slane %v4073_v46, 1 }
 0x3c7   :  { %5015 = vst [vmem:[#allocation8_spill] sm:$0xff] %v4078_v9  ;;  %v4082_v43 = vsel %vm1048_vm4, %v1369_v27, %v1349_v4  ;;  %v1347_v33 = vpop.permute.xlu0 %1346  ;;  %v4086_v47 = vsel %vm148_vm1, %v1473_v60, %v4062_v23  ;;  %v4090_v32 = vsel %vm232_vm2, %v1556_v61, %v4065_v50  ;;  %v1454_v42 = vrot.slane %v1446_v3, 1 }
 0x3c8   :  { %5016 = vst [vmem:[#allocation9_spill] sm:$0xff] %v4082_v43  ;;  %v4094_v35 = vsel %vm1048_vm4, %v1368_v40, %v1347_v33  ;;  %1398 = vrot.lane.b32.xlu1 %v4050_v38, %s3207_s17  ;;  %v4099_v24 = vrot.slane %v4082_v43, 1  ;;  %v4102_v39 = vrot.slane %v4082_v43, 2  ;;  %v4109_v37 = vmul.f32 %v2959_v7, %v4082_v43 }
 0x3c9   :  { %5017 = vst [vmem:[#allocation10_spill] sm:$0xff] %v4094_v35  ;;  %1396 = vrot.lane.b32.xlu0 %v4057_v31, %s3207_s17  ;;  %v1476_v44 = vrot.slane %v4094_v35, 1  ;;  %v1559_v41 = vrot.slane %v4094_v35, 2  ;;  %v1448_v53 = vmul.f32 %v2959_v7, %v4094_v35  ;;  %v4970_v34 = vrot.slane %v4078_v9, 2 }
 0x3ca   :  { %v1610_v59 = vpop.permute.xlu1 %1609  ;;  %5018 = vst [vmem:[#allocation11_spill] sm:$0xff] %v4109_v37  ;;  %v1537_v45 = vrot.slane %v1529_v58, 2  ;;  %v4124_v36 = vsel %vm148_vm1, %v1454_v42, %v4972_v48  ;;  %v4127_v19 = vmul.f32 %v2962_v13, %v4082_v43  ;;  %v4971_v7 = vrot.slane %v4109_v37, 1 }
 0x3cb   :  { %v1608_v2 = vpop.permute.xlu0 %1607  ;;  %v4115_v62 = vsel %vm148_vm1, %v1476_v44, %v4099_v24  ;;  %v4119_v5 = vsel %vm232_vm2, %v1559_v41, %v4102_v39  ;;  %5019 = vst [vmem:[#allocation12_spill] sm:$0xff] %v4124_v36  ;;  %v1457_v49 = vrot.slane %v1448_v53, 1  ;;  %v1531_v29 = vmul.f32 %v2962_v13, %v4094_v35 }
 0x3cc   :  { %5020 = vst [vmem:[#allocation13_spill] sm:$0xff] %v4127_v19  ;;  %1402 = vrot.lane.b32.xlu1 %v4082_v43, %s3207_s17  ;;  %v4135_v26 = vsel %vm232_vm2, %v1537_v45, %v4970_v34  ;;  %v4969_v56 = vrot.slane %v4127_v19, 2 }
 0x3cd   :  { %5021 = vst [vmem:[#allocation14_spill] sm:$0xff] %v4135_v26  ;;  %1400 = vrot.lane.b32.xlu0 %v4094_v35, %s3207_s17  ;;  %v4144_v60 = vsel %vm148_vm1, %v1457_v49, %v4971_v7  ;;  %v1540_v61 = vrot.slane %v1531_v29, 2 }
 0x3ce   :  { %v1614_v27 = vpop.permute.xlu1 %1613  ;;  %5022 = vst [vmem:[#allocation15_spill] sm:$0xff] %v4144_v60 }
 0x3cf   :  { %v1612_v40 = vpop.permute.xlu0 %1611  ;;  %v4151_v13 = vsel %vm232_vm2, %v1540_v61, %v4969_v56 }
 0x3d0   :  { %1423 = vrot.lane.b32.xlu1 %v4050_v38, %s3208_s21  ;;  %5023 = vst [vmem:[#allocation16_spill] sm:$0xff] %v4151_v13 }
 0x3d1   :  { %1421 = vrot.lane.b32.xlu0 %v4057_v31, %s3208_s21 }
 0x3d2   :  { %v1622_v4 = vpop.permute.xlu1 %1621 }
 0x3d3   :  { %v1620_v3 = vpop.permute.xlu0 %1619  ;;  %v1680_v48 = vsel %vm1028_vm14, %v1610_v59, %v1622_v4 }
 0x3d4   :  { %1427 = vrot.lane.b32.xlu1 %v4082_v43, %s3208_s21  ;;  %v1679_v10 = vsel %vm1028_vm14, %v1608_v2, %v1620_v3  ;;  %v2968_v2 = vld [vmem:[%s4956_s5 + $0x15] ss:$0 sm:$0xff] }
 0x3d5   :  { %1425 = vrot.lane.b32.xlu0 %v4094_v35, %s3208_s21 }
 0x3d6   :  { %v1626_v58 = vpop.permute.xlu1 %1625 }
 0x3d7   :  { %v1624_v33 = vpop.permute.xlu0 %1623  ;;  %v1682_v25 = vsel %vm1028_vm14, %v1614_v27, %v1626_v58 }
 0x3d8   :  { %v1681_v26 = vsel %vm1028_vm14, %v1612_v40, %v1624_v33 }
 0x3da   :  { %v1634_v44 = vpop.permute.xlu1 %1633 }
 0x3db   :  { %v1632_v41 = vpop.permute.xlu0 %1631  ;;  %v1684_v12 = vsel %vm1033_vm15, %v1680_v48, %v1634_v44 }
 0x3dc   :  { %v1683_v13 = vsel %vm1033_vm15, %v1679_v10, %v1632_v41 }
 0x3de   :  { %v1638_v42 = vpop.permute.xlu1 %1637 }
 0x3df   :  { %v1636_v53 = vpop.permute.xlu0 %1635  ;;  %v1686_v9 = vsel %vm1033_vm15, %v1682_v25, %v1638_v42  ;;  %v2971_v25 = vld [vmem:[%s4956_s5 + $0x18] ss:$0 sm:$0xff] }
 0x3e0   :  { %v1685_v48 = vsel %vm1033_vm15, %v1681_v26, %v1636_v53 }
 0x3e2   :  { %v1646_v45 = vpop.permute.xlu1 %1645 }
 0x3e3   :  { %v1644_v49 = vpop.permute.xlu0 %1643  ;;  %v1688_v19 = vsel %vm1038_vm0, %v1684_v12, %v1646_v45 }
 0x3e4   :  { %v1687_v60 = vsel %vm1038_vm0, %v1683_v13, %v1644_v49 }
 0x3e6   :  { %v1650_v29 = vpop.permute.xlu1 %1649 }
 0x3e7   :  { %v1648_v61 = vpop.permute.xlu0 %1647  ;;  %v1690_v27 = vsel %vm1038_vm0, %v1686_v9, %v1650_v29 }
 0x3ea   :  { %v1658_v56 = vpop.permute.xlu1 %1657 }
 0x3eb   :  { %v1656_v34 = vpop.permute.xlu0 %1655  ;;  %v1692_v37 = vsel %vm1043_vm3, %v1688_v19, %v1658_v56  ;;  %v1689_v19 = vsel %vm1038_vm0, %v1685_v48, %v1648_v61 }
 0x3ec   :  { %v1691_v10 = vsel %vm1043_vm3, %v1687_v60, %v1656_v34 }
 0x3ee   :  { %v1662_v7 = vpop.permute.xlu1 %1661 }
 0x3ef   :  { %v1660_v51 = vpop.permute.xlu0 %1659 }
 0x3f0   :  { %v1693_v4 = vsel %vm1043_vm3, %v1689_v19, %v1660_v51 }
 0x3f2   :  { %v1670_v59 = vpop.permute.xlu1 %1669 }
 0x3f3   :  { %v4176_v12 = vsel %vm1048_vm4, %v1692_v37, %v1670_v59  ;;  %v1668_v40 = vpop.permute.xlu0 %1667  ;;  %v1694_v37 = vsel %vm1043_vm3, %v1690_v27, %v1662_v7 }
 0x3f4   :  { %5024 = vst [vmem:[#allocation17_spill] sm:$0xff] %v4176_v12  ;;  %v4183_v56 = vsel %vm1048_vm4, %v1691_v10, %v1668_v40  ;;  %1723 = vrot.lane.b32.xlu1 %v4176_v12, %s3207_s17  ;;  %v4188_v9 = vrot.slane %v4176_v12, 1  ;;  %v4191_v34 = vrot.slane %v4176_v12, 2  ;;  %v4199_v13 = vmul.f32 %v2968_v2, %v4176_v12 }
 0x3f5   :  { %5025 = vst [vmem:[#allocation18_spill] sm:$0xff] %v4183_v56  ;;  %1721 = vrot.lane.b32.xlu0 %v4183_v56, %s3207_s17  ;;  %v1798_v26 = vrot.slane %v4183_v56, 1  ;;  %v1881_v60 = vrot.slane %v4183_v56, 2  ;;  %v1771_v58 = vmul.f32 %v2968_v2, %v4183_v56  ;;  %v4204_v33 = vmul.f32 %v2971_v25, %v4176_v12 }
 0x3f6   :  { %5026 = vst [vmem:[#allocation19_spill] sm:$0xff] %v4199_v13  ;;  %v1674_v3 = vpop.permute.xlu1 %1673  ;;  %v1854_v7 = vmul.f32 %v2971_v25, %v4183_v56  ;;  %v4980_v51 = vrot.slane %v4199_v13, 1 }
 0x3f7   :  { %5027 = vst [vmem:[#allocation20_spill] sm:$0xff] %v4204_v33  ;;  %v4208_v44 = vsel %vm1048_vm4, %v1694_v37, %v1674_v3  ;;  %v1672_v41 = vpop.permute.xlu0 %1671  ;;  %v4212_v42 = vsel %vm148_vm1, %v1798_v26, %v4188_v9  ;;  %v4216_v53 = vsel %vm232_vm2, %v1881_v60, %v4191_v34  ;;  %v1779_v48 = vrot.slane %v1771_v58, 1 }
 0x3f8   :  { %5028 = vst [vmem:[#allocation21_spill] sm:$0xff] %v4208_v44  ;;  %v4220_v45 = vsel %vm1048_vm4, %v1693_v4, %v1672_v41  ;;  %1727 = vrot.lane.b32.xlu1 %v4208_v44, %s3207_s17  ;;  %v4225_v49 = vrot.slane %v4208_v44, 1  ;;  %v4228_v29 = vrot.slane %v4208_v44, 2  ;;  %v4235_v10 = vmul.f32 %v2968_v2, %v4208_v44 }
 0x3f9   :  { %5029 = vst [vmem:[#allocation22_spill] sm:$0xff] %v4220_v45  ;;  %1725 = vrot.lane.b32.xlu0 %v4220_v45, %s3207_s17  ;;  %v1801_v61 = vrot.slane %v4220_v45, 1  ;;  %v1884_v59 = vrot.slane %v4220_v45, 2  ;;  %v1773_v40 = vmul.f32 %v2968_v2, %v4220_v45  ;;  %v4981_v19 = vrot.slane %v4204_v33, 2 }
 0x3fa   :  { %v1935_v27 = vpop.permute.xlu1 %1934  ;;  %5030 = vst [vmem:[#allocation23_spill] sm:$0xff] %v4235_v10  ;;  %v1862_v37 = vrot.slane %v1854_v7, 2  ;;  %v4250_v3 = vsel %vm148_vm1, %v1779_v48, %v4980_v51  ;;  %v4253_v58 = vmul.f32 %v2971_v25, %v4208_v44  ;;  %v4984_v2 = vrot.slane %v4235_v10, 1 }
 0x3fb   :  { %v1933_v26 = vpop.permute.xlu0 %1932  ;;  %v4241_v60 = vsel %vm148_vm1, %v1801_v61, %v4225_v49  ;;  %v4245_v4 = vsel %vm232_vm2, %v1884_v59, %v4228_v29  ;;  %5031 = vst [vmem:[#allocation24_spill] sm:$0xff] %v4250_v3  ;;  %v1782_v7 = vrot.slane %v1773_v40, 1  ;;  %v1856_v61 = vmul.f32 %v2971_v25, %v4220_v45 }
 0x3fc   :  { %5032 = vst [vmem:[#allocation25_spill] sm:$0xff] %v4253_v58  ;;  %1748 = vrot.lane.b32.xlu1 %v4176_v12, %s3208_s21  ;;  %v4261_v41 = vsel %vm232_vm2, %v1862_v37, %v4981_v19  ;;  %v4990_v59 = vrot.slane %v4253_v58, 2 }
 0x3fd   :  { %5033 = vst [vmem:[#allocation26_spill] sm:$0xff] %v4261_v41  ;;  %1746 = vrot.lane.b32.xlu0 %v4183_v56, %s3208_s21  ;;  %v4270_v51 = vsel %vm148_vm1, %v1782_v7, %v4984_v2  ;;  %v1865_v3 = vrot.slane %v1856_v61, 2 }
 0x3fe   :  { %v1939_v48 = vpop.permute.xlu1 %1938  ;;  %5034 = vst [vmem:[#allocation27_spill] sm:$0xff] %v4270_v51 }
 0x3ff   :  { %v1937_v40 = vpop.permute.xlu0 %1936  ;;  %v4277_v25 = vsel %vm232_vm2, %v1865_v3, %v4990_v59 }
 0x400   :  { %1752 = vrot.lane.b32.xlu1 %v4208_v44, %s3208_s21  ;;  %5035 = vst [vmem:[#allocation28_spill] sm:$0xff] %v4277_v25 }
 0x401   :  { %1750 = vrot.lane.b32.xlu0 %v4220_v45, %s3208_s21 }
 0x402   :  { %v1947_v37 = vpop.permute.xlu1 %1946 }
 0x403   :  { %v1945_v19 = vpop.permute.xlu0 %1944  ;;  %v2005_v3 = vsel %vm1028_vm14, %v1935_v27, %v1947_v37 }
 0x404   :  { %v2004_v25 = vsel %vm1028_vm14, %v1933_v26, %v1945_v19  ;;  %v2977_v19 = vld [vmem:[%s4956_s5 + $0x1e] ss:$0 sm:$0xff] }
 0x406   :  { %v1951_v41 = vpop.permute.xlu1 %1950 }
 0x407   :  { %v1949_v33 = vpop.permute.xlu0 %1948  ;;  %v2007_v46 = vsel %vm1028_vm14, %v1939_v48, %v1951_v41 }
 0x408   :  { %v2006_v31 = vsel %vm1028_vm14, %v1937_v40, %v1949_v33  ;;  %vm2371_vm14 = vcmask 998400  }
 0x40a   :  { %v1959_v10 = vpop.permute.xlu1 %1958 }
 0x40b   :  { %v1957_v7 = vpop.permute.xlu0 %1956  ;;  %v2009_v45 = vsel %vm1033_vm15, %v2005_v3, %v1959_v10 }
 0x40c   :  { %v2008_v35 = vsel %vm1033_vm15, %v2004_v25, %v1957_v7 }
 0x40e   :  { %v1963_v2 = vpop.permute.xlu1 %1962 }
 0x40f   :  { %v1961_v61 = vpop.permute.xlu0 %1960  ;;  %v2011_v38 = vsel %vm1033_vm15, %v2007_v46, %v1963_v2  ;;  %v2980_v46 = vld [vmem:[%s4956_s5 + $0x21] ss:$0 sm:$0xff] }
 0x410   :  { %v2010_v10 = vsel %vm1033_vm15, %v2006_v31, %v1961_v61  ;;  %vm2373_vm15 = vcmask 465920  }
 0x412   :  { %v1971_v51 = vpop.permute.xlu1 %1970 }
 0x413   :  { %v1969_v13 = vpop.permute.xlu0 %1968  ;;  %v2013_v43 = vsel %vm1038_vm0, %v2009_v45, %v1971_v51 }
 0x414   :  { %v2012_v18 = vsel %vm1038_vm0, %v2008_v35, %v1969_v13 }
 0x416   :  { %v1975_v56 = vpop.permute.xlu1 %1974 }
 0x417   :  { %v1973_v44 = vpop.permute.xlu0 %1972  ;;  %v2015_v26 = vsel %vm1038_vm0, %v2011_v38, %v1975_v56 }
 0x41a   :  { %v1983_v12 = vpop.permute.xlu1 %1982 }
 0x41b   :  { %v1981_v58 = vpop.permute.xlu0 %1980  ;;  %v2017_v54 = vsel %vm1043_vm3, %v2013_v43, %v1983_v12  ;;  %v2014_v43 = vsel %vm1038_vm0, %v2010_v10, %v1973_v44  ;;  %vm2638_vm0 = vcmask 982016  }
 0x41c   :  { %v2016_v41 = vsel %vm1043_vm3, %v2012_v18, %v1981_v58 }
 0x41e   :  { %v1987_v36 = vpop.permute.xlu1 %1986 }
 0x41f   :  { %v1985_v59 = vpop.permute.xlu0 %1984 }
 0x420   :  { %v2018_v13 = vsel %vm1043_vm3, %v2014_v43, %v1985_v59 }
 0x422   :  { %v1995_v27 = vpop.permute.xlu1 %1994 }
 0x423   :  { %v4298_v51 = vsel %vm1048_vm4, %v2017_v54, %v1995_v27  ;;  %v1993_v33 = vpop.permute.xlu0 %1992  ;;  %v2019_v54 = vsel %vm1043_vm3, %v2015_v26, %v1987_v36  ;;  %vm3243_vm3 = vmmov 0  }
 0x424   :  { %v4305_v35 = vsel %vm1048_vm4, %v2016_v41, %v1993_v33  ;;  %2048 = vrot.lane.b32.xlu1 %v4298_v51, %s3207_s17  ;;  %v4310_v38 = vrot.slane %v4298_v51, 1  ;;  %v4313_v18 = vrot.slane %v4298_v51, 2  ;;  %v4321_v56 = vmul.f32 %v2977_v19, %v4298_v51 }
 0x425   :  { %2046 = vrot.lane.b32.xlu0 %v4305_v35, %s3207_s17  ;;  %v2123_v31 = vrot.slane %v4305_v35, 1  ;;  %v2206_v12 = vrot.slane %v4305_v35, 2  ;;  %v2096_v45 = vmul.f32 %v2977_v19, %v4305_v35  ;;  %v4326_v58 = vmul.f32 %v2980_v46, %v4298_v51 }
 0x426   :  { %5036 = vst [vmem:[#allocation29_spill] sm:$0xff] %v4321_v56  ;;  %v1999_v44 = vpop.permute.xlu1 %1998  ;;  %v2179_v36 = vmul.f32 %v2980_v46, %v4305_v35  ;;  %v4999_v59 = vrot.slane %v4321_v56, 1 }
 0x427   :  { %5037 = vst [vmem:[#allocation30_spill] sm:$0xff] %v4326_v58  ;;  %v4330_v2 = vsel %vm1048_vm4, %v2019_v54, %v1999_v44  ;;  %v1997_v48 = vpop.permute.xlu0 %1996  ;;  %v4334_v40 = vsel %vm148_vm1, %v2123_v31, %v4310_v38  ;;  %v4338_v25 = vsel %vm232_vm2, %v2206_v12, %v4313_v18  ;;  %v2104_v10 = vrot.slane %v2096_v45, 1 }
 0x428   :  { %v4342_v37 = vsel %vm1048_vm4, %v2018_v13, %v1997_v48  ;;  %2052 = vrot.lane.b32.xlu1 %v4330_v2, %s3207_s17  ;;  %v4347_v7 = vrot.slane %v4330_v2, 1  ;;  %v4350_v61 = vrot.slane %v4330_v2, 2  ;;  %v4359_v41 = vmul.f32 %v2977_v19, %v4330_v2  ;;  %v4387_v48 = vld [vmem:[%s4956_s5 + $0x1] ss:$0 sm:$0xff] }
 0x429   :  { %2050 = vrot.lane.b32.xlu0 %v4342_v37, %s3207_s17  ;;  %v2126_v3 = vrot.slane %v4342_v37, 1  ;;  %v2209_v27 = vrot.slane %v4342_v37, 2  ;;  %v2098_v33 = vmul.f32 %v2977_v19, %v4342_v37  ;;  %v4998_v43 = vrot.slane %v4326_v58, 2 }
 0x42a   :  { %v4356_v26 = vpop.permute.xlu1 %1073  ;;  %5038 = vst [vmem:[#allocation31_spill] sm:$0xff] %v4359_v41  ;;  %v2187_v54 = vrot.slane %v2179_v36, 2  ;;  %v4374_v44 = vsel %vm148_vm1, %v2104_v10, %v4999_v59  ;;  %v5001_v19 = vrot.slane %v4359_v41, 1 }
 0x42b   :  { %v1072_v31 = vpop.permute.xlu0 %1071  ;;  %v4365_v12 = vsel %vm148_vm1, %v2126_v3, %v4347_v7  ;;  %v4369_v13 = vsel %vm232_vm2, %v2209_v27, %v4350_v61  ;;  %5039 = vst [vmem:[#allocation32_spill] sm:$0xff] %v4374_v44  ;;  %v2107_v45 = vrot.slane %v2098_v33, 1  ;;  %v4392_v3 = vmul.f32 %v2980_v46, %v4330_v2 }
 0x42c   :  { %2073 = vrot.lane.b32.xlu1 %v4298_v51, %s3208_s21  ;;  %v4382_v36 = vsel %vm232_vm2, %v2187_v54, %v4998_v43  ;;  %v2181_v27 = vmul.f32 %v2980_v46, %v4342_v37  ;;  %v4403_v54 = vld [vmem:[%s4956_s5] ss:$0 sm:$0xff]  ;;  %v1083_v58 = vmul.f32 %v4387_v48, %v1072_v31  ;;  %v4414_v46 = vld [vmem:[%s4956_s5 + $0x2] ss:$0 sm:$0xff] }
 0x42d   :  { %5040 = vst [vmem:[#allocation33_spill] sm:$0xff] %v4382_v36  ;;  %2071 = vrot.lane.b32.xlu0 %v4305_v35, %s3208_s21  ;;  %5041 = vst [vmem:[#allocation34_spill] sm:$0xff] %v4392_v3  ;;  %v4398_v33 = vsel %vm148_vm1, %v2107_v45, %v5001_v19  ;;  %v5004_v59 = vrot.slane %v4392_v3, 2 }
 0x42e   :  { %v1078_v10 = vpop.permute.xlu1 %1077  ;;  %5042 = vst [vmem:[#allocation35_spill] sm:$0xff] %v4398_v33  ;;  %v2190_v36 = vrot.slane %v2181_v27, 2  ;;  %v1058_v27 = vmul.f32 %v4403_v54, %v3921_v22  ;;  %v1060_v22 = vmul.f32 %v4403_v54, %v3956_v15 }
 0x42f   :  { %v1076_v43 = vpop.permute.xlu0 %1075  ;;  %v1086_v19 = vmul.f32 %v4387_v48, %v1078_v10 }
 0x430   :  { %2077 = vrot.lane.b32.xlu1 %v4330_v2, %s3208_s21  ;;  %v4419_v45 = vsel %vm232_vm2, %v2190_v36, %v5004_v59  ;;  %v1087_v41 = vadd.f32 %v1083_v58, %v1058_v27  ;;  %v1085_v44 = vmul.f32 %v4387_v48, %v1076_v43  ;;  %v1061_v36 = vmul.f32 %v4403_v54, %v3944_v6 }
 0x431   :  { %2075 = vrot.lane.b32.xlu0 %v4342_v37, %s3208_s21  ;;  %5043 = vst [vmem:[#allocation36_spill] sm:$0xff] %v4419_v45 }
 0x432   :  { %v4423_v31 = vpop.permute.xlu1 %1098  ;;  %v1090_v45 = vadd.f32 %v1086_v19, %v1061_v36  ;;  %v1089_v27 = vadd.f32 %v1085_v44, %v1060_v22 }
 0x433   :  { %v1097_v33 = vpop.permute.xlu0 %1096  ;;  %v1109_v19 = vmul.f32 %v4414_v46, %v4423_v31 }
 0x434   :  { %v1108_v56 = vmul.f32 %v4414_v46, %v1097_v33  ;;  %1156 = vrot.lane.b32.xlu1 %v3925_v1, %s3207_s17 }
 0x435   :  { %1154 = vrot.lane.b32.xlu0 %v3948_v30, %s3207_s17 }
 0x436   :  { %v1112_v59 = vadd.f32 %v1108_v56, %v1087_v41  ;;  %v1103_v10 = vpop.permute.xlu1 %1102  ;;  %v5044_v56 = vrot.slane %v3969_v20, 1 }
 0x437   :  { %v1111_v58 = vmul.f32 %v4414_v46, %v1103_v10  ;;  %v1101_v43 = vpop.permute.xlu0 %1100 }
 0x438   :  { %v1110_v33 = vmul.f32 %v4414_v46, %v1101_v43  ;;  %1160 = vrot.lane.b32.xlu1 %v3960_v16, %s3207_s17  ;;  %v4441_v6 = vadd.f32 %v3984_v63, %v1112_v59 }
 0x439   :  { %v1115_v3 = vadd.f32 %v1111_v58, %v1090_v45  ;;  %1158 = vrot.lane.b32.xlu0 %v3975_v52, %s3207_s17 }
 0x43a   :  { %v1114_v15 = vadd.f32 %v1110_v33, %v1089_v27 }
 0x43b   :  { %v4447_v41 = vadd.f32 %v5044_v56, %v1115_v3  ;;  %v2952_v3 = vld [vmem:[%s4956_s5 + $0x5] ss:$0 sm:$0xff] }
 0x43c   :  { %1181 = vrot.lane.b32.xlu1 %v3925_v1, %s3208_s21  ;;  %v4452_v44 = vadd.f32 %v4002_v28, %v1114_v15  ;;  %v4500_v1 = vpop.permute.xlu1 %1398  ;;  %v5045_v15 = vrot.slane %v3935_v14, 1 }
 0x43d   :  { %1179 = vrot.lane.b32.xlu0 %v3948_v30, %s3208_s21 }
 0x440   :  { %1185 = vrot.lane.b32.xlu1 %v3960_v16, %s3208_s21  ;;  %v4508_v30 = vpop.permute.xlu1 %1402 }
 0x441   :  { %1183 = vrot.lane.b32.xlu0 %v3975_v52, %s3208_s21 }
 0x444   :  { %1239 = vrot.lane.b32.xlu1 %v3928_v17, %s3207_s17  ;;  %v4520_v16 = vpop.permute.xlu1 %1423 }
 0x445   :  { %1237 = vrot.lane.b32.xlu0 %v3952_v11, %s3207_s17 }
 0x448   :  { %1243 = vrot.lane.b32.xlu1 %v3963_v8, %s3207_s17  ;;  %v4528_v20 = vpop.permute.xlu1 %1427 }
 0x449   :  { %1241 = vrot.lane.b32.xlu0 %v3979_v55, %s3207_s17 }
 0x44c   :  { %1264 = vrot.lane.b32.xlu1 %v3928_v17, %s3208_s21  ;;  %v4502_v17 = vpop.permute.xlu0 %1396 }
 0x44d   :  { %1262 = vrot.lane.b32.xlu0 %v3952_v11, %s3208_s21 }
 0x450   :  { %1268 = vrot.lane.b32.xlu1 %v3963_v8, %s3208_s21  ;;  %v4512_v11 = vpop.permute.xlu0 %1400 }
 0x451   :  { %1266 = vrot.lane.b32.xlu0 %v3979_v55, %s3208_s21 }
 0x454   :  { %1481 = vrot.lane.b32.xlu1 %v4062_v23, %s3207_s17  ;;  %v4522_v8 = vpop.permute.xlu0 %1421 }
 0x455   :  { %1479 = vrot.lane.b32.xlu0 %v4086_v47, %s3207_s17 }
 0x458   :  { %1485 = vrot.lane.b32.xlu1 %v4099_v24, %s3207_s17  ;;  %v4532_v52 = vpop.permute.xlu0 %1425 }
 0x459   :  { %1483 = vrot.lane.b32.xlu0 %v4115_v62, %s3207_s17 }
 0x45c   :  { %1506 = vrot.lane.b32.xlu1 %v4062_v23, %s3208_s21 }
 0x45d   :  { %1504 = vrot.lane.b32.xlu0 %v4086_v47, %s3208_s21 }
 0x460   :  { %1510 = vrot.lane.b32.xlu1 %v4099_v24, %s3208_s21 }
 0x461   :  { %1508 = vrot.lane.b32.xlu0 %v4115_v62, %s3208_s21 }
 0x464   :  { %1564 = vrot.lane.b32.xlu1 %v4065_v50, %s3207_s17 }
 0x465   :  { %1562 = vrot.lane.b32.xlu0 %v4090_v32, %s3207_s17 }
 0x466   :  { %v4536_v55 = vpop.permute.xlu1 %1723 }
 0x467   :  { %v4540_v63 = vpop.permute.xlu0 %1721 }
 0x468   :  { %1568 = vrot.lane.b32.xlu1 %v4102_v39, %s3207_s17 }
 0x469   :  { %1566 = vrot.lane.b32.xlu0 %v4119_v5, %s3207_s17 }
 0x46a   :  { %v4548_v28 = vpop.permute.xlu1 %1727 }
 0x46b   :  { %v4550_v23 = vpop.permute.xlu0 %1725 }
 0x46c   :  { %1589 = vrot.lane.b32.xlu1 %v4065_v50, %s3208_s21 }
 0x46d   :  { %1587 = vrot.lane.b32.xlu0 %v4090_v32, %s3208_s21 }
 0x46e   :  { %v4556_v50 = vpop.permute.xlu1 %1748 }
 0x46f   :  { %v4560_v47 = vpop.permute.xlu0 %1746 }
 0x470   :  { %1593 = vrot.lane.b32.xlu1 %v4102_v39, %s3208_s21 }
 0x471   :  { %1591 = vrot.lane.b32.xlu0 %v4119_v5, %s3208_s21 }
 0x472   :  { %v4568_v32 = vpop.permute.xlu1 %1752 }
 0x473   :  { %v4570_v24 = vpop.permute.xlu0 %1750 }
 0x474   :  { %1806 = vrot.lane.b32.xlu1 %v4188_v9, %s3207_s17 }
 0x475   :  { %1804 = vrot.lane.b32.xlu0 %v4212_v42, %s3207_s17 }
 0x478   :  { %1810 = vrot.lane.b32.xlu1 %v4225_v49, %s3207_s17 }
 0x479   :  { %1808 = vrot.lane.b32.xlu0 %v4241_v60, %s3207_s17 }
 0x47c   :  { %1831 = vrot.lane.b32.xlu1 %v4188_v9, %s3208_s21 }
 0x47d   :  { %1829 = vrot.lane.b32.xlu0 %v4212_v42, %s3208_s21 }
 0x480   :  { %1835 = vrot.lane.b32.xlu1 %v4225_v49, %s3208_s21 }
 0x481   :  { %1833 = vrot.lane.b32.xlu0 %v4241_v60, %s3208_s21 }
 0x484   :  { %1889 = vrot.lane.b32.xlu1 %v4191_v34, %s3207_s17 }
 0x485   :  { %1887 = vrot.lane.b32.xlu0 %v4216_v53, %s3207_s17 }
 0x488   :  { %1893 = vrot.lane.b32.xlu1 %v4228_v29, %s3207_s17 }
 0x489   :  { %1891 = vrot.lane.b32.xlu0 %v4245_v4, %s3207_s17 }
 0x48c   :  { %1914 = vrot.lane.b32.xlu1 %v4191_v34, %s3208_s21 }
 0x48d   :  { %1912 = vrot.lane.b32.xlu0 %v4216_v53, %s3208_s21 }
 0x490   :  { %1918 = vrot.lane.b32.xlu1 %v4228_v29, %s3208_s21 }
 0x491   :  { %1916 = vrot.lane.b32.xlu0 %v4245_v4, %s3208_s21  ;;  %v2951_v4 = vld [vmem:[%s4956_s5 + $0x4] ss:$0 sm:$0xff] }
 0x494   :  { %2131 = vrot.lane.b32.xlu1 %v4310_v38, %s3207_s17 }
 0x495   :  { %2129 = vrot.lane.b32.xlu0 %v4334_v40, %s3207_s17 }
 0x496   :  { %v4576_v39 = vpop.permute.xlu1 %2048 }
 0x497   :  { %v4578_v62 = vpop.permute.xlu0 %2046 }
 0x498   :  { %2135 = vrot.lane.b32.xlu1 %v4347_v7, %s3207_s17 }
 0x499   :  { %2133 = vrot.lane.b32.xlu0 %v4365_v12, %s3207_s17 }
 0x49a   :  { %v4584_v5 = vpop.permute.xlu1 %2052 }
 0x49b   :  { %v4586_v9 = vpop.permute.xlu0 %2050 }
 0x49c   :  { %2156 = vrot.lane.b32.xlu1 %v4310_v38, %s3208_s21 }
 0x49d   :  { %2154 = vrot.lane.b32.xlu0 %v4334_v40, %s3208_s21  ;;  %v1084_v40 = vmul.f32 %v4387_v48, %v4356_v26 }
 0x49e   :  { %v4592_v34 = vpop.permute.xlu1 %2073 }
 0x49f   :  { %v4594_v42 = vpop.permute.xlu0 %2071 }
 0x4a0   :  { %2160 = vrot.lane.b32.xlu1 %v4347_v7, %s3208_s21 }
 0x4a1   :  { %2158 = vrot.lane.b32.xlu0 %v4365_v12, %s3208_s21  ;;  %v1059_v12 = vmul.f32 %v4403_v54, %v3914_v0 }
 0x4a2   :  { %v4600_v53 = vpop.permute.xlu1 %2077 }
 0x4a3   :  { %v4602_v49 = vpop.permute.xlu0 %2075  ;;  %v1088_v26 = vadd.f32 %v1084_v40, %v1059_v12 }
 0x4a4   :  { %2214 = vrot.lane.b32.xlu1 %v4313_v18, %s3207_s17 }
 0x4a5   :  { %2212 = vrot.lane.b32.xlu0 %v4338_v25, %s3207_s17  ;;  %v1113_v0 = vadd.f32 %v1109_v19, %v1088_v26 }
 0x4a6   :  { %v1157_v29 = vpop.permute.xlu1 %1156 }
 0x4a7   :  { %v1155_v60 = vpop.permute.xlu0 %1154  ;;  %v1167_v46 = vmul.f32 %v2951_v4, %v1157_v29  ;;  %v1140_v56 = vadd.f32 %v5045_v15, %v1113_v0  ;;  %v5046_v29 = vrot.slane %v3987_v57, 2  ;;  %v2956_v57 = vld [vmem:[%s4956_s5 + $0x9] ss:$0 sm:$0xff]  ;;  %v2958_v15 = vld [vmem:[%s4956_s5 + $0xb] ss:$0 sm:$0xff] }
 0x4a8   :  { %2218 = vrot.lane.b32.xlu1 %v4350_v61, %s3207_s17  ;;  %v1166_v7 = vmul.f32 %v2951_v4, %v1155_v60 }
 0x4a9   :  { %2216 = vrot.lane.b32.xlu0 %v4369_v13, %s3207_s17 }
 0x4aa   :  { %v1161_v38 = vpop.permute.xlu1 %1160  ;;  %v1170_v22 = vadd.f32 %v1166_v7, %v4441_v6 }
 0x4ab   :  { %v1159_v59 = vpop.permute.xlu0 %1158  ;;  %v1169_v48 = vmul.f32 %v2951_v4, %v1161_v38 }
 0x4ac   :  { %2239 = vrot.lane.b32.xlu1 %v4313_v18, %s3208_s21  ;;  %v1168_v18 = vmul.f32 %v2951_v4, %v1159_v59 }
 0x4ad   :  { %2237 = vrot.lane.b32.xlu0 %v4338_v25, %s3208_s21  ;;  %v1173_v31 = vadd.f32 %v1169_v48, %v4447_v41  ;;  %v2954_v41 = vld [vmem:[%s4956_s5 + $0x7] ss:$0 sm:$0xff] }
 0x4ae   :  { %v1182_v45 = vpop.permute.xlu1 %1181  ;;  %v1172_v27 = vadd.f32 %v1168_v18, %v4452_v44  ;;  %v5047_v44 = vld [vmem:[#allocation4_spill] sm:$0xff] }
 0x4af   :  { %v1180_v36 = vpop.permute.xlu0 %1179 }
 0x4b0   :  { %v1191_v10 = vmul.f32 %v2952_v3, %v1180_v36  ;;  %2243 = vrot.lane.b32.xlu1 %v4350_v61, %s3208_s21  ;;  %v1192_v61 = vmul.f32 %v2952_v3, %v1182_v45  ;;  %v5048_v45 = vld [vmem:[#allocation3_spill] sm:$0xff] }
 0x4b1   :  { %2241 = vrot.lane.b32.xlu0 %v4369_v13, %s3208_s21  ;;  %v1171_v13 = vadd.f32 %v1167_v46, %v1140_v56  ;;  %v5049_v48 = vrot.slane %v5048_v45, 2  ;;  %v5051_v56 = vld [vmem:[#allocation6_spill] sm:$0xff] }
 0x4b2   :  { %v1195_v25 = vadd.f32 %v1191_v10, %v1170_v22  ;;  %v1186_v54 = vpop.permute.xlu1 %1185 }
 0x4b3   :  { %v1194_v58 = vmul.f32 %v2952_v3, %v1186_v54  ;;  %v1184_v43 = vpop.permute.xlu0 %1183  ;;  %v1196_v12 = vadd.f32 %v1192_v61, %v1171_v13  ;;  %v2957_v54 = vld [vmem:[%s4956_s5 + $0xa] ss:$0 sm:$0xff]  ;;  %v1379_v61 = vmul.f32 %v2956_v57, %v5051_v56 }
 0x4b4   :  { %v1193_v33 = vmul.f32 %v2952_v3, %v1184_v43  ;;  %v1222_v6 = vadd.f32 %v3994_v21, %v1195_v25  ;;  %v2955_v3 = vld [vmem:[%s4956_s5 + $0x8] ss:$0 sm:$0xff]  ;;  %v5050_v43 = vld [vmem:[#allocation5_spill] sm:$0xff]  ;;  %v5056_v56 = vld [vmem:[#allocation12_spill] sm:$0xff] }
 0x4b5   :  { %v1198_v60 = vadd.f32 %v1194_v58, %v1173_v31  ;;  %v1223_v36 = vadd.f32 %v5049_v48, %v1196_v12 }
 0x4b6   :  { %v1197_v38 = vadd.f32 %v1193_v33, %v1172_v27  ;;  %v1240_v40 = vpop.permute.xlu1 %1239  ;;  %v1380_v27 = vmul.f32 %v2956_v57, %v5050_v43  ;;  %v5054_v43 = vld [vmem:[#allocation7_spill] sm:$0xff] }
 0x4b7   :  { %v1238_v59 = vpop.permute.xlu0 %1237  ;;  %v1225_v4 = vadd.f32 %v5046_v29, %v1198_v60  ;;  %v1250_v19 = vmul.f32 %v2954_v41, %v1240_v40  ;;  %v1409_v40 = vmul.f32 %v2957_v54, %v4500_v1 }
 0x4b8   :  { %v1224_v7 = vadd.f32 %v5047_v44, %v1197_v38  ;;  %v1249_v26 = vmul.f32 %v2954_v41, %v1238_v59 }
 0x4b9   :  { %v1254_v18 = vadd.f32 %v1250_v19, %v1223_v36  ;;  %v1434_v19 = vmul.f32 %v2958_v15, %v4520_v16  ;;  %v1433_v36 = vmul.f32 %v2958_v15, %v4522_v8 }
 0x4ba   :  { %v1244_v21 = vpop.permute.xlu1 %1243  ;;  %v1253_v46 = vadd.f32 %v1249_v26, %v1222_v6  ;;  %v1408_v6 = vmul.f32 %v2957_v54, %v4502_v17  ;;  %v5052_v26 = vld [vmem:[#allocation9_spill] sm:$0xff] }
 0x4bb   :  { %v1242_v14 = vpop.permute.xlu0 %1241  ;;  %v1252_v10 = vmul.f32 %v2954_v41, %v1244_v21  ;;  %v1382_v45 = vmul.f32 %v2956_v57, %v5052_v26 }
 0x4bc   :  { %v1251_v31 = vmul.f32 %v2954_v41, %v1242_v14 }
 0x4bd   :  { %v1256_v13 = vadd.f32 %v1252_v10, %v1225_v4 }
 0x4be   :  { %v1265_v22 = vpop.permute.xlu1 %1264  ;;  %v1255_v41 = vadd.f32 %v1251_v31, %v1224_v7  ;;  %v1436_v31 = vmul.f32 %v2958_v15, %v4528_v20  ;;  %v2961_v20 = vld [vmem:[%s4956_s5 + $0xe] ss:$0 sm:$0xff] }
 0x4bf   :  { %v1275_v0 = vmul.f32 %v2955_v3, %v1265_v22  ;;  %v1263_v25 = vpop.permute.xlu0 %1262 }
 0x4c0   :  { %v1274_v58 = vmul.f32 %v2955_v3, %v1263_v25 }
 0x4c1   :  { %v1279_v33 = vadd.f32 %v1275_v0, %v1254_v18  ;;  %v5053_v18 = vld [vmem:[#allocation10_spill] sm:$0xff]  ;;  %v1411_v0 = vmul.f32 %v2957_v54, %v4508_v30  ;;  %v2960_v30 = vld [vmem:[%s4956_s5 + $0xd] ss:$0 sm:$0xff] }
 0x4c2   :  { %v1278_v60 = vadd.f32 %v1274_v58, %v1253_v46  ;;  %v1269_v38 = vpop.permute.xlu1 %1268  ;;  %v1381_v1 = vmul.f32 %v2956_v57, %v5053_v18 }
 0x4c3   :  { %v1384_v59 = vadd.f32 %v1380_v27, %v1279_v33  ;;  %v1277_v29 = vmul.f32 %v2955_v3, %v1269_v38  ;;  %v1267_v44 = vpop.permute.xlu0 %1266  ;;  %v5055_v27 = vrot.slane %v5054_v43, 1  ;;  %v1435_v33 = vmul.f32 %v2958_v15, %v4532_v52  ;;  %v5059_v15 = vld [vmem:[#allocation15_spill] sm:$0xff] }
 0x4c4   :  { %v1383_v12 = vadd.f32 %v1379_v61, %v1278_v60  ;;  %v1276_v21 = vmul.f32 %v2955_v3, %v1267_v44  ;;  %v1410_v3 = vmul.f32 %v2957_v54, %v4512_v11 }
 0x4c5   :  { %v1413_v14 = vadd.f32 %v1409_v40, %v1384_v59  ;;  %v1281_v48 = vadd.f32 %v1277_v29, %v1256_v13  ;;  %v5057_v13 = vld [vmem:[#allocation11_spill] sm:$0xff] }
 0x4c6   :  { %v1412_v22 = vadd.f32 %v1408_v6, %v1383_v12  ;;  %v1280_v4 = vadd.f32 %v1276_v21, %v1255_v41  ;;  %v1482_v10 = vpop.permute.xlu1 %1481  ;;  %v5058_v59 = vrot.slane %v5057_v13, 1 }
 0x4c7   :  { %v1386_v25 = vadd.f32 %v1382_v45, %v1281_v48  ;;  %v1438_v17 = vadd.f32 %v1434_v19, %v1413_v14  ;;  %v1480_v7 = vpop.permute.xlu0 %1479  ;;  %v1492_v40 = vmul.f32 %v2960_v30, %v1482_v10  ;;  %v5060_v10 = vld [vmem:[#allocation8_spill] sm:$0xff] }
 0x4c8   :  { %v1385_v46 = vadd.f32 %v1381_v1, %v1280_v4  ;;  %v1437_v16 = vadd.f32 %v1433_v36, %v1412_v22  ;;  %v1491_v52 = vmul.f32 %v2960_v30, %v1480_v7 }
 0x4c9   :  { %v1415_v58 = vadd.f32 %v1411_v0, %v1386_v25  ;;  %v1465_v8 = vadd.f32 %v5055_v27, %v1438_v17  ;;  %v5061_v0 = vrot.slane %v5060_v10, 2  ;;  %v5063_v27 = vld [vmem:[#allocation13_spill] sm:$0xff] }
 0x4ca   :  { %v1414_v57 = vadd.f32 %v1410_v3, %v1385_v46  ;;  %v1464_v61 = vadd.f32 %v5056_v56, %v1437_v16  ;;  %v1486_v60 = vpop.permute.xlu1 %1485  ;;  %v5062_v3 = vld [vmem:[#allocation14_spill] sm:$0xff] }
 0x4cb   :  { %v1440_v38 = vadd.f32 %v1436_v31, %v1415_v58  ;;  %v1484_v11 = vpop.permute.xlu0 %1483  ;;  %v1496_v41 = vadd.f32 %v1492_v40, %v1465_v8  ;;  %v1494_v26 = vmul.f32 %v2960_v30, %v1486_v60  ;;  %v5064_v8 = vrot.slane %v5063_v27, 2 }
 0x4cc   :  { %v1439_v54 = vadd.f32 %v1435_v33, %v1414_v57  ;;  %v1495_v19 = vadd.f32 %v1491_v52, %v1464_v61  ;;  %v1493_v48 = vmul.f32 %v2960_v30, %v1484_v11  ;;  %v2963_v57 = vld [vmem:[%s4956_s5 + $0x10] ss:$0 sm:$0xff] }
 0x4cd   :  { %v1467_v29 = vadd.f32 %v5058_v59, %v1440_v38  ;;  %v5065_v30 = vld [vmem:[#allocation16_spill] sm:$0xff] }
 0x4ce   :  { %v1466_v44 = vadd.f32 %v5059_v15, %v1439_v54  ;;  %v1507_v6 = vpop.permute.xlu1 %1506  ;;  %v2964_v54 = vld [vmem:[%s4956_s5 + $0x11] ss:$0 sm:$0xff]  ;;  %v2966_v15 = vld [vmem:[%s4956_s5 + $0x13] ss:$0 sm:$0xff] }
 0x4cf   :  { %v1517_v12 = vmul.f32 %v2961_v20, %v1507_v6  ;;  %v1505_v21 = vpop.permute.xlu0 %1504  ;;  %v1498_v18 = vadd.f32 %v1494_v26, %v1467_v29  ;;  %v5067_v26 = vld [vmem:[#allocation18_spill] sm:$0xff] }
 0x4d0   :  { %v1516_v14 = vmul.f32 %v2961_v20, %v1505_v21  ;;  %v1497_v17 = vadd.f32 %v1493_v48, %v1466_v44 }
 0x4d1   :  { %v1521_v45 = vadd.f32 %v1517_v12, %v1496_v41  ;;  %v5066_v12 = vld [vmem:[#allocation17_spill] sm:$0xff] }
 0x4d2   :  { %v1520_v36 = vadd.f32 %v1516_v14, %v1495_v19  ;;  %v1511_v22 = vpop.permute.xlu1 %1510  ;;  %v2967_v14 = vld [vmem:[%s4956_s5 + $0x14] ss:$0 sm:$0xff] }
 0x4d3   :  { %v1519_v1 = vmul.f32 %v2961_v20, %v1511_v22  ;;  %v1509_v4 = vpop.permute.xlu0 %1508  ;;  %v1548_v25 = vadd.f32 %v5061_v0, %v1521_v45  ;;  %v1734_v22 = vmul.f32 %v2966_v15, %v4536_v55  ;;  %v1733_v0 = vmul.f32 %v2966_v15, %v4540_v63 }
 0x4d4   :  { %v1518_v7 = vmul.f32 %v2961_v20, %v1509_v4  ;;  %v1547_v46 = vadd.f32 %v5062_v3, %v1520_v36  ;;  %v2965_v20 = vld [vmem:[%s4956_s5 + $0x12] ss:$0 sm:$0xff]  ;;  %v1759_v3 = vmul.f32 %v2967_v14, %v4556_v50 }
 0x4d5   :  { %v1523_v16 = vadd.f32 %v1519_v1, %v1498_v18  ;;  %v1705_v21 = vmul.f32 %v2965_v20, %v5066_v12  ;;  %v1704_v45 = vmul.f32 %v2965_v20, %v5067_v26  ;;  %v5073_v12 = vld [vmem:[#allocation23_spill] sm:$0xff] }
 0x4d6   :  { %v1522_v31 = vadd.f32 %v1518_v7, %v1497_v17  ;;  %v1565_v58 = vpop.permute.xlu1 %1564 }
 0x4d7   :  { %v1563_v43 = vpop.permute.xlu0 %1562  ;;  %v1550_v33 = vadd.f32 %v5064_v8, %v1523_v16  ;;  %v1575_v60 = vmul.f32 %v2963_v57, %v1565_v58  ;;  %v5068_v16 = vld [vmem:[#allocation21_spill] sm:$0xff]  ;;  %v5069_v8 = vld [vmem:[#allocation22_spill] sm:$0xff] }
 0x4d8   :  { %v1549_v56 = vadd.f32 %v5065_v30, %v1522_v31  ;;  %v1574_v11 = vmul.f32 %v2963_v57, %v1563_v43  ;;  %v1707_v31 = vmul.f32 %v2965_v20, %v5068_v16  ;;  %v1758_v43 = vmul.f32 %v2967_v14, %v4560_v47  ;;  %v5076_v16 = vld [vmem:[#allocation20_spill] sm:$0xff] }
 0x4d9   :  { %v1579_v13 = vadd.f32 %v1575_v60, %v1548_v25  ;;  %v1706_v55 = vmul.f32 %v2965_v20, %v5069_v8  ;;  %v1736_v30 = vmul.f32 %v2966_v15, %v4548_v28  ;;  %v1735_v60 = vmul.f32 %v2966_v15, %v4550_v23  ;;  %v2969_v28 = vld [vmem:[%s4956_s5 + $0x16] ss:$0 sm:$0xff]  ;;  %v5078_v8 = vld [vmem:[#allocation26_spill] sm:$0xff] }
 0x4da   :  { %v1569_v61 = vpop.permute.xlu1 %1568  ;;  %v1578_v44 = vadd.f32 %v1574_v11, %v1547_v46  ;;  %v1761_v11 = vmul.f32 %v2967_v14, %v4568_v32  ;;  %v2970_v32 = vld [vmem:[%s4956_s5 + $0x17] ss:$0 sm:$0xff] }
 0x4db   :  { %v1567_v38 = vpop.permute.xlu0 %1566  ;;  %v1577_v59 = vmul.f32 %v2963_v57, %v1569_v61 }
 0x4dc   :  { %v1576_v6 = vmul.f32 %v2963_v57, %v1567_v38 }
 0x4dd   :  { %v1581_v18 = vadd.f32 %v1577_v59, %v1550_v33  ;;  %v1760_v59 = vmul.f32 %v2967_v14, %v4570_v24  ;;  %v5075_v14 = vld [vmem:[#allocation27_spill] sm:$0xff] }
 0x4de   :  { %v1590_v40 = vpop.permute.xlu1 %1589  ;;  %v1580_v25 = vadd.f32 %v1576_v6, %v1549_v56 }
 0x4df   :  { %v1600_v29 = vmul.f32 %v2964_v54, %v1590_v40  ;;  %v1588_v52 = vpop.permute.xlu0 %1587  ;;  %v5070_v40 = vld [vmem:[#allocation19_spill] sm:$0xff] }
 0x4e0   :  { %v1599_v41 = vmul.f32 %v2964_v54, %v1588_v52 }
 0x4e1   :  { %v1604_v19 = vadd.f32 %v1600_v29, %v1579_v13  ;;  %v5071_v13 = vrot.slane %v5070_v40, 1  ;;  %v5072_v29 = vld [vmem:[#allocation24_spill] sm:$0xff] }
 0x4e2   :  { %v1603_v48 = vadd.f32 %v1599_v41, %v1578_v44  ;;  %v1594_v36 = vpop.permute.xlu1 %1593 }
 0x4e3   :  { %v1709_v1 = vadd.f32 %v1705_v21, %v1604_v19  ;;  %v1602_v4 = vmul.f32 %v2964_v54, %v1594_v36  ;;  %v1592_v10 = vpop.permute.xlu0 %1591  ;;  %v5074_v21 = vrot.slane %v5073_v12, 1 }
 0x4e4   :  { %v1708_v17 = vadd.f32 %v1704_v45, %v1603_v48  ;;  %v1601_v7 = vmul.f32 %v2964_v54, %v1592_v10 }
 0x4e5   :  { %v1738_v46 = vadd.f32 %v1734_v22, %v1709_v1  ;;  %v1606_v58 = vadd.f32 %v1602_v4, %v1581_v18 }
 0x4e6   :  { %v1737_v27 = vadd.f32 %v1733_v0, %v1708_v17  ;;  %v1605_v33 = vadd.f32 %v1601_v7, %v1580_v25  ;;  %v1807_v57 = vpop.permute.xlu1 %1806 }
 0x4e7   :  { %v1711_v61 = vadd.f32 %v1707_v31, %v1606_v58  ;;  %v1763_v63 = vadd.f32 %v1759_v3, %v1738_v46  ;;  %v1805_v56 = vpop.permute.xlu0 %1804  ;;  %v1817_v41 = vmul.f32 %v2969_v28, %v1807_v57  ;;  %v5077_v31 = vrot.slane %v5076_v16, 2 }
 0x4e8   :  { %v1710_v38 = vadd.f32 %v1706_v55, %v1605_v33  ;;  %v1762_v50 = vadd.f32 %v1758_v43, %v1737_v27  ;;  %v1816_v24 = vmul.f32 %v2969_v28, %v1805_v56 }
 0x4e9   :  { %v1740_v54 = vadd.f32 %v1736_v30, %v1711_v61  ;;  %v1790_v47 = vadd.f32 %v5071_v13, %v1763_v63  ;;  %v5079_v63 = vld [vmem:[#allocation25_spill] sm:$0xff] }
 0x4ea   :  { %v1739_v20 = vadd.f32 %v1735_v60, %v1710_v38  ;;  %v1789_v52 = vadd.f32 %v5072_v29, %v1762_v50  ;;  %v1811_v44 = vpop.permute.xlu1 %1810  ;;  %v5080_v56 = vrot.slane %v5079_v63, 2  ;;  %v2972_v38 = vld [vmem:[%s4956_s5 + $0x19] ss:$0 sm:$0xff]  ;;  %v5081_v50 = vld [vmem:[#allocation28_spill] sm:$0xff] }
 0x4eb   :  { %v1765_v6 = vadd.f32 %v1761_v11, %v1740_v54  ;;  %v1809_v23 = vpop.permute.xlu0 %1808  ;;  %v1821_v48 = vadd.f32 %v1817_v41, %v1790_v47  ;;  %v1819_v4 = vmul.f32 %v2969_v28, %v1811_v44 }
 0x4ec   :  { %v1764_v15 = vadd.f32 %v1760_v59, %v1739_v20  ;;  %v1820_v18 = vadd.f32 %v1816_v24, %v1789_v52  ;;  %v1818_v0 = vmul.f32 %v2969_v28, %v1809_v23  ;;  %v2973_v59 = vld [vmem:[%s4956_s5 + $0x1a] ss:$0 sm:$0xff]  ;;  %v2974_v20 = vld [vmem:[%s4956_s5 + $0x1b] ss:$0 sm:$0xff]  ;;  %v2975_v23 = vld [vmem:[%s4956_s5 + $0x1c] ss:$0 sm:$0xff] }
 0x4ed   :  { %v1792_v19 = vadd.f32 %v5074_v21, %v1765_v6  ;;  %v2030_v12 = vmul.f32 %v2974_v20, %v4298_v51  ;;  %v2029_v24 = vmul.f32 %v2974_v20, %v4305_v35 }
 0x4ee   :  { %v1791_v26 = vadd.f32 %v5075_v14, %v1764_v15  ;;  %v1832_v45 = vpop.permute.xlu1 %1831 }
 0x4ef   :  { %v1842_v36 = vmul.f32 %v2970_v32, %v1832_v45  ;;  %v1830_v22 = vpop.permute.xlu0 %1829  ;;  %v1823_v7 = vadd.f32 %v1819_v4, %v1792_v19  ;;  %v2976_v19 = vld [vmem:[%s4956_s5 + $0x1d] ss:$0 sm:$0xff]  ;;  %v2059_v45 = vmul.f32 %v2975_v23, %v4576_v39  ;;  %v2031_v39 = vmul.f32 %v2974_v20, %v4342_v37 }
 0x4f0   :  { %v1841_v1 = vmul.f32 %v2970_v32, %v1830_v22  ;;  %v1822_v43 = vadd.f32 %v1818_v0, %v1791_v26  ;;  %v2084_v0 = vmul.f32 %v2976_v19, %v4592_v34  ;;  %v2083_v35 = vmul.f32 %v2976_v19, %v4594_v42 }
 0x4f1   :  { %v1846_v10 = vadd.f32 %v1842_v36, %v1821_v48 }
 0x4f2   :  { %v1845_v25 = vadd.f32 %v1841_v1, %v1820_v18  ;;  %v1836_v17 = vpop.permute.xlu1 %1835  ;;  %v2058_v1 = vmul.f32 %v2975_v23, %v4578_v62 }
 0x4f3   :  { %v1844_v3 = vmul.f32 %v2970_v32, %v1836_v17  ;;  %v1834_v46 = vpop.permute.xlu0 %1833  ;;  %v1873_v58 = vadd.f32 %v5077_v31, %v1846_v10  ;;  %v2032_v17 = vmul.f32 %v2974_v20, %v4330_v2  ;;  %v2061_v31 = vmul.f32 %v2975_v23, %v4584_v5  ;;  %v2978_v5 = vld [vmem:[%s4956_s5 + $0x1f] ss:$0 sm:$0xff] }
 0x4f4   :  { %v1843_v27 = vmul.f32 %v2970_v32, %v1834_v46  ;;  %v1872_v55 = vadd.f32 %v5078_v8, %v1845_v25 }
 0x4f5   :  { %v1848_v33 = vadd.f32 %v1844_v3, %v1823_v7 }
 0x4f6   :  { %v1847_v57 = vadd.f32 %v1843_v27, %v1822_v43  ;;  %v1890_v30 = vpop.permute.xlu1 %1889  ;;  %v2060_v27 = vmul.f32 %v2975_v23, %v4586_v9 }
 0x4f7   :  { %v1888_v61 = vpop.permute.xlu0 %1887  ;;  %v1875_v60 = vadd.f32 %v5080_v56, %v1848_v33  ;;  %v1900_v40 = vmul.f32 %v2972_v38, %v1890_v30  ;;  %v5082_v33 = vld [vmem:[#allocation29_spill] sm:$0xff]  ;;  %v2085_v30 = vmul.f32 %v2976_v19, %v4602_v49 }
 0x4f8   :  { %v1874_v11 = vadd.f32 %v5081_v50, %v1847_v57  ;;  %v1899_v47 = vmul.f32 %v2972_v38, %v1888_v61  ;;  %v5083_v57 = vrot.slane %v5082_v33, 1  ;;  %v5084_v61 = vld [vmem:[#allocation32_spill] sm:$0xff] }
 0x4f9   :  { %v1904_v29 = vadd.f32 %v1900_v40, %v1873_v58 }
 0x4fa   :  { %v1894_v54 = vpop.permute.xlu1 %1893  ;;  %v1903_v15 = vadd.f32 %v1899_v47, %v1872_v55  ;;  %v2086_v55 = vmul.f32 %v2976_v19, %v4600_v53  ;;  %v2979_v53 = vld [vmem:[%s4956_s5 + $0x20] ss:$0 sm:$0xff] }
 0x4fb   :  { %v1892_v13 = vpop.permute.xlu0 %1891  ;;  %v1902_v52 = vmul.f32 %v2972_v38, %v1894_v54 }
 0x4fc   :  { %v1901_v32 = vmul.f32 %v2972_v38, %v1892_v13  ;;  %v5087_v13 = vld [vmem:[#allocation35_spill] sm:$0xff] }
 0x4fd   :  { %v1906_v48 = vadd.f32 %v1902_v52, %v1875_v60 }
 0x4fe   :  { %v1915_v28 = vpop.permute.xlu1 %1914  ;;  %v1905_v4 = vadd.f32 %v1901_v32, %v1874_v11  ;;  %v5085_v11 = vld [vmem:[#allocation31_spill] sm:$0xff] }
 0x4ff   :  { %v1925_v44 = vmul.f32 %v2973_v59, %v1915_v28  ;;  %v1913_v6 = vpop.permute.xlu0 %1912  ;;  %v5086_v54 = vrot.slane %v5085_v11, 1 }
 0x500   :  { %v1924_v41 = vmul.f32 %v2973_v59, %v1913_v6 }
 0x501   :  { %v1929_v21 = vadd.f32 %v1925_v44, %v1904_v29 }
 0x502   :  { %v1928_v14 = vadd.f32 %v1924_v41, %v1903_v15  ;;  %v1919_v26 = vpop.permute.xlu1 %1918 }
 0x503   :  { %v2034_v36 = vadd.f32 %v2030_v12, %v1929_v21  ;;  %v1927_v22 = vmul.f32 %v2973_v59, %v1919_v26  ;;  %v1917_v18 = vpop.permute.xlu0 %1916 }
 0x504   :  { %v2033_v10 = vadd.f32 %v2029_v24, %v1928_v14  ;;  %v1926_v51 = vmul.f32 %v2973_v59, %v1917_v18  ;;  %v5088_v24 = vld [vmem:[#allocation30_spill] sm:$0xff] }
 0x505   :  { %v2063_v25 = vadd.f32 %v2059_v45, %v2034_v36  ;;  %v1931_v7 = vadd.f32 %v1927_v22, %v1906_v48  ;;  %v5089_v14 = vrot.slane %v5088_v24, 2  ;;  %v5090_v36 = vld [vmem:[#allocation33_spill] sm:$0xff] }
 0x506   :  { %v2062_v3 = vadd.f32 %v2058_v1, %v2033_v10  ;;  %v1930_v46 = vadd.f32 %v1926_v51, %v1905_v4  ;;  %v2132_v16 = vpop.permute.xlu1 %2131  ;;  %v5091_v51 = vld [vmem:[#allocation34_spill] sm:$0xff]  ;;  %v3173_v24 = vld [vmem:[%s4958_s7 + $0xf0] sm:$0xff]  }
 0x507   :  { %v2036_v58 = vadd.f32 %v2032_v17, %v1931_v7  ;;  %v2088_v62 = vadd.f32 %v2084_v0, %v2063_v25  ;;  %v2130_v43 = vpop.permute.xlu0 %2129  ;;  %v2142_v50 = vmul.f32 %v2978_v5, %v2132_v16  ;;  %v5092_v0 = vrot.slane %v5091_v51, 2  ;;  %v2981_v17 = vld [vmem:[%s4956_s5 + $0x22] ss:$0 sm:$0xff]  ;;  %v5093_v7 = vld [vmem:[#allocation36_spill] sm:$0xff] }
 0x508   :  { %v2035_v8 = vadd.f32 %v2031_v39, %v1930_v46  ;;  %v2087_v34 = vadd.f32 %v2083_v35, %v2062_v3  ;;  %v2141_v49 = vmul.f32 %v2978_v5, %v2130_v43 }
 0x509   :  { %v2065_v2 = vadd.f32 %v2061_v31, %v2036_v58  ;;  %v2115_v42 = vadd.f32 %v5083_v57, %v2088_v62  ;;  %v2982_v31 = vld [vmem:[%s4956_s5 + $0x23] ss:$0 sm:$0xff]  ;;  %s3242_s5 = smov 57  }
 0x50a   :  { %v2064_v37 = vadd.f32 %v2060_v27, %v2035_v8  ;;  %v2114_v63 = vadd.f32 %v5084_v61, %v2087_v34  ;;  %v2136_v56 = vpop.permute.xlu1 %2135 }
 0x50b   :  { %v2090_v60 = vadd.f32 %v2086_v55, %v2065_v2  ;;  %v2134_v9 = vpop.permute.xlu0 %2133  ;;  %v2146_v20 = vadd.f32 %v2142_v50, %v2115_v42  ;;  %v2144_v6 = vmul.f32 %v2978_v5, %v2136_v56  ;;  %v2983_v2 = vld [vmem:[%s4957_s6] ss:$0 sm:$0xff] }
 0x50c   :  { %v2089_v38 = vadd.f32 %v2085_v30, %v2064_v37  ;;  %v2145_v52 = vadd.f32 %v2141_v49, %v2114_v63  ;;  %v2143_v15 = vmul.f32 %v2978_v5, %v2134_v9 }
 0x50d   :  { %v2117_v40 = vadd.f32 %v5086_v54, %v2090_v60 }
 0x50e   :  { %v2116_v47 = vadd.f32 %v5087_v13, %v2089_v38  ;;  %v2157_v59 = vpop.permute.xlu1 %2156 }
 0x50f   :  { %v2167_v28 = vmul.f32 %v2979_v53, %v2157_v59  ;;  %v2155_v29 = vpop.permute.xlu0 %2154  ;;  %v2148_v12 = vadd.f32 %v2144_v6, %v2117_v40  ;;  %v3165_v6 = vld [vmem:[%s4958_s7 + $0x38] sm:$0xff]  }
 0x510   :  { %v2166_v44 = vmul.f32 %v2979_v53, %v2155_v29  ;;  %v2147_v45 = vadd.f32 %v2143_v15, %v2116_v47  ;;  %v3167_v15 = vld [vmem:[%s4958_s7 + $0x30] sm:$0xff]  }
 0x511   :  { %v2171_v23 = vadd.f32 %v2167_v28, %v2146_v20 }
 0x512   :  { %v2170_v32 = vadd.f32 %v2166_v44, %v2145_v52  ;;  %v2161_v41 = vpop.permute.xlu1 %2160  ;;  %v3164_v44 = vld [vmem:[%s4958_s7 + $0x78] sm:$0xff]  }
 0x513   :  { %v2169_v21 = vmul.f32 %v2979_v53, %v2161_v41  ;;  %v2159_v19 = vpop.permute.xlu0 %2158  ;;  %v2198_v26 = vadd.f32 %v5089_v14, %v2171_v23  ;;  %3031 = vmatprep.subr.bf16.mxu0 %v3164_v44  ;;  %v3166_v23 = vld [vmem:[%s4958_s7 + $0x70] sm:$0xff]   ;;  %v3169_v41 = vld [vmem:[%s4958_s7 + $0xf8] ss:$0 sps:$4 sm:$0xff]   ;;  %v3174_v14 = vld [vmem:[%s4958_s7 + $0x20] sm:$0xff]  }
 0x514   :  { %v2168_v48 = vmul.f32 %v2979_v53, %v2159_v19  ;;  %v2197_v22 = vadd.f32 %v5090_v36, %v2170_v32  ;;  %3032 = vmatpush3.bf16.msra.mxu0 %v3165_v6  ;;  %v3168_v32 = vld [vmem:[%s4958_s7 + $0x68] sm:$0xff]   ;;  %3115 = vmatprep.subr.msk.bf16.mxu1 %vm2642_vm8, %v3169_v41  ;;  %v3172_v19 = vld [vmem:[%s4958_s7 + $0x60] sm:$0xff]   ;;  %v3178_v36 = vld [vmem:[%s4958_s7 + $0x18] sm:$0xff]  }
 0x515   :  { %v2173_v18 = vadd.f32 %v2169_v21, %v2148_v12  ;;  %3033 = vmatprep.subr.bf16.mxu0 %v3166_v23  ;;  %v3170_v12 = vld [vmem:[%s4958_s7 + $0x28] sm:$0xff]   ;;  %v3171_v21 = vld [vmem:[%s4958_s7 + $0xb8] sm:$0xff]  }
 0x516   :  { %v2172_v1 = vadd.f32 %v2168_v48, %v2147_v45  ;;  %v2215_v4 = vpop.permute.xlu1 %2214  ;;  %3054 = vmatpush3.bf16.msra.mxu1 %v3171_v21  ;;  %v3176_v45 = vld [vmem:[%s4958_s7 + $0x58] sm:$0xff]   ;;  %v3177_v48 = vld [vmem:[%s4958_s7 + $0xe8] sm:$0xff]  }
 0x517   :  { %v2213_v10 = vpop.permute.xlu0 %2212  ;;  %v2200_v25 = vadd.f32 %v5092_v0, %v2173_v18  ;;  %v2225_v39 = vmul.f32 %v2981_v17, %v2215_v4  ;;  %3055 = vmatprep.subr.bf16.mxu1 %v3173_v24  ;;  %v3180_v18 = vld [vmem:[%s4958_s7 + $0x50] sm:$0xff]  }
 0x518   :  { %v2199_v35 = vadd.f32 %v5093_v7, %v2172_v1  ;;  %v2224_v16 = vmul.f32 %v2981_v17, %v2213_v10  ;;  %3034 = vmatpush3.bf16.msra.mxu0 %v3167_v15  ;;  %v3181_v1 = vld [vmem:[%s4958_s7 + $0xe0] sm:$0xff]   ;;  %v3182_v4 = vld [vmem:[%s4958_s7 + $0x10] sm:$0xff]   ;;  %v3184_v7 = vld [vmem:[%s4958_s7 + $0x48] sm:$0xff]   ;;  %v3240_v15 = vmov 0.0  }
 0x519   :  { %v2229_v62 = vadd.f32 %v2225_v39, %v2198_v26  ;;  %3035 = vmatprep.subr.bf16.mxu0 %v3168_v32  ;;  %v3175_v26 = vld [vmem:[%s4958_s7 + $0xb0] sm:$0xff]   ;;  %v3183_v10 = vld [vmem:[%s4958_s7 + $0xa0] sm:$0xff]  }
 0x51a   :  { %v2219_v3 = vpop.permute.xlu1 %2218  ;;  %v2228_v34 = vadd.f32 %v2224_v16, %v2197_v22  ;;  %3056 = vmatpush3.bf16.msra.mxu1 %v3175_v26  ;;  %v3179_v22 = vld [vmem:[%s4958_s7 + $0xa8] sm:$0xff]   ;;  %v3187_v16 = vld [vmem:[%s4958_s7 + $0x98] sm:$0xff]  }
 0x51b   :  { %v2217_v46 = vpop.permute.xlu0 %2216  ;;  %v2227_v43 = vmul.f32 %v2981_v17, %v2219_v3  ;;  %3057 = vmatprep.subr.bf16.mxu1 %v3177_v48  ;;  %v3186_v3 = vld [vmem:[%s4958_s7 + $0x8] sm:$0xff]  }
 0x51c   :  { %v2226_v55 = vmul.f32 %v2981_v17, %v2217_v46  ;;  %3036 = vmatpush3.bf16.msra.mxu0 %v3170_v12 }
 0x51d   :  { %v2231_v37 = vadd.f32 %v2227_v43, %v2200_v25  ;;  %3037 = vmatprep.subr.bf16.mxu0 %v3172_v19 }
 0x51e   :  { %v2240_v58 = vpop.permute.xlu1 %2239  ;;  %v2230_v56 = vadd.f32 %v2226_v55, %v2199_v35  ;;  %3058 = vmatpush3.bf16.msra.mxu1 %v3179_v22  ;;  %v3185_v35 = vld [vmem:[%s4958_s7 + $0xd8] sm:$0xff]  }
 0x51f   :  { %v2250_v27 = vmul.f32 %v2982_v31, %v2240_v58  ;;  %v2238_v8 = vpop.permute.xlu0 %2237  ;;  %3059 = vmatprep.subr.bf16.mxu1 %v3181_v1 }
 0x520   :  { %v2249_v33 = vmul.f32 %v2982_v31, %v2238_v8  ;;  %3038 = vmatpush3.bf16.msra.mxu0 %v3174_v14 }
 0x521   :  { %v2254_v57 = vadd.f32 %v2250_v27, %v2229_v62  ;;  %3039 = vmatprep.subr.bf16.mxu0 %v3176_v45 }
 0x522   :  { %v2253_v42 = vadd.f32 %v2249_v33, %v2228_v34  ;;  %v2244_v30 = vpop.permute.xlu1 %2243  ;;  %3060 = vmatpush3.bf16.msra.mxu1 %v3183_v10  ;;  %v3189_v33 = vld [vmem:[%s4958_s7 + $0xd0] sm:$0xff]  }
 0x523   :  { %v2265_v5 = vadd.f32 %v2983_v2, %v2254_v57  ;;  %v2252_v61 = vmul.f32 %v2982_v31, %v2244_v30  ;;  %v2242_v63 = vpop.permute.xlu0 %2241  ;;  %3061 = vmatprep.subr.bf16.mxu1 %v3185_v35  ;;  %v3190_v57 = vld [vmem:[%s4958_s7] sm:$0xff]  }
 0x524   :  { %v2264_v60 = vadd.f32 %v2983_v2, %v2253_v42  ;;  %v2251_v9 = vmul.f32 %v2982_v31, %v2242_v63  ;;  %3040 = vmatpush3.bf16.msra.mxu0 %v3178_v36  ;;  %v3191_v42 = vld [vmem:[%s4958_s7 + $0x90] sm:$0xff]   ;;  %v3192_v63 = vld [vmem:[%s4958_s7 + $0xc8] sm:$0xff]  }
 0x525   :  { %v2256_v38 = vadd.f32 %v2252_v61, %v2231_v37  ;;  %v2273_v50 = vmul.f32 0.01, %v2265_v5  ;;  %vm2269_vm2 = vcmp.gt.f32.partialorder %v2265_v5, 0.0  ;;  %3041 = vmatprep.subr.bf16.mxu0 %v3180_v18 }
 0x526   :  { %v2255_v53 = vadd.f32 %v2251_v9, %v2230_v56  ;;  %v2272_v54 = vmul.f32 0.01, %v2264_v60  ;;  %vm2268_vm5 = vcmp.gt.f32.partialorder %v2264_v60, 0.0  ;;  %3062 = vmatpush3.bf16.msra.mxu1 %v3187_v16  ;;  %v3193_v56 = vld [vmem:[%s4958_s7 + $0x88] sm:$0xff]  }
 0x527   :  { %v2267_v11 = vadd.f32 %v2983_v2, %v2256_v38  ;;  %v2277_v47 = vsel %vm2269_vm2, %v2265_v5, %v2273_v50  ;;  %3063 = vmatprep.subr.bf16.mxu1 %v3189_v33 }
 0x528   :  { %v2266_v40 = vadd.f32 %v2983_v2, %v2255_v53  ;;  %v2276_v28 = vsel %vm2268_vm5, %v2264_v60, %v2272_v54  ;;  %3042 = vmatpush3.bf16.msra.mxu0 %v3182_v4  ;;  %v3188_v2 = vld [vmem:[%s4958_s7 + $0x40] sm:$0xff]   ;;  %v3196_v4 = vld [vmem:[%s4959_s9 + $0x38] sm:$0xff]   ;;  %vm2868_vm5 = vcmask 261120  }
 0x529   :  { %vm2271_vm6 = vcmp.gt.f32.partialorder %v2267_v11, 0.0  ;;  %v2275_v49 = vmul.f32 0.01, %v2267_v11  ;;  %3043 = vmatprep.subr.bf16.mxu0 %v3184_v7  ;;  %v3194_v54 = vld [vmem:[%s4958_s7 + $0xc0] sm:$0xff]  }
 0x52a   :  { %vm2270_vm7 = vcmp.gt.f32.partialorder %v2266_v40, 0.0  ;;  %v2274_v13 = vmul.f32 0.01, %v2266_v40  ;;  %3064 = vmatpush3.bf16.msra.mxu1 %v3191_v42 }
 0x52b   :  { %v2279_v59 = vsel %vm2271_vm6, %v2267_v11, %v2275_v49  ;;  %3065 = vmatprep.subr.bf16.mxu1 %v3192_v63  ;;  %vm2912_vm6 = vcmask 1024  }
 0x52c   :  { %v3159_v20 = vpack.i.bf16 %v2279_v59, %v2277_v47  ;;  %v2278_v29 = vsel %vm2270_vm7, %v2266_v40, %v2274_v13  ;;  %3044 = vmatpush3.bf16.msra.mxu0 %v3186_v3 }
 0x52d   :  { %v3154_v52 = vpack.i.bf16 %v2278_v29, %v2276_v28  ;;  %3045 = vmatprep.subr.bf16.mxu0 %v3188_v2 }
 0x52e   :  { %3160 = vrot.lane.b32.xlu1 %v3159_v20, %s3207_s17  ;;  %3066 = vmatpush3.bf16.msra.mxu1 %v3193_v56 }
 0x52f   :  { %3155 = vrot.lane.b32.xlu0 %v3154_v52, %s3207_s17  ;;  %3067 = vmatprep.subr.bf16.mxu1 %v3194_v54  ;;  %v3018_v54 = vld [vmem:[%s4963_s10] ss:$0 sm:$0xff] }
 0x530   :  { %3046 = vmatpush3.bf16.msra.mxu0 %v3190_v57  ;;  %v2984_v57 = vld [vmem:[%s4960_s8] ss:$0 sm:$0xff] }
 0x531   :  { %3087 = vmatprep.subr.bf16.mxu0 %v3240_v15 }
 0x5a0   :  { %v3161_v51 = vpop.permute.xlu1 %3160 }
 0x5a1   :  { %v3163_v0 = vunpack.i.h.bf16 %v3161_v51  ;;  %v3162_v25 = vunpack.i.l.bf16 %v3161_v51  ;;  %v3156_v17 = vpop.permute.xlu0 %3155 }
 0x5a2   :  { %v3158_v39 = vunpack.i.h.bf16 %v3156_v17  ;;  %v3157_v46 = vunpack.i.l.bf16 %v3156_v17  ;;  %v3197_v17 = vld [vmem:[%s4959_s9 + $0x30] sm:$0xff]  }
 0x5a3   :  { %v2299_v31 = vmax.f32 %v2279_v59, %v3163_v0  ;;  %v2298_v58 = vmax.f32 %v2277_v47, %v3162_v25  ;;  %v3195_v47 = vld [vmem:[%s4958_s7 + $0x80] sm:$0xff]   ;;  %s3239_s7 = smov 63  }
 0x5a4   :  { %v2289_v62 = vmax.f32 %v2278_v29, %v3158_v39  ;;  %v2288_v43 = vmax.f32 %v2276_v28, %v3157_v46  ;;  %3068 = vmatpush3.bf16.msra.mxu1 %v3195_v47  ;;  %v3198_v46 = vld [vmem:[%s4959_s9 + $0x28] sm:$0xff]  }
 0x5a5   :  { %v2308_v27 = vrot.slane %v2299_v31, 1  ;;  %v2305_v8 = vrot.slane %v2298_v58, 1  ;;  %3107 = vmatprep.subr.bf16.mxu1 %v3240_v15  ;;  %v3199_v31 = vld [vmem:[%s4959_s9 + $0x20] sm:$0xff]   ;;  %v3200_v58 = vld [vmem:[%s4959_s9 + $0x18] sm:$0xff]  }
 0x5a6   :  { %v2307_v34 = vrot.slane %v2289_v62, 1  ;;  %v2304_v55 = vrot.slane %v2288_v43, 1 }
 0x5a8   :  { %v2309_v30 = vsel %vm148_vm1, %v2307_v34, %v2308_v27  ;;  %v2306_v37 = vsel %vm148_vm1, %v2304_v55, %v2305_v8  ;;  %vm2365_vm1 = vcmask 498688   ;;  %v3203_v27 = vld [vmem:[%s4959_s9] sm:$0xff]  }
 0x5a9   :  { %v2313_v5 = vmax.f32 %v2289_v62, %v2309_v30  ;;  %v2312_v61 = vmax.f32 %v2288_v43, %v2306_v37  ;;  %v3201_v62 = vld [vmem:[%s4959_s9 + $0x10] sm:$0xff]   ;;  %v3202_v43 = vld [vmem:[%s4959_s9 + $0x8] sm:$0xff]  }
 0x5ab   :  { %v2331_v60 = vrot.slane %v2312_v61, 3  ;;  %v2332_v9 = vrot.slane %v2313_v5, 2  ;;  %v2325_v38 = vrot.slane %v2312_v61, 2  ;;  %v2326_v53 = vrot.slane %v2313_v5, 1 }
 0x5ac   :  { %v2337_v50 = vrot.slane %v2312_v61, 4  ;;  %v2338_v11 = vrot.slane %v2313_v5, 3  ;;  %v2320_v13 = vrot.slane %v2312_v61, 1  ;;  %v2316_v59 = vrot.slane %v2313_v5, 7 }
 0x5ad   :  { %v2333_v40 = vsel %vm2317_vm9, %v2332_v9, %v2331_v60  ;;  %v2327_v49 = vsel %vm2317_vm9, %v2326_v53, %v2325_v38  ;;  %v2349_v28 = vrot.slane %v2312_v61, 6  ;;  %v2350_v29 = vrot.slane %v2313_v5, 5  ;;  %v3204_v53 = vld [vmem:[%s4961_s11 + $0x8] sm:$0xff]  }
 0x5ae   :  { %2334 = vrot.lane.b32.xlu1 %v2333_v40, %s3237_s30  ;;  %2328 = vrot.lane.b32.xlu0 %v2327_v49, %s3208_s21  ;;  %v2339_v20 = vsel %vm2317_vm9, %v2338_v11, %v2337_v50  ;;  %v2343_v52 = vrot.slane %v2312_v61, 5  ;;  %v2321_v44 = vsel %vm2317_vm9, %v2313_v5, %v2320_v13  ;;  %v2344_v6 = vrot.slane %v2313_v5, 4  ;;  %s3241_s21 = smov 59   ;;  %v3205_v50 = vld [vmem:[%s4961_s11] sm:$0xff]  }
 0x5af   :  { %v2318_v23 = vsel %vm2317_vm9, %v2316_v59, %v2312_v61  ;;  %v2351_v32 = vsel %vm2317_vm9, %v2350_v29, %v2349_v28  ;;  %v2355_v12 = vrot.slane %v2312_v61, 7  ;;  %v2356_v21 = vrot.slane %v2313_v5, 6 }
 0x5b0   :  { %v2345_v41 = vsel %vm2317_vm9, %v2344_v6, %v2343_v52  ;;  %v18_v11 = vstv %s4962_s12 }
 0x5b1   :  { %v2357_v19 = vsel %vm2317_vm9, %v2356_v21, %v2355_v12  ;;  %19 = vst [vmem:[#allocation2] sm:$0x1] %v18_v11 }
 0x5b2   :  { %2340 = vrot.lane.b32.xlu1 %v2339_v20, %s3238_s14  ;;  %2322 = vrot.lane.b32.xlu0 %v2321_v44, %s3239_s7 }
 0x5b6   :  { %2352 = vrot.lane.b32.xlu1 %v2351_v32, %s3228_s25  ;;  %2346 = vrot.lane.b32.xlu0 %v2345_v41, %s3241_s21 }
 0x5b8   :  { %v3027_v52 = vld [vmem:[#allocation2] ss:$0 sm:$0xff] }
 0x5ba   :  { %2358 = vrot.lane.b32.xlu0 %v2357_v19, %s3242_s5 }
 0x620   :  { %v2335_v24 = vpop.permute.xlu1 %2334  ;;  %v2329_v14 = vpop.permute.xlu0 %2328 }
 0x621   :  { %v2366_v26 = vsel %vm2365_vm1, %v2329_v14, %v2335_v24 }
 0x624   :  { %v2341_v45 = vpop.permute.xlu1 %2340  ;;  %v2323_v48 = vpop.permute.xlu0 %2322 }
 0x625   :  { %v2362_v36 = vsel %vm2361_vm10, %v2318_v23, %v2323_v48  ;;  %v2368_v22 = vsel %vm2367_vm11, %v2366_v26, %v2341_v45 }
 0x626   :  { %v2364_v18 = vsel %vm2363_vm12, %v2362_v36, %v2329_v14  ;;  %v2376_v1 = vpack.c.bf16 %v2368_v22, %v2368_v22 }
 0x627   :  { %v2375_v10 = vpack.c.bf16 %v2364_v18, %v2364_v18 }
 0x628   :  { %2678 = vmatprep.mubr.bf16.mxu0 %v2376_v1  ;;  %v2347_v51 = vpop.permute.xlu0 %2346  ;;  %v2353_v0 = vpop.permute.xlu1 %2352 }
 0x629   :  { %v2370_v25 = vsel %vm2369_vm13, %v2341_v45, %v2347_v51  ;;  %2679 = vmatmul.mubr.bf16.vlgmr.msra.gmra.mxu0 %v2375_v10 }
 0x62a   :  { %3088 = vmatpush3.bf16.msra.mxu0 %v3196_v4  ;;  %v2372_v7 = vsel %vm2371_vm14, %v2370_v25, %v2353_v0  ;;  %3103 = vmatprep.mubr.msk.bf16.mxu0 %vm3243_vm3, %v3240_v15 }
 0x62b   :  { %3089 = vmatprep.subr.bf16.mxu0 %v3240_v15  ;;  %v2377_v16 = vpack.c.bf16 %v2372_v7, %v2372_v7 }
 0x62c   :  { %v2359_v35 = vpop.permute.xlu0 %2358 }
 0x62d   :  { %v2374_v3 = vsel %vm2373_vm15, %v2353_v0, %v2359_v35 }
 0x62e   :  { %v2378_v39 = vpack.c.bf16 %v2374_v3, %v2374_v3  ;;  %3090 = vmatpush3.bf16.msra.mxu0 %v3197_v17 }
 0x62f   :  { %3091 = vmatprep.subr.bf16.mxu0 %v3240_v15 }
 0x630   :  { %3017 = vmatprep.mubr.msk.bf16.mxu1 %vm2638_vm0, %v2378_v39 }
 0x631   :  { %2719 = vmatmul.mubr.bf16.vlgmr.msra.gmra.mxu1 %v2377_v16 }
 0x632   :  { %3092 = vmatpush3.bf16.msra.mxu0 %v3198_v46  ;;  %3111 = vmatprep.mubr.msk.bf16.mxu1 %vm3243_vm3, %v3240_v15 }
 0x633   :  { %3093 = vmatprep.subr.bf16.mxu0 %v3240_v15  ;;  %3108 = vmatpush3.bf16.msra.mxu1 %v3204_v53 }
 0x634   :  { %3109 = vmatprep.subr.bf16.mxu1 %v3240_v15 }
 0x636   :  { %3094 = vmatpush3.bf16.msra.mxu0 %v3199_v31 }
 0x637   :  { %3095 = vmatprep.subr.bf16.mxu0 %v3240_v15  ;;  %3110 = vmatpush3.bf16.msra.mxu1 %v3205_v50 }
 0x63a   :  { %3096 = vmatpush3.bf16.msra.mxu0 %v3200_v58 }
 0x63b   :  { %3097 = vmatprep.subr.bf16.mxu0 %v3240_v15 }
 0x63e   :  { %3098 = vmatpush3.bf16.msra.mxu0 %v3201_v62 }
 0x63f   :  { %3099 = vmatprep.subr.bf16.mxu0 %v3240_v15 }
 0x642   :  { %3100 = vmatpush3.bf16.msra.mxu0 %v3202_v43 }
 0x643   :  { %3101 = vmatprep.subr.bf16.mxu0 %v3240_v15 }
 0x646   :  { %3102 = vmatpush3.bf16.msra.mxu0 %v3203_v27 }
 0x6e9   :  { %v3047_v8 = vpop.f32.mrf.mxu0 }
 0x6eb   :  { %v3048_v34 = vpop.f32.mrf.mxu0 }
 0x6ec   :  { %v3049_v33 = vadd.f32 %v3048_v34, %v3047_v8 }
 0x6ed   :  { %v3050_v55 = vpop.f32.mrf.mxu0 }
 0x6ee   :  { %v2681_v37 = vadd.f32 %v3049_v33, %v2984_v57 }
 0x6ef   :  { %v3051_v2 = vpop.f32.mrf.mxu0 }
 0x6f1   :  { %v3069_v42 = vpop.f32.mrf.mxu1 }
 0x6f3   :  { %v3070_v30 = vpop.f32.mrf.mxu1 }
 0x6f4   :  { %v3071_v5 = vadd.f32 %v3070_v30, %v3069_v42 }
 0x6f5   :  { %v3072_v61 = vpop.f32.mrf.mxu1 }
 0x6f6   :  { %v2721_v63 = vadd.f32 %v3071_v5, %v2681_v37 }
 0x6f7   :  { %v3073_v56 = vpop.f32.mrf.mxu1 }
 0x6f8   :  { %vm2726_vm4 = vcmp.gt.f32.partialorder %v2721_v63, 0.0  ;;  %v2727_v60 = vmul.f32 0.01, %v2721_v63 }
 0x6fa   :  { %v2728_v9 = vsel %vm2726_vm4, %v2721_v63, %v2727_v60 }
 0x6fb   :  { %v2729_v38 = vpack.c.bf16 %v2728_v9, %v2728_v9 }
 0x6fd   :  { %3104 = vmatmul.mubr.bf16.vlgmr.msra.gmra.mxu0 %v2729_v38 }
 0x7bd   :  { %v2835_v40 = vpop.f32.mrf.mxu0 }
 0x7be   :  { %v2836_v49 = vadd.f32 %v3018_v54, %v2835_v40 }
 0x7bf   :  { %v3105_v13 = vpop.f32.mrf.mxu0 }
 0x7c0   :  { %vm2841_vm2 = vcmp.gt.f32.partialorder %v2836_v49, 0.0  ;;  %v2842_v47 = vmul.f32 0.01, %v2836_v49 }
 0x7c1   :  { %v2838_v59 = vpop.f32.mrf.mxu0 }
 0x7c2   :  { %v2843_v20 = vsel %vm2841_vm2, %v2836_v49, %v2842_v47 }
 0x7c3   :  { %v2844_v28 = vpack.c.bf16 %v2843_v20, %v2843_v20  ;;  %v3106_v29 = vpop.f32.mrf.mxu0 }
 0x7c5   :  { %3112 = vmatmul.mubr.msk.bf16.vlgmr.msra.gmra.mxu1 %vm2868_vm5, %v2844_v28 }
 0x885   :  { %v2906_v44 = vpop.f32.mrf.mxu1 }
 0x886   :  { %v2907_v6 = vadd.f32 %v3027_v52, %v2906_v44 }
 0x887   :  { %v3113_v23 = vpop.f32.mrf.mxu1 }
 0x888   :  { %2913 = vst.msk [vmem:[%s4964_s13] sm:$0x3] %vm2912_vm6, %v2907_v6 }
 0x889   :  { %v2909_v15 = vpop.f32.mrf.mxu1 }
 0x88b   :  { %v3114_v32 = vpop.f32.mrf.mxu1 }

</bundles_post_ra>
